<compile_context>
chip_gen: v7x
topology: tpu7x:2x2x1
jax: 0.10.0
libtpu: 0.0.40
codegen_flags: <defaults>
</compile_context>

<pallas_src>
import jax
import jax.numpy as jnp
from jax.experimental import pallas as pl
from jax.experimental.pallas import tpu as pltpu


def _h_sigmoid_math(x):
    # Exactly torch's ReLU6(x + 3) / 6 (true division, like the reference).
    return jnp.clip(x + 3.0, 0.0, 6.0) / 6.0


def _h_sigmoid_kernel(x_ref, o_ref):
    o_ref[...] = _h_sigmoid_math(x_ref[...]).astype(o_ref.dtype)


_XLA_FALLBACK_BYTES = 512 << 10      # below ~one block, launch overhead dominates
_FORCE_TWO_BLOCKS_BYTES = 1 << 20    # above this, give both v7x TensorCores work


def _target_block_bytes() -> int:
    """Per-generation block size at the HBM-roofline knee."""
    try:
        kind = jax.devices()[0].device_kind.lower()
    except Exception:
        kind = ""
    # Lower-bandwidth / smaller scoped-VMEM parts: 2 MiB keeps
    # 2 arrays x 2 buffers well inside the 16 MiB scoped default and
    # per-step overhead is already <~10% there.
    if any(tag in kind for tag in ("v2", "v3", "v5e", "v5 lite", "v5lite")):
        return 2 << 20
    # v4 / v6e / v7x: ~4 MiB blocks push the ~0.35 us per-grid-step overhead
    # under ~10% of block drain time even at v7x's ~3.2 TB/s per-TC HBM BW.
    return 4 << 20


def h_sigmoid(x: jax.Array) -> jax.Array:
    """Elementwise hard-sigmoid, same semantics as torch ReLU6(x+3)/6."""
    orig_shape = x.shape
    dtype = x.dtype
    n = x.size
    if n == 0:
        return x

    # Pallas path supports floating dtypes only (int/fp8 would truncate to 0/1).
    if not jnp.issubdtype(dtype, jnp.floating):
        return _h_sigmoid_math(x).astype(dtype)

    itemsize = jnp.dtype(dtype).itemsize
    total_bytes = n * itemsize
    # Sublane packing multiple: f32 -> 8, bf16/f16 -> 16.
    sub_mult = {4: 8, 2: 16, 1: 32}.get(itemsize, 8)

    # Small activations: pallas_call launch + pipeline prologue (a couple of
    # microseconds) dominates; XLA's fused clip is already bandwidth-minimal.
    if total_bytes < _XLA_FALLBACK_BYTES:
        return _h_sigmoid_math(x)

    # Ragged flat size (not a multiple of 128 lanes) is rare for NCHW
    # activations; the fused XLA clip is still one read + one write, unlike
    # the old pad + trailing-slice round trip (~3x HBM traffic).
    # TODO(synk): replace with a flat 1-D Pallas call whose partial last block
    # is masked by the runtime, so ragged sizes also stay in the kernel.
    if n % 128 != 0:
        return _h_sigmoid_math(x)

    # Widest lane dimension that divides the element count -> wide unmasked
    # vector stores and fewer per-row DMA descriptors.
    lane = 128
    for cand in (2048, 1024, 512, 256, 128):
        if n % cand == 0 and n // cand >= sub_mult:
            lane = cand
            break
    rows = n // lane
    x2d = x.reshape(rows, lane)          # free metadata reshape (contiguous)

    # Generation-aware block count; force at least two balanced blocks so
    # dimension_semantics=("parallel",) can shard across both v7x TensorCores.
    block_bytes = _target_block_bytes()
    num_blocks = -(-total_bytes // block_bytes)          # ceil
    if total_bytes > _FORCE_TWO_BLOCKS_BYTES:
        num_blocks = max(num_blocks, 2)
        if num_blocks % 2:
            num_blocks += 1                              # even -> no 2-vs-1 skew
    num_blocks = min(num_blocks, max(1, rows // sub_mult))

    tile_rows = -(-rows // num_blocks)
    if tile_rows < rows:
        # Keep tiles (sub_mult, 128)-aligned; Pallas masks the partial last block.
        tile_rows = -(-tile_rows // sub_mult) * sub_mult
        tile_rows = min(tile_rows, rows)
    grid = (-(-rows // tile_rows),)

    tile_bytes = tile_rows * lane * itemsize
    # 2 arrays x 2 pipeline buffers x tile, plus headroom for compiler scratch.
    vmem_limit = 4 * tile_bytes + (8 << 20)

    out2d = pl.pallas_call(
        _h_sigmoid_kernel,
        out_shape=jax.ShapeDtypeStruct((rows, lane), dtype),
        grid_spec=pltpu.PrefetchScalarGridSpec(
            num_scalar_prefetch=0,
            grid=grid,
            in_specs=[pl.BlockSpec((tile_rows, lane), lambda i: (i, 0))],
            out_specs=pl.BlockSpec((tile_rows, lane), lambda i: (i, 0)),
        ),
        compiler_params=pltpu.CompilerParams(
            # "parallel" shards the grid across both TensorCores on v7x;
            # neutral on single-TC v5e/v6e.
            dimension_semantics=("parallel",),
            vmem_limit_bytes=vmem_limit,
        ),
    )(x2d)

    return out2d.reshape(orig_shape)


if __name__ == "__main__":
    key = jax.random.PRNGKey(0)
    k_small, k_large = jax.random.split(key)

    # NCHW shape implied by the module: batch=2, channels=4, spatial=16x16.
    x_small = jax.random.normal(k_small, (2, 4, 16, 16), dtype=jnp.float32) * 4.0
    # Larger activation that exercises the Pallas path with a multi-block grid.
    x_large = jax.random.normal(k_large, (8, 32, 64, 64), dtype=jnp.float32) * 4.0

    for x in (x_small, x_large):
        out = jax.block_until_ready(h_sigmoid(x))
        ref = jnp.clip(x + 3.0, 0.0, 6.0) / 6.0
        assert out.shape == x.shape and out.dtype == x.dtype
        assert jnp.allclose(out, ref, atol=1e-6, rtol=1e-6)

    print("KERNEL_OK")
</pallas_src>

<mosaic_0001>
module attributes {stable_mosaic.version = 11 : i64} {
  func.func @_h_sigmoid_kernel(%arg0: i32, %arg1: memref<256x2048xf32, #tpu.memory_space<vmem>>, %arg2: memref<256x2048xf32, #tpu.memory_space<vmem>>) attributes {dimension_semantics = [#tpu.dimension_semantics<parallel>], iteration_bounds = array<i64: 2>, scalar_prefetch = 0 : i64, scratch_operands = 0 : i64, tpu.core_type = #tpu.core_type<tc>, window_params = [{transform_indices = @transform_0, window_bounds = array<i64: 256, 2048>}, {transform_indices = @transform_1, window_bounds = array<i64: 256, 2048>}]} {
    %c0 = arith.constant 0 : index
    %c0_0 = arith.constant 0 : index
    %0 = vector.load %arg1[%c0, %c0_0] : memref<256x2048xf32, #tpu.memory_space<vmem>>, vector<256x2048xf32>
    %cst = arith.constant 3.000000e+00 : f32
    %1 = vector.broadcast %cst : f32 to vector<256x2048xf32>
    %2 = arith.addf %0, %1 : vector<256x2048xf32>
    %cst_1 = arith.constant 0.000000e+00 : f32
    %cst_2 = arith.constant 6.000000e+00 : f32
    %3 = vector.broadcast %cst_1 : f32 to vector<256x2048xf32>
    %4 = arith.maximumf %3, %2 : vector<256x2048xf32>
    %5 = vector.broadcast %cst_2 : f32 to vector<256x2048xf32>
    %6 = arith.minimumf %5, %4 : vector<256x2048xf32>
    %cst_3 = arith.constant 6.000000e+00 : f32
    %7 = vector.broadcast %cst_3 : f32 to vector<256x2048xf32>
    %8 = arith.divf %6, %7 : vector<256x2048xf32>
    %c0_4 = arith.constant 0 : index
    %c0_5 = arith.constant 0 : index
    %9 = vector.load %arg2[%c0_4, %c0_5] : memref<256x2048xf32, #tpu.memory_space<vmem>>, vector<256x2048xf32>
    tpu.vector_store %arg2[%c0_4, %c0_5], %8 {strides = array<i32>} : memref<256x2048xf32, #tpu.memory_space<vmem>>, vector<256x2048xf32>,
    return
  }
  func.func @transform_0(%arg0: i32) -> (i32, i32) {
    %c0_i32 = arith.constant 0 : i32
    %c0_i32_0 = arith.constant 0 : i32
    return %arg0, %c0_i32 : i32, i32
  }
  func.func @transform_1(%arg0: i32) -> (i32, i32) {
    %c0_i32 = arith.constant 0 : i32
    %c0_i32_0 = arith.constant 0 : i32
    return %arg0, %c0_i32 : i32, i32
  }
}

</mosaic_0001>

<bundles_post_ra>
// kernel: tpu_custom_call.1
= control target key start
LH: loop header
LB: loop body
LE: loop exit
PB: predicated region body
PF: predicated region fallthrough
CT: control target
= control target key end

     0   :  { %6 = vsyncpa [#allocation3], 0  ;;  %s4678_s0 = inlined_call_operand.hbm [shape: f32[512,2048], index: 0, kind: input, shape index: {}]   ;;  %s4679_s1 = inlined_call_operand.hbm [shape: f32[512,2048], index: 1, kind: output, shape index: {}]  }
   0x1   :  { %8 = vsyncpa [#allocation3 + $0x1], 0 }
   0x2   :  { %9 = vsyncpa [#allocation4], 0 }
   0x3   :  { %11 = vsyncpa [#allocation4 + $0x1], 0  ;;  %s3483_s6 = smov 0   ;;  %s3485_s7 = smov 0  }
   0x4   :  { %s3487_s8 = smov 0   ;;  %s3489_s9 = smov 0  }
   0x5 LB: > { %s3504_s10 = sadd.s32 4294967295, %s3465_s9   ;;  %s3299_s11 = sadd.s32 4294967294, %s3465_s9   ;;  %s3465_s9 = sphi %s3489_s9, %s4692_s9   ;;  %s3461_s8 = sphi %s3487_s8, %s4691_s8   ;;  %s3457_s7 = sphi %s3485_s7, %s4690_s7   ;;  %s3453_s6 = sphi %s3483_s6, %s4689_s6  }
   0x6   : > { %s3508_s12 = sadd.s32 1, %s3465_s9   ;;  %s24_s13 = sadd.s32 1, %s3461_s8 }
   0x7   : > { %s21_s14 = ssub.s32 %s3465_s9, %s3508_s12  ;;  %p31_p0 = scmp.ne.s32.totalorder %s3461_s8, %s3457_s7 }
   0x8   : > { %p22_p1 = scmp.eq.s32.totalorder %s21_s14, 0  ;;  %p32_p2 = scmp.eq.s32.totalorder %s3465_s9, 0 }
   0x9   : > { %p37_p3 = scmp.ne.s32.totalorder %s3457_s7, %s3453_s6  ;;  %p38_p4 = scmp.eq.s32.totalorder %s3504_s10, 0 }
   0xa   : > { %s3520_s15 = scalar_select %p22_p1, %s3461_s8, %s24_s13  }
   0xb   : > { %p3522_p5 = por %p32_p2, %p31_p0  ;;  %p3526_p6 = por %p38_p4, %p37_p3 }
   0xc   : > { %p61_p7 = scmp.eq.s32.totalorder %s3504_s10, 1  ;;  %p67_p8 = scmp.eq.s32.totalorder %s3299_s11, 1 }
   0xd   : > { %p3331_p10 = scmp.lt.s32.totalorder %s3465_s9, 2  ;;  %s87_s20 = sand.u32 1, %s3461_s8  }
   0xe   : > { %p3533_p11 = por %p61_p7, %p31_p0  ;;  %p3537_p12 = por %p67_p8, %p37_p3 }
   0xf   : > { %s3316_s21 = sshll.u32 %s3465_s9, 16  ;;  %s3302_s22 = sshll.u32 %s87_s20, 12 }
  0x10   : > { %s4683_s18 = scalar_select %p3533_p11, 1, 0 }
  0x11   : > { %s4684_s19 = scalar_select %p3537_p12, 1, 0 }
  0x12   : > { %s3546_s25 = scalar_lea.hbm %s4678_s0, %s3316_s21  ;;  %s91_s26 = scalar_lea.vmem [#allocation2], %s3302_s22 }
  0x13   : > { %s99_s27 = sshll.u32 %s91_s26, 4  ;;  %p3550_p13 = pnand %p3331_p10, %p3522_p5  ;;  %s3554_s27 = int_to_ptr.vmem [resolvable:$true] %s99_s27 }
  0x14   : > { %s3556_s29 = scalar_lea.sflag [#allocation3], %s87_s20  ;;  %s3369_s30 = scalar_lea.hbm %s3546_s25, 65536 }
  0x15   : > { %p3370_p0 = scmp.ne.s32.totalorder %s3546_s25, %s3369_s30  ;;  %p3371_p1 = pneg %p3550_p13 }
  0x16   : > { %s3374_s4 = scalar_lea.hbm %s4678_s0, 131072  ;;  %p3375_p4 = scmp.lt.u32.totalorder %s3546_s25, %s4678_s0 }
  0x17   : > { %p3372_p2 = pnand %p3371_p1, %p3370_p0  ;;  %p3376_p5 = scmp.lt.u32.totalorder %s3374_s4, %s3369_s30 }
  0x18   : > { %p3378_p8 = scmp.lt.u32.totalorder %s3369_s30, %s3546_s25 }
  0x19   : > { %p3373_p3 = pneg %p3372_p2  ;;  %p3377_p7 = por %p3376_p5, %p3375_p4 }
  0x1b   : > { %p3379_p10 = por %p3378_p8, %p3377_p7 }
  0x1d   : > { %p3380_p9 = pnand %p3379_p10, %p3373_p3 }
  0x1f   : > { %3383 = shalt.err (!%p3380_p9)
}
  0x20   : > { %s3384_s13 = scalar_lea.vmem %s3554_s27, 65536  ;;  %s3467_s14 = smov [#allocation2]  }
  0x21   : > { %p3385_p0 = scmp.ne.s32.totalorder %s3554_s27, %s3384_s13  ;;  %s3389_s16 = sshll.u32 %s3467_s14, 4  ;;  %s3390_s16 = int_to_ptr.vmem [resolvable:$false] %s3389_s16 }
  0x22   : > { %s3391_s20 = scalar_lea.vmem %s3390_s16, 131072  ;;  %p3392_p11 = scmp.lt.s32.totalorder %s3554_s27, %s3390_s16 }
  0x23   : > { %p3387_p2 = pnand %p3385_p0, %p3371_p1  ;;  %p3393_p4 = scmp.lt.s32.totalorder %s3391_s20, %s3384_s13 }
  0x25   : > { %p3388_p12 = pneg %p3387_p2  ;;  %p3394_p5 = por %p3393_p4, %p3392_p11 }
  0x27   : > { %p3395_p7 = pnand %p3394_p5, %p3388_p12 }
  0x29   : > { %3398 = shalt.err (!%p3395_p7)
}
  0x2a   : > { %s3468_s21 = smov 2048   ;;  %s3469_s22 = smov 128  }
  0x2b   : > { %3326 = dma.hbm_to_vmem [thread:$0]  (!%p3550_p13), %s3546_s25, 65536, %s3554_s27, %s3556_s29, %s3468_s21, %s3468_s21, %s3469_s22  }
  0x2c   : > { %p3306_p9 = scmp.ge.s32.totalorder %s3465_s9, 1  ;;  %p107_p1 = scmp.lt.s32.totalorder %s3465_s9, 3 }
  0x2e   : > { %p108_p3 = pnand %p3306_p9, %p107_p1 }
  0x2f   : > { %s3587_s23 = sand.u32 (!%p108_p3), 1, %s3457_s7  }
  0x30   : > { %111 = sbr.rel (%p108_p3) target bundleno = 677 (0x2a5), region = 24  ;;  %s3307_s24 = sshll.u32 (!%p108_p3), %s3587_s23, 12 }
  0x31   : > { %s114_s26 = scalar_lea.sflag (!%p108_p3), [#allocation3], %s3587_s23  ;;  %s3593_s30 = scalar_lea.vmem (!%p108_p3), [#allocation2], %s3307_s24 }
  0x37   : > { %3444 = dma.done.wait (%p3526_p6), %s114_s26, 65536  }
  0x38   : > { %3446 = vsyncadd (%p3526_p6), %s114_s26, 4294901760  ;;  %v138_v0 = vld [vmem:[%s3593_s30] sm:$0xff]  ;;  %v139_v1 = vld [vmem:[%s3593_s30 + $0x8] sm:$0xff]  ;;  %s3615_s17 = scalar_lea.vmem [#allocation5], %s3307_s24  ;;  %s3318_s25 = sshll.u32 %s3504_s10, 16 }
  0x39   : > { %v140_v2 = vld [vmem:[%s3593_s30 + $0x10] sm:$0xff]  ;;  %v650_v3 = vadd.f32 3.0, %v138_v0  ;;  %v651_v4 = vadd.f32 3.0, %v139_v1  ;;  %v141_v6 = vld [vmem:[%s3593_s30 + $0x18] sm:$0xff]  ;;  %v142_v7 = vld [vmem:[%s3593_s30 + $0x20] sm:$0xff]  ;;  %s3226_s27 = sshll.u32 %s3615_s17, 4  ;;  %s4630_s29 = scalar_lea.hbm %s4679_s1, %s3318_s25  ;;  %s4632_s27 = int_to_ptr.vmem [resolvable:$true] %s3226_s27 }
  0x3a   : > { %v652_v5 = vadd.f32 3.0, %v140_v2  ;;  %v143_v8 = vld [vmem:[%s3593_s30 + $0x28] sm:$0xff]  ;;  %v653_v9 = vadd.f32 3.0, %v141_v6  ;;  %v654_v10 = vadd.f32 3.0, %v142_v7  ;;  %v144_v12 = vld [vmem:[%s3593_s30 + $0x30] sm:$0xff]  ;;  %v145_v13 = vld [vmem:[%s3593_s30 + $0x38] sm:$0xff] }
  0x3b   : > { %v655_v11 = vadd.f32 3.0, %v143_v8  ;;  %v1162_v14 = vmax.f32 %v650_v3, 0.0  ;;  %v1163_v15 = vmax.f32 %v651_v4, 0.0  ;;  %v656_v17 = vadd.f32 3.0, %v144_v12  ;;  %v146_v22 = vld [vmem:[%s3593_s30 + $0x40] sm:$0xff]  ;;  %v147_v23 = vld [vmem:[%s3593_s30 + $0x48] sm:$0xff] }
  0x3c   : > { %v1164_v16 = vmax.f32 %v652_v5, 0.0  ;;  %v1165_v18 = vmax.f32 %v653_v9, 0.0  ;;  %v1166_v19 = vmax.f32 %v654_v10, 0.0  ;;  %v657_v21 = vadd.f32 3.0, %v145_v13  ;;  %v148_v28 = vld [vmem:[%s3593_s30 + $0x50] sm:$0xff]  ;;  %v149_v29 = vld [vmem:[%s3593_s30 + $0x58] sm:$0xff] }
  0x3d   : > { %v1167_v20 = vmax.f32 %v655_v11, 0.0  ;;  %v1674_v24 = vmin.f32 %v1162_v14, 6.0  ;;  %v1675_v25 = vmin.f32 %v1163_v15, 6.0  ;;  %v1168_v27 = vmax.f32 %v656_v17, 0.0  ;;  %v150_v34 = vld [vmem:[%s3593_s30 + $0x60] sm:$0xff]  ;;  %v151_v35 = vld [vmem:[%s3593_s30 + $0x68] sm:$0xff] }
  0x3e   : > { %v1676_v26 = vmin.f32 %v1164_v16, 6.0  ;;  %v1677_v30 = vmin.f32 %v1165_v18, 6.0  ;;  %v1678_v31 = vmin.f32 %v1166_v19, 6.0  ;;  %v1169_v33 = vmax.f32 %v657_v21, 0.0  ;;  %v152_v50 = vld [vmem:[%s3593_s30 + $0x70] sm:$0xff]  ;;  %v153_v51 = vld [vmem:[%s3593_s30 + $0x78] sm:$0xff] }
  0x3f   : > { %v1679_v32 = vmin.f32 %v1167_v20, 6.0  ;;  %v2187_v36 = vmul.f32 0.16666667, %v1674_v24  ;;  %v2188_v37 = vmul.f32 0.16666667, %v1675_v25  ;;  %v1680_v42 = vmin.f32 %v1168_v27, 6.0 }
  0x40   : > { %v2189_v38 = vmul.f32 0.16666667, %v1676_v26  ;;  %v2190_v39 = vmul.f32 0.16666667, %v1677_v30  ;;  %v2191_v40 = vmul.f32 0.16666667, %v1678_v31 }
  0x41   : > { %v2192_v41 = vmul.f32 0.16666667, %v1679_v32  ;;  %2699 = vst [vmem:[%s3615_s17] sm:$0xff] %v2187_v36  ;;  %2700 = vst [vmem:[%s3615_s17 + $0x8] sm:$0xff] %v2188_v37  ;;  %v1681_v43 = vmin.f32 %v1169_v33, 6.0  ;;  %v658_v44 = vadd.f32 3.0, %v146_v22  ;;  %v659_v45 = vadd.f32 3.0, %v147_v23 }
  0x42   : > { %2701 = vst [vmem:[%s3615_s17 + $0x10] sm:$0xff] %v2189_v38  ;;  %2702 = vst [vmem:[%s3615_s17 + $0x18] sm:$0xff] %v2190_v39  ;;  %v660_v46 = vadd.f32 3.0, %v148_v28  ;;  %v661_v47 = vadd.f32 3.0, %v149_v29  ;;  %v662_v48 = vadd.f32 3.0, %v150_v34  ;;  %v663_v49 = vadd.f32 3.0, %v151_v35 }
  0x43   : > { %2703 = vst [vmem:[%s3615_s17 + $0x20] sm:$0xff] %v2191_v40  ;;  %2704 = vst [vmem:[%s3615_s17 + $0x28] sm:$0xff] %v2192_v41  ;;  %v2193_v52 = vmul.f32 0.16666667, %v1680_v42  ;;  %v2194_v53 = vmul.f32 0.16666667, %v1681_v43 }
  0x44   : > { %v1170_v54 = vmax.f32 %v658_v44, 0.0  ;;  %v1171_v55 = vmax.f32 %v659_v45, 0.0  ;;  %v1172_v56 = vmax.f32 %v660_v46, 0.0  ;;  %v1173_v57 = vmax.f32 %v661_v47, 0.0  ;;  %v154_v60 = vld [vmem:[%s3593_s30 + $0x80] sm:$0xff]  ;;  %v155_v1 = vld [vmem:[%s3593_s30 + $0x88] sm:$0xff] }
  0x45   : > { %v1174_v58 = vmax.f32 %v662_v48, 0.0  ;;  %v1175_v59 = vmax.f32 %v663_v49, 0.0  ;;  %2705 = vst [vmem:[%s3615_s17 + $0x30] sm:$0xff] %v2193_v52  ;;  %2706 = vst [vmem:[%s3615_s17 + $0x38] sm:$0xff] %v2194_v53  ;;  %v664_v63 = vadd.f32 3.0, %v152_v50  ;;  %v665_v0 = vadd.f32 3.0, %v153_v51 }
  0x46   : > { %v1682_v61 = vmin.f32 %v1170_v54, 6.0  ;;  %v1683_v62 = vmin.f32 %v1171_v55, 6.0  ;;  %v156_v2 = vld [vmem:[%s3593_s30 + $0x90] sm:$0xff]  ;;  %v157_v3 = vld [vmem:[%s3593_s30 + $0x98] sm:$0xff]  ;;  %v1684_v4 = vmin.f32 %v1172_v56, 6.0  ;;  %v1685_v5 = vmin.f32 %v1173_v57, 6.0 }
  0x47   : > { %v1686_v6 = vmin.f32 %v1174_v58, 6.0  ;;  %v1687_v7 = vmin.f32 %v1175_v59, 6.0  ;;  %v158_v8 = vld [vmem:[%s3593_s30 + $0xa0] sm:$0xff]  ;;  %v159_v9 = vld [vmem:[%s3593_s30 + $0xa8] sm:$0xff]  ;;  %v1176_v12 = vmax.f32 %v664_v63, 0.0  ;;  %v1177_v13 = vmax.f32 %v665_v0, 0.0 }
  0x48   : > { %v2195_v10 = vmul.f32 0.16666667, %v1682_v61  ;;  %v2196_v11 = vmul.f32 0.16666667, %v1683_v62  ;;  %v2197_v14 = vmul.f32 0.16666667, %v1684_v4 }
  0x49   : > { %v2198_v15 = vmul.f32 0.16666667, %v1685_v5  ;;  %v2199_v16 = vmul.f32 0.16666667, %v1686_v6  ;;  %v2200_v17 = vmul.f32 0.16666667, %v1687_v7 }
  0x4a   : > { %2707 = vst [vmem:[%s3615_s17 + $0x40] sm:$0xff] %v2195_v10  ;;  %2708 = vst [vmem:[%s3615_s17 + $0x48] sm:$0xff] %v2196_v11  ;;  %v1688_v18 = vmin.f32 %v1176_v12, 6.0  ;;  %v1689_v19 = vmin.f32 %v1177_v13, 6.0  ;;  %v666_v20 = vadd.f32 3.0, %v154_v60  ;;  %v667_v21 = vadd.f32 3.0, %v155_v1 }
  0x4b   : > { %2709 = vst [vmem:[%s3615_s17 + $0x50] sm:$0xff] %v2197_v14  ;;  %2710 = vst [vmem:[%s3615_s17 + $0x58] sm:$0xff] %v2198_v15  ;;  %v668_v22 = vadd.f32 3.0, %v156_v2  ;;  %v669_v23 = vadd.f32 3.0, %v157_v3  ;;  %v670_v24 = vadd.f32 3.0, %v158_v8  ;;  %v160_v25 = vld [vmem:[%s3593_s30 + $0xb0] sm:$0xff] }
  0x4c   : > { %2711 = vst [vmem:[%s3615_s17 + $0x60] sm:$0xff] %v2199_v16  ;;  %v161_v26 = vld [vmem:[%s3593_s30 + $0xb8] sm:$0xff]  ;;  %2712 = vst [vmem:[%s3615_s17 + $0x68] sm:$0xff] %v2200_v17  ;;  %v2201_v27 = vmul.f32 0.16666667, %v1688_v18  ;;  %v1178_v29 = vmax.f32 %v666_v20, 0.0 }
  0x4d   : > { %v2202_v28 = vmul.f32 0.16666667, %v1689_v19  ;;  %v671_v30 = vadd.f32 3.0, %v159_v9  ;;  %v1179_v31 = vmax.f32 %v667_v21, 0.0  ;;  %v1180_v32 = vmax.f32 %v668_v22, 0.0  ;;  %v162_v39 = vld [vmem:[%s3593_s30 + $0xc0] sm:$0xff] }
  0x4e   : > { %v1181_v33 = vmax.f32 %v669_v23, 0.0  ;;  %v1182_v34 = vmax.f32 %v670_v24, 0.0  ;;  %2713 = vst [vmem:[%s3615_s17 + $0x70] sm:$0xff] %v2201_v27  ;;  %v1690_v35 = vmin.f32 %v1178_v29, 6.0  ;;  %v672_v37 = vadd.f32 3.0, %v160_v25  ;;  %v163_v40 = vld [vmem:[%s3593_s30 + $0xc8] sm:$0xff] }
  0x4f   : > { %2714 = vst [vmem:[%s3615_s17 + $0x78] sm:$0xff] %v2202_v28  ;;  %v1183_v36 = vmax.f32 %v671_v30, 0.0  ;;  %v673_v38 = vadd.f32 3.0, %v161_v26  ;;  %v164_v41 = vld [vmem:[%s3593_s30 + $0xd0] sm:$0xff]  ;;  %v1691_v42 = vmin.f32 %v1179_v31, 6.0  ;;  %v1692_v43 = vmin.f32 %v1180_v32, 6.0 }
  0x50   : > { %v1693_v44 = vmin.f32 %v1181_v33, 6.0  ;;  %v1694_v45 = vmin.f32 %v1182_v34, 6.0  ;;  %v165_v46 = vld [vmem:[%s3593_s30 + $0xd8] sm:$0xff]  ;;  %v166_v47 = vld [vmem:[%s3593_s30 + $0xe0] sm:$0xff]  ;;  %v2203_v48 = vmul.f32 0.16666667, %v1690_v35 }
  0x51   : > { %v1695_v49 = vmin.f32 %v1183_v36, 6.0  ;;  %v1184_v50 = vmax.f32 %v672_v37, 0.0  ;;  %v1185_v51 = vmax.f32 %v673_v38, 0.0  ;;  %v167_v52 = vld [vmem:[%s3593_s30 + $0xe8] sm:$0xff]  ;;  %v2204_v53 = vmul.f32 0.16666667, %v1691_v42 }
  0x52   : > { %v2205_v54 = vmul.f32 0.16666667, %v1692_v43  ;;  %v2206_v55 = vmul.f32 0.16666667, %v1693_v44  ;;  %2715 = vst [vmem:[%s3615_s17 + $0x80] sm:$0xff] %v2203_v48  ;;  %v674_v60 = vadd.f32 3.0, %v162_v39 }
  0x53   : > { %v2207_v56 = vmul.f32 0.16666667, %v1694_v45  ;;  %v2208_v57 = vmul.f32 0.16666667, %v1695_v49  ;;  %v1696_v58 = vmin.f32 %v1184_v50, 6.0  ;;  %v1697_v59 = vmin.f32 %v1185_v51, 6.0 }
  0x54   : > { %2716 = vst [vmem:[%s3615_s17 + $0x88] sm:$0xff] %v2204_v53  ;;  %2717 = vst [vmem:[%s3615_s17 + $0x90] sm:$0xff] %v2205_v54  ;;  %v675_v61 = vadd.f32 3.0, %v163_v40  ;;  %v676_v62 = vadd.f32 3.0, %v164_v41  ;;  %v677_v63 = vadd.f32 3.0, %v165_v46  ;;  %v168_v0 = vld [vmem:[%s3593_s30 + $0xf0] sm:$0xff] }
  0x55   : > { %2718 = vst [vmem:[%s3615_s17 + $0x98] sm:$0xff] %v2206_v55  ;;  %v169_v1 = vld [vmem:[%s3593_s30 + $0xf8] sm:$0xff]  ;;  %2719 = vst [vmem:[%s3615_s17 + $0xa0] sm:$0xff] %v2207_v56  ;;  %v2209_v2 = vmul.f32 0.16666667, %v1696_v58  ;;  %v678_v4 = vadd.f32 3.0, %v166_v47 }
  0x56   : > { %2720 = vst [vmem:[%s3615_s17 + $0xa8] sm:$0xff] %v2208_v57  ;;  %v2210_v3 = vmul.f32 0.16666667, %v1697_v59  ;;  %v679_v5 = vadd.f32 3.0, %v167_v52  ;;  %v1186_v6 = vmax.f32 %v674_v60, 0.0  ;;  %v1187_v7 = vmax.f32 %v675_v61, 0.0 }
  0x57   : > { %v1188_v8 = vmax.f32 %v676_v62, 0.0  ;;  %v1189_v9 = vmax.f32 %v677_v63, 0.0  ;;  %2721 = vst [vmem:[%s3615_s17 + $0xb0] sm:$0xff] %v2209_v2  ;;  %v1190_v10 = vmax.f32 %v678_v4, 0.0  ;;  %v680_v12 = vadd.f32 3.0, %v168_v0  ;;  %v170_v14 = vld [vmem:[%s3593_s30 + $0x100] sm:$0xff] }
  0x58   : > { %2722 = vst [vmem:[%s3615_s17 + $0xb8] sm:$0xff] %v2210_v3  ;;  %v1191_v11 = vmax.f32 %v679_v5, 0.0  ;;  %v681_v13 = vadd.f32 3.0, %v169_v1  ;;  %v171_v15 = vld [vmem:[%s3593_s30 + $0x108] sm:$0xff]  ;;  %v1698_v16 = vmin.f32 %v1186_v6, 6.0  ;;  %v1699_v17 = vmin.f32 %v1187_v7, 6.0 }
  0x59   : > { %v1700_v18 = vmin.f32 %v1188_v8, 6.0  ;;  %v1701_v19 = vmin.f32 %v1189_v9, 6.0  ;;  %v172_v20 = vld [vmem:[%s3593_s30 + $0x110] sm:$0xff]  ;;  %v173_v21 = vld [vmem:[%s3593_s30 + $0x118] sm:$0xff]  ;;  %v1702_v22 = vmin.f32 %v1190_v10, 6.0  ;;  %v1192_v24 = vmax.f32 %v680_v12, 0.0 }
  0x5a   : > { %v1703_v23 = vmin.f32 %v1191_v11, 6.0  ;;  %v1193_v25 = vmax.f32 %v681_v13, 0.0  ;;  %v174_v26 = vld [vmem:[%s3593_s30 + $0x120] sm:$0xff]  ;;  %v175_v27 = vld [vmem:[%s3593_s30 + $0x128] sm:$0xff]  ;;  %v2211_v28 = vmul.f32 0.16666667, %v1698_v16 }
  0x5b   : > { %v2212_v29 = vmul.f32 0.16666667, %v1699_v17  ;;  %v2213_v30 = vmul.f32 0.16666667, %v1700_v18  ;;  %v2214_v31 = vmul.f32 0.16666667, %v1701_v19 }
  0x5c   : > { %v2215_v32 = vmul.f32 0.16666667, %v1702_v22  ;;  %v2216_v33 = vmul.f32 0.16666667, %v1703_v23  ;;  %2723 = vst [vmem:[%s3615_s17 + $0xc0] sm:$0xff] %v2211_v28  ;;  %v1704_v34 = vmin.f32 %v1192_v24, 6.0 }
  0x5d   : > { %2724 = vst [vmem:[%s3615_s17 + $0xc8] sm:$0xff] %v2212_v29  ;;  %2725 = vst [vmem:[%s3615_s17 + $0xd0] sm:$0xff] %v2213_v30  ;;  %v1705_v35 = vmin.f32 %v1193_v25, 6.0  ;;  %v682_v36 = vadd.f32 3.0, %v170_v14  ;;  %v683_v37 = vadd.f32 3.0, %v171_v15  ;;  %v684_v38 = vadd.f32 3.0, %v172_v20 }
  0x5e   : > { %2726 = vst [vmem:[%s3615_s17 + $0xd8] sm:$0xff] %v2214_v31  ;;  %2727 = vst [vmem:[%s3615_s17 + $0xe0] sm:$0xff] %v2215_v32  ;;  %v685_v39 = vadd.f32 3.0, %v173_v21  ;;  %v686_v40 = vadd.f32 3.0, %v174_v26  ;;  %v687_v41 = vadd.f32 3.0, %v175_v27  ;;  %v176_v42 = vld [vmem:[%s3593_s30 + $0x130] sm:$0xff] }
  0x5f   : > { %2728 = vst [vmem:[%s3615_s17 + $0xe8] sm:$0xff] %v2216_v33  ;;  %v177_v43 = vld [vmem:[%s3593_s30 + $0x138] sm:$0xff]  ;;  %v2217_v44 = vmul.f32 0.16666667, %v1704_v34  ;;  %v2218_v45 = vmul.f32 0.16666667, %v1705_v35 }
  0x60   : > { %v1194_v46 = vmax.f32 %v682_v36, 0.0  ;;  %v1195_v47 = vmax.f32 %v683_v37, 0.0  ;;  %v1196_v48 = vmax.f32 %v684_v38, 0.0  ;;  %v1197_v49 = vmax.f32 %v685_v39, 0.0  ;;  %v178_v52 = vld [vmem:[%s3593_s30 + $0x140] sm:$0xff]  ;;  %v179_v57 = vld [vmem:[%s3593_s30 + $0x148] sm:$0xff] }
  0x61   : > { %v1198_v50 = vmax.f32 %v686_v40, 0.0  ;;  %v1199_v51 = vmax.f32 %v687_v41, 0.0  ;;  %2729 = vst [vmem:[%s3615_s17 + $0xf0] sm:$0xff] %v2217_v44  ;;  %2730 = vst [vmem:[%s3615_s17 + $0xf8] sm:$0xff] %v2218_v45  ;;  %v688_v55 = vadd.f32 3.0, %v176_v42  ;;  %v689_v56 = vadd.f32 3.0, %v177_v43 }
  0x62   : > { %v1706_v53 = vmin.f32 %v1194_v46, 6.0  ;;  %v1707_v54 = vmin.f32 %v1195_v47, 6.0  ;;  %v180_v58 = vld [vmem:[%s3593_s30 + $0x150] sm:$0xff]  ;;  %v181_v59 = vld [vmem:[%s3593_s30 + $0x158] sm:$0xff]  ;;  %v1708_v60 = vmin.f32 %v1196_v48, 6.0  ;;  %v1709_v61 = vmin.f32 %v1197_v49, 6.0 }
  0x63   : > { %v1710_v62 = vmin.f32 %v1198_v50, 6.0  ;;  %v1711_v63 = vmin.f32 %v1199_v51, 6.0  ;;  %v182_v0 = vld [vmem:[%s3593_s30 + $0x160] sm:$0xff]  ;;  %v183_v1 = vld [vmem:[%s3593_s30 + $0x168] sm:$0xff]  ;;  %v1200_v4 = vmax.f32 %v688_v55, 0.0  ;;  %v1201_v5 = vmax.f32 %v689_v56, 0.0 }
  0x64   : > { %v2219_v2 = vmul.f32 0.16666667, %v1706_v53  ;;  %v2220_v3 = vmul.f32 0.16666667, %v1707_v54  ;;  %v2221_v6 = vmul.f32 0.16666667, %v1708_v60 }
  0x65   : > { %v2222_v7 = vmul.f32 0.16666667, %v1709_v61  ;;  %v2223_v8 = vmul.f32 0.16666667, %v1710_v62  ;;  %v2224_v9 = vmul.f32 0.16666667, %v1711_v63 }
  0x66   : > { %2731 = vst [vmem:[%s3615_s17 + $0x100] sm:$0xff] %v2219_v2  ;;  %2732 = vst [vmem:[%s3615_s17 + $0x108] sm:$0xff] %v2220_v3  ;;  %v1712_v10 = vmin.f32 %v1200_v4, 6.0  ;;  %v1713_v11 = vmin.f32 %v1201_v5, 6.0  ;;  %v690_v12 = vadd.f32 3.0, %v178_v52  ;;  %v691_v13 = vadd.f32 3.0, %v179_v57 }
  0x67   : > { %2733 = vst [vmem:[%s3615_s17 + $0x110] sm:$0xff] %v2221_v6  ;;  %2734 = vst [vmem:[%s3615_s17 + $0x118] sm:$0xff] %v2222_v7  ;;  %v692_v14 = vadd.f32 3.0, %v180_v58  ;;  %v693_v15 = vadd.f32 3.0, %v181_v59  ;;  %v694_v16 = vadd.f32 3.0, %v182_v0  ;;  %v184_v17 = vld [vmem:[%s3593_s30 + $0x170] sm:$0xff] }
  0x68   : > { %2735 = vst [vmem:[%s3615_s17 + $0x120] sm:$0xff] %v2223_v8  ;;  %v185_v18 = vld [vmem:[%s3593_s30 + $0x178] sm:$0xff]  ;;  %2736 = vst [vmem:[%s3615_s17 + $0x128] sm:$0xff] %v2224_v9  ;;  %v2225_v19 = vmul.f32 0.16666667, %v1712_v10  ;;  %v1202_v21 = vmax.f32 %v690_v12, 0.0 }
  0x69   : > { %v2226_v20 = vmul.f32 0.16666667, %v1713_v11  ;;  %v695_v22 = vadd.f32 3.0, %v183_v1  ;;  %v1203_v23 = vmax.f32 %v691_v13, 0.0  ;;  %v1204_v24 = vmax.f32 %v692_v14, 0.0  ;;  %v186_v31 = vld [vmem:[%s3593_s30 + $0x180] sm:$0xff] }
  0x6a   : > { %v1205_v25 = vmax.f32 %v693_v15, 0.0  ;;  %v1206_v26 = vmax.f32 %v694_v16, 0.0  ;;  %2737 = vst [vmem:[%s3615_s17 + $0x130] sm:$0xff] %v2225_v19  ;;  %v1714_v27 = vmin.f32 %v1202_v21, 6.0  ;;  %v696_v29 = vadd.f32 3.0, %v184_v17  ;;  %v187_v32 = vld [vmem:[%s3593_s30 + $0x188] sm:$0xff] }
  0x6b   : > { %2738 = vst [vmem:[%s3615_s17 + $0x138] sm:$0xff] %v2226_v20  ;;  %v1207_v28 = vmax.f32 %v695_v22, 0.0  ;;  %v697_v30 = vadd.f32 3.0, %v185_v18  ;;  %v188_v33 = vld [vmem:[%s3593_s30 + $0x190] sm:$0xff]  ;;  %v1715_v34 = vmin.f32 %v1203_v23, 6.0  ;;  %v1716_v35 = vmin.f32 %v1204_v24, 6.0 }
  0x6c   : > { %v1717_v36 = vmin.f32 %v1205_v25, 6.0  ;;  %v1718_v37 = vmin.f32 %v1206_v26, 6.0  ;;  %v189_v38 = vld [vmem:[%s3593_s30 + $0x198] sm:$0xff]  ;;  %v190_v39 = vld [vmem:[%s3593_s30 + $0x1a0] sm:$0xff]  ;;  %v2227_v40 = vmul.f32 0.16666667, %v1714_v27 }
  0x6d   : > { %v1719_v41 = vmin.f32 %v1207_v28, 6.0  ;;  %v1208_v42 = vmax.f32 %v696_v29, 0.0  ;;  %v1209_v43 = vmax.f32 %v697_v30, 0.0  ;;  %v191_v44 = vld [vmem:[%s3593_s30 + $0x1a8] sm:$0xff]  ;;  %v2228_v45 = vmul.f32 0.16666667, %v1715_v34 }
  0x6e   : > { %v2229_v46 = vmul.f32 0.16666667, %v1716_v35  ;;  %v2230_v47 = vmul.f32 0.16666667, %v1717_v36  ;;  %2739 = vst [vmem:[%s3615_s17 + $0x140] sm:$0xff] %v2227_v40  ;;  %v698_v52 = vadd.f32 3.0, %v186_v31 }
  0x6f   : > { %v2231_v48 = vmul.f32 0.16666667, %v1718_v37  ;;  %v2232_v49 = vmul.f32 0.16666667, %v1719_v41  ;;  %v1720_v50 = vmin.f32 %v1208_v42, 6.0  ;;  %v1721_v51 = vmin.f32 %v1209_v43, 6.0 }
  0x70   : > { %2740 = vst [vmem:[%s3615_s17 + $0x148] sm:$0xff] %v2228_v45  ;;  %2741 = vst [vmem:[%s3615_s17 + $0x150] sm:$0xff] %v2229_v46  ;;  %v699_v53 = vadd.f32 3.0, %v187_v32  ;;  %v700_v54 = vadd.f32 3.0, %v188_v33  ;;  %v701_v55 = vadd.f32 3.0, %v189_v38  ;;  %v192_v56 = vld [vmem:[%s3593_s30 + $0x1b0] sm:$0xff] }
  0x71   : > { %2742 = vst [vmem:[%s3615_s17 + $0x158] sm:$0xff] %v2230_v47  ;;  %v193_v57 = vld [vmem:[%s3593_s30 + $0x1b8] sm:$0xff]  ;;  %2743 = vst [vmem:[%s3615_s17 + $0x160] sm:$0xff] %v2231_v48  ;;  %v2233_v58 = vmul.f32 0.16666667, %v1720_v50  ;;  %v702_v60 = vadd.f32 3.0, %v190_v39 }
  0x72   : > { %2744 = vst [vmem:[%s3615_s17 + $0x168] sm:$0xff] %v2232_v49  ;;  %v2234_v59 = vmul.f32 0.16666667, %v1721_v51  ;;  %v703_v61 = vadd.f32 3.0, %v191_v44  ;;  %v1210_v62 = vmax.f32 %v698_v52, 0.0  ;;  %v1211_v63 = vmax.f32 %v699_v53, 0.0 }
  0x73   : > { %v1212_v0 = vmax.f32 %v700_v54, 0.0  ;;  %v1213_v1 = vmax.f32 %v701_v55, 0.0  ;;  %2745 = vst [vmem:[%s3615_s17 + $0x170] sm:$0xff] %v2233_v58  ;;  %v1214_v2 = vmax.f32 %v702_v60, 0.0  ;;  %v704_v4 = vadd.f32 3.0, %v192_v56  ;;  %v194_v6 = vld [vmem:[%s3593_s30 + $0x1c0] sm:$0xff] }
  0x74   : > { %2746 = vst [vmem:[%s3615_s17 + $0x178] sm:$0xff] %v2234_v59  ;;  %v1215_v3 = vmax.f32 %v703_v61, 0.0  ;;  %v705_v5 = vadd.f32 3.0, %v193_v57  ;;  %v195_v7 = vld [vmem:[%s3593_s30 + $0x1c8] sm:$0xff]  ;;  %v1722_v8 = vmin.f32 %v1210_v62, 6.0  ;;  %v1723_v9 = vmin.f32 %v1211_v63, 6.0 }
  0x75   : > { %v1724_v10 = vmin.f32 %v1212_v0, 6.0  ;;  %v1725_v11 = vmin.f32 %v1213_v1, 6.0  ;;  %v196_v12 = vld [vmem:[%s3593_s30 + $0x1d0] sm:$0xff]  ;;  %v197_v13 = vld [vmem:[%s3593_s30 + $0x1d8] sm:$0xff]  ;;  %v1726_v14 = vmin.f32 %v1214_v2, 6.0  ;;  %v1216_v16 = vmax.f32 %v704_v4, 0.0 }
  0x76   : > { %v1727_v15 = vmin.f32 %v1215_v3, 6.0  ;;  %v1217_v17 = vmax.f32 %v705_v5, 0.0  ;;  %v198_v18 = vld [vmem:[%s3593_s30 + $0x1e0] sm:$0xff]  ;;  %v199_v19 = vld [vmem:[%s3593_s30 + $0x1e8] sm:$0xff]  ;;  %v2235_v20 = vmul.f32 0.16666667, %v1722_v8 }
  0x77   : > { %v2236_v21 = vmul.f32 0.16666667, %v1723_v9  ;;  %v2237_v22 = vmul.f32 0.16666667, %v1724_v10  ;;  %v2238_v23 = vmul.f32 0.16666667, %v1725_v11 }
  0x78   : > { %v2239_v24 = vmul.f32 0.16666667, %v1726_v14  ;;  %v2240_v25 = vmul.f32 0.16666667, %v1727_v15  ;;  %2747 = vst [vmem:[%s3615_s17 + $0x180] sm:$0xff] %v2235_v20  ;;  %v1728_v26 = vmin.f32 %v1216_v16, 6.0 }
  0x79   : > { %2748 = vst [vmem:[%s3615_s17 + $0x188] sm:$0xff] %v2236_v21  ;;  %2749 = vst [vmem:[%s3615_s17 + $0x190] sm:$0xff] %v2237_v22  ;;  %v1729_v27 = vmin.f32 %v1217_v17, 6.0  ;;  %v706_v28 = vadd.f32 3.0, %v194_v6  ;;  %v707_v29 = vadd.f32 3.0, %v195_v7  ;;  %v708_v30 = vadd.f32 3.0, %v196_v12 }
  0x7a   : > { %2750 = vst [vmem:[%s3615_s17 + $0x198] sm:$0xff] %v2238_v23  ;;  %2751 = vst [vmem:[%s3615_s17 + $0x1a0] sm:$0xff] %v2239_v24  ;;  %v709_v31 = vadd.f32 3.0, %v197_v13  ;;  %v710_v32 = vadd.f32 3.0, %v198_v18  ;;  %v711_v33 = vadd.f32 3.0, %v199_v19  ;;  %v200_v34 = vld [vmem:[%s3593_s30 + $0x1f0] sm:$0xff] }
  0x7b   : > { %2752 = vst [vmem:[%s3615_s17 + $0x1a8] sm:$0xff] %v2240_v25  ;;  %v201_v35 = vld [vmem:[%s3593_s30 + $0x1f8] sm:$0xff]  ;;  %v2241_v36 = vmul.f32 0.16666667, %v1728_v26  ;;  %v2242_v37 = vmul.f32 0.16666667, %v1729_v27 }
  0x7c   : > { %v1218_v38 = vmax.f32 %v706_v28, 0.0  ;;  %v1219_v39 = vmax.f32 %v707_v29, 0.0  ;;  %v1220_v40 = vmax.f32 %v708_v30, 0.0  ;;  %v1221_v41 = vmax.f32 %v709_v31, 0.0  ;;  %v202_v44 = vld [vmem:[%s3593_s30 + $0x200] sm:$0xff]  ;;  %v203_v49 = vld [vmem:[%s3593_s30 + $0x208] sm:$0xff] }
  0x7d   : > { %v1222_v42 = vmax.f32 %v710_v32, 0.0  ;;  %v1223_v43 = vmax.f32 %v711_v33, 0.0  ;;  %2753 = vst [vmem:[%s3615_s17 + $0x1b0] sm:$0xff] %v2241_v36  ;;  %2754 = vst [vmem:[%s3615_s17 + $0x1b8] sm:$0xff] %v2242_v37  ;;  %v712_v47 = vadd.f32 3.0, %v200_v34  ;;  %v713_v48 = vadd.f32 3.0, %v201_v35 }
  0x7e   : > { %v1730_v45 = vmin.f32 %v1218_v38, 6.0  ;;  %v1731_v46 = vmin.f32 %v1219_v39, 6.0  ;;  %v204_v50 = vld [vmem:[%s3593_s30 + $0x210] sm:$0xff]  ;;  %v205_v51 = vld [vmem:[%s3593_s30 + $0x218] sm:$0xff]  ;;  %v1732_v52 = vmin.f32 %v1220_v40, 6.0  ;;  %v1733_v53 = vmin.f32 %v1221_v41, 6.0 }
  0x7f   : > { %v1734_v54 = vmin.f32 %v1222_v42, 6.0  ;;  %v1735_v55 = vmin.f32 %v1223_v43, 6.0  ;;  %v206_v56 = vld [vmem:[%s3593_s30 + $0x220] sm:$0xff]  ;;  %v207_v57 = vld [vmem:[%s3593_s30 + $0x228] sm:$0xff]  ;;  %v1224_v60 = vmax.f32 %v712_v47, 0.0  ;;  %v1225_v61 = vmax.f32 %v713_v48, 0.0 }
  0x80   : > { %v2243_v58 = vmul.f32 0.16666667, %v1730_v45  ;;  %v2244_v59 = vmul.f32 0.16666667, %v1731_v46  ;;  %v2245_v62 = vmul.f32 0.16666667, %v1732_v52 }
  0x81   : > { %v2246_v63 = vmul.f32 0.16666667, %v1733_v53  ;;  %v2247_v0 = vmul.f32 0.16666667, %v1734_v54  ;;  %v2248_v1 = vmul.f32 0.16666667, %v1735_v55 }
  0x82   : > { %2755 = vst [vmem:[%s3615_s17 + $0x1c0] sm:$0xff] %v2243_v58  ;;  %2756 = vst [vmem:[%s3615_s17 + $0x1c8] sm:$0xff] %v2244_v59  ;;  %v1736_v2 = vmin.f32 %v1224_v60, 6.0  ;;  %v1737_v3 = vmin.f32 %v1225_v61, 6.0  ;;  %v714_v4 = vadd.f32 3.0, %v202_v44  ;;  %v715_v5 = vadd.f32 3.0, %v203_v49 }
  0x83   : > { %2757 = vst [vmem:[%s3615_s17 + $0x1d0] sm:$0xff] %v2245_v62  ;;  %2758 = vst [vmem:[%s3615_s17 + $0x1d8] sm:$0xff] %v2246_v63  ;;  %v716_v6 = vadd.f32 3.0, %v204_v50  ;;  %v717_v7 = vadd.f32 3.0, %v205_v51  ;;  %v718_v8 = vadd.f32 3.0, %v206_v56  ;;  %v208_v9 = vld [vmem:[%s3593_s30 + $0x230] sm:$0xff] }
  0x84   : > { %2759 = vst [vmem:[%s3615_s17 + $0x1e0] sm:$0xff] %v2247_v0  ;;  %v209_v10 = vld [vmem:[%s3593_s30 + $0x238] sm:$0xff]  ;;  %2760 = vst [vmem:[%s3615_s17 + $0x1e8] sm:$0xff] %v2248_v1  ;;  %v2249_v11 = vmul.f32 0.16666667, %v1736_v2  ;;  %v1226_v13 = vmax.f32 %v714_v4, 0.0 }
  0x85   : > { %v2250_v12 = vmul.f32 0.16666667, %v1737_v3  ;;  %v719_v14 = vadd.f32 3.0, %v207_v57  ;;  %v1227_v15 = vmax.f32 %v715_v5, 0.0  ;;  %v1228_v16 = vmax.f32 %v716_v6, 0.0  ;;  %v210_v23 = vld [vmem:[%s3593_s30 + $0x240] sm:$0xff] }
  0x86   : > { %v1229_v17 = vmax.f32 %v717_v7, 0.0  ;;  %v1230_v18 = vmax.f32 %v718_v8, 0.0  ;;  %2761 = vst [vmem:[%s3615_s17 + $0x1f0] sm:$0xff] %v2249_v11  ;;  %v1738_v19 = vmin.f32 %v1226_v13, 6.0  ;;  %v720_v21 = vadd.f32 3.0, %v208_v9  ;;  %v211_v24 = vld [vmem:[%s3593_s30 + $0x248] sm:$0xff] }
  0x87   : > { %2762 = vst [vmem:[%s3615_s17 + $0x1f8] sm:$0xff] %v2250_v12  ;;  %v1231_v20 = vmax.f32 %v719_v14, 0.0  ;;  %v721_v22 = vadd.f32 3.0, %v209_v10  ;;  %v212_v25 = vld [vmem:[%s3593_s30 + $0x250] sm:$0xff]  ;;  %v1739_v26 = vmin.f32 %v1227_v15, 6.0  ;;  %v1740_v27 = vmin.f32 %v1228_v16, 6.0 }
  0x88   : > { %v1741_v28 = vmin.f32 %v1229_v17, 6.0  ;;  %v1742_v29 = vmin.f32 %v1230_v18, 6.0  ;;  %v213_v30 = vld [vmem:[%s3593_s30 + $0x258] sm:$0xff]  ;;  %v214_v31 = vld [vmem:[%s3593_s30 + $0x260] sm:$0xff]  ;;  %v2251_v32 = vmul.f32 0.16666667, %v1738_v19 }
  0x89   : > { %v1743_v33 = vmin.f32 %v1231_v20, 6.0  ;;  %v1232_v34 = vmax.f32 %v720_v21, 0.0  ;;  %v1233_v35 = vmax.f32 %v721_v22, 0.0  ;;  %v215_v36 = vld [vmem:[%s3593_s30 + $0x268] sm:$0xff]  ;;  %v2252_v37 = vmul.f32 0.16666667, %v1739_v26 }
  0x8a   : > { %v2253_v38 = vmul.f32 0.16666667, %v1740_v27  ;;  %v2254_v39 = vmul.f32 0.16666667, %v1741_v28  ;;  %2763 = vst [vmem:[%s3615_s17 + $0x200] sm:$0xff] %v2251_v32  ;;  %v722_v44 = vadd.f32 3.0, %v210_v23 }
  0x8b   : > { %v2255_v40 = vmul.f32 0.16666667, %v1742_v29  ;;  %v2256_v41 = vmul.f32 0.16666667, %v1743_v33  ;;  %v1744_v42 = vmin.f32 %v1232_v34, 6.0  ;;  %v1745_v43 = vmin.f32 %v1233_v35, 6.0 }
  0x8c   : > { %2764 = vst [vmem:[%s3615_s17 + $0x208] sm:$0xff] %v2252_v37  ;;  %2765 = vst [vmem:[%s3615_s17 + $0x210] sm:$0xff] %v2253_v38  ;;  %v723_v45 = vadd.f32 3.0, %v211_v24  ;;  %v724_v46 = vadd.f32 3.0, %v212_v25  ;;  %v725_v47 = vadd.f32 3.0, %v213_v30  ;;  %v216_v48 = vld [vmem:[%s3593_s30 + $0x270] sm:$0xff] }
  0x8d   : > { %2766 = vst [vmem:[%s3615_s17 + $0x218] sm:$0xff] %v2254_v39  ;;  %v217_v49 = vld [vmem:[%s3593_s30 + $0x278] sm:$0xff]  ;;  %2767 = vst [vmem:[%s3615_s17 + $0x220] sm:$0xff] %v2255_v40  ;;  %v2257_v50 = vmul.f32 0.16666667, %v1744_v42  ;;  %v726_v52 = vadd.f32 3.0, %v214_v31 }
  0x8e   : > { %2768 = vst [vmem:[%s3615_s17 + $0x228] sm:$0xff] %v2256_v41  ;;  %v2258_v51 = vmul.f32 0.16666667, %v1745_v43  ;;  %v727_v53 = vadd.f32 3.0, %v215_v36  ;;  %v1234_v54 = vmax.f32 %v722_v44, 0.0  ;;  %v1235_v55 = vmax.f32 %v723_v45, 0.0 }
  0x8f   : > { %v1236_v56 = vmax.f32 %v724_v46, 0.0  ;;  %v1237_v57 = vmax.f32 %v725_v47, 0.0  ;;  %2769 = vst [vmem:[%s3615_s17 + $0x230] sm:$0xff] %v2257_v50  ;;  %v1238_v58 = vmax.f32 %v726_v52, 0.0  ;;  %v728_v60 = vadd.f32 3.0, %v216_v48  ;;  %v218_v62 = vld [vmem:[%s3593_s30 + $0x280] sm:$0xff] }
  0x90   : > { %2770 = vst [vmem:[%s3615_s17 + $0x238] sm:$0xff] %v2258_v51  ;;  %v1239_v59 = vmax.f32 %v727_v53, 0.0  ;;  %v729_v61 = vadd.f32 3.0, %v217_v49  ;;  %v219_v63 = vld [vmem:[%s3593_s30 + $0x288] sm:$0xff]  ;;  %v1746_v0 = vmin.f32 %v1234_v54, 6.0  ;;  %v1747_v1 = vmin.f32 %v1235_v55, 6.0 }
  0x91   : > { %v1748_v2 = vmin.f32 %v1236_v56, 6.0  ;;  %v1749_v3 = vmin.f32 %v1237_v57, 6.0  ;;  %v220_v4 = vld [vmem:[%s3593_s30 + $0x290] sm:$0xff]  ;;  %v221_v5 = vld [vmem:[%s3593_s30 + $0x298] sm:$0xff]  ;;  %v1750_v6 = vmin.f32 %v1238_v58, 6.0  ;;  %v1240_v8 = vmax.f32 %v728_v60, 0.0 }
  0x92   : > { %v1751_v7 = vmin.f32 %v1239_v59, 6.0  ;;  %v1241_v9 = vmax.f32 %v729_v61, 0.0  ;;  %v222_v10 = vld [vmem:[%s3593_s30 + $0x2a0] sm:$0xff]  ;;  %v223_v11 = vld [vmem:[%s3593_s30 + $0x2a8] sm:$0xff]  ;;  %v2259_v12 = vmul.f32 0.16666667, %v1746_v0 }
  0x93   : > { %v2260_v13 = vmul.f32 0.16666667, %v1747_v1  ;;  %v2261_v14 = vmul.f32 0.16666667, %v1748_v2  ;;  %v2262_v15 = vmul.f32 0.16666667, %v1749_v3 }
  0x94   : > { %v2263_v16 = vmul.f32 0.16666667, %v1750_v6  ;;  %v2264_v17 = vmul.f32 0.16666667, %v1751_v7  ;;  %2771 = vst [vmem:[%s3615_s17 + $0x240] sm:$0xff] %v2259_v12  ;;  %v1752_v18 = vmin.f32 %v1240_v8, 6.0 }
  0x95   : > { %2772 = vst [vmem:[%s3615_s17 + $0x248] sm:$0xff] %v2260_v13  ;;  %2773 = vst [vmem:[%s3615_s17 + $0x250] sm:$0xff] %v2261_v14  ;;  %v1753_v19 = vmin.f32 %v1241_v9, 6.0  ;;  %v730_v20 = vadd.f32 3.0, %v218_v62  ;;  %v731_v21 = vadd.f32 3.0, %v219_v63  ;;  %v732_v22 = vadd.f32 3.0, %v220_v4 }
  0x96   : > { %2774 = vst [vmem:[%s3615_s17 + $0x258] sm:$0xff] %v2262_v15  ;;  %2775 = vst [vmem:[%s3615_s17 + $0x260] sm:$0xff] %v2263_v16  ;;  %v733_v23 = vadd.f32 3.0, %v221_v5  ;;  %v734_v24 = vadd.f32 3.0, %v222_v10  ;;  %v735_v25 = vadd.f32 3.0, %v223_v11  ;;  %v224_v26 = vld [vmem:[%s3593_s30 + $0x2b0] sm:$0xff] }
  0x97   : > { %2776 = vst [vmem:[%s3615_s17 + $0x268] sm:$0xff] %v2264_v17  ;;  %v225_v27 = vld [vmem:[%s3593_s30 + $0x2b8] sm:$0xff]  ;;  %v2265_v28 = vmul.f32 0.16666667, %v1752_v18  ;;  %v2266_v29 = vmul.f32 0.16666667, %v1753_v19 }
  0x98   : > { %v1242_v30 = vmax.f32 %v730_v20, 0.0  ;;  %v1243_v31 = vmax.f32 %v731_v21, 0.0  ;;  %v1244_v32 = vmax.f32 %v732_v22, 0.0  ;;  %v1245_v33 = vmax.f32 %v733_v23, 0.0  ;;  %v226_v36 = vld [vmem:[%s3593_s30 + $0x2c0] sm:$0xff]  ;;  %v227_v41 = vld [vmem:[%s3593_s30 + $0x2c8] sm:$0xff] }
  0x99   : > { %v1246_v34 = vmax.f32 %v734_v24, 0.0  ;;  %v1247_v35 = vmax.f32 %v735_v25, 0.0  ;;  %2777 = vst [vmem:[%s3615_s17 + $0x270] sm:$0xff] %v2265_v28  ;;  %2778 = vst [vmem:[%s3615_s17 + $0x278] sm:$0xff] %v2266_v29  ;;  %v736_v39 = vadd.f32 3.0, %v224_v26  ;;  %v737_v40 = vadd.f32 3.0, %v225_v27 }
  0x9a   : > { %v1754_v37 = vmin.f32 %v1242_v30, 6.0  ;;  %v1755_v38 = vmin.f32 %v1243_v31, 6.0  ;;  %v228_v42 = vld [vmem:[%s3593_s30 + $0x2d0] sm:$0xff]  ;;  %v229_v43 = vld [vmem:[%s3593_s30 + $0x2d8] sm:$0xff]  ;;  %v1756_v44 = vmin.f32 %v1244_v32, 6.0  ;;  %v1757_v45 = vmin.f32 %v1245_v33, 6.0 }
  0x9b   : > { %v1758_v46 = vmin.f32 %v1246_v34, 6.0  ;;  %v1759_v47 = vmin.f32 %v1247_v35, 6.0  ;;  %v230_v48 = vld [vmem:[%s3593_s30 + $0x2e0] sm:$0xff]  ;;  %v231_v49 = vld [vmem:[%s3593_s30 + $0x2e8] sm:$0xff]  ;;  %v1248_v52 = vmax.f32 %v736_v39, 0.0  ;;  %v1249_v53 = vmax.f32 %v737_v40, 0.0 }
  0x9c   : > { %v2267_v50 = vmul.f32 0.16666667, %v1754_v37  ;;  %v2268_v51 = vmul.f32 0.16666667, %v1755_v38  ;;  %v2269_v54 = vmul.f32 0.16666667, %v1756_v44 }
  0x9d   : > { %v2270_v55 = vmul.f32 0.16666667, %v1757_v45  ;;  %v2271_v56 = vmul.f32 0.16666667, %v1758_v46  ;;  %v2272_v57 = vmul.f32 0.16666667, %v1759_v47 }
  0x9e   : > { %2779 = vst [vmem:[%s3615_s17 + $0x280] sm:$0xff] %v2267_v50  ;;  %2780 = vst [vmem:[%s3615_s17 + $0x288] sm:$0xff] %v2268_v51  ;;  %v1760_v58 = vmin.f32 %v1248_v52, 6.0  ;;  %v1761_v59 = vmin.f32 %v1249_v53, 6.0  ;;  %v738_v60 = vadd.f32 3.0, %v226_v36  ;;  %v739_v61 = vadd.f32 3.0, %v227_v41 }
  0x9f   : > { %2781 = vst [vmem:[%s3615_s17 + $0x290] sm:$0xff] %v2269_v54  ;;  %2782 = vst [vmem:[%s3615_s17 + $0x298] sm:$0xff] %v2270_v55  ;;  %v740_v62 = vadd.f32 3.0, %v228_v42  ;;  %v741_v63 = vadd.f32 3.0, %v229_v43  ;;  %v742_v0 = vadd.f32 3.0, %v230_v48  ;;  %v232_v1 = vld [vmem:[%s3593_s30 + $0x2f0] sm:$0xff] }
  0xa0   : > { %2783 = vst [vmem:[%s3615_s17 + $0x2a0] sm:$0xff] %v2271_v56  ;;  %v233_v2 = vld [vmem:[%s3593_s30 + $0x2f8] sm:$0xff]  ;;  %2784 = vst [vmem:[%s3615_s17 + $0x2a8] sm:$0xff] %v2272_v57  ;;  %v2273_v3 = vmul.f32 0.16666667, %v1760_v58  ;;  %v1250_v5 = vmax.f32 %v738_v60, 0.0 }
  0xa1   : > { %v2274_v4 = vmul.f32 0.16666667, %v1761_v59  ;;  %v743_v6 = vadd.f32 3.0, %v231_v49  ;;  %v1251_v7 = vmax.f32 %v739_v61, 0.0  ;;  %v1252_v8 = vmax.f32 %v740_v62, 0.0  ;;  %v234_v15 = vld [vmem:[%s3593_s30 + $0x300] sm:$0xff] }
  0xa2   : > { %v1253_v9 = vmax.f32 %v741_v63, 0.0  ;;  %v1254_v10 = vmax.f32 %v742_v0, 0.0  ;;  %2785 = vst [vmem:[%s3615_s17 + $0x2b0] sm:$0xff] %v2273_v3  ;;  %v1762_v11 = vmin.f32 %v1250_v5, 6.0  ;;  %v744_v13 = vadd.f32 3.0, %v232_v1  ;;  %v235_v16 = vld [vmem:[%s3593_s30 + $0x308] sm:$0xff] }
  0xa3   : > { %2786 = vst [vmem:[%s3615_s17 + $0x2b8] sm:$0xff] %v2274_v4  ;;  %v1255_v12 = vmax.f32 %v743_v6, 0.0  ;;  %v745_v14 = vadd.f32 3.0, %v233_v2  ;;  %v236_v17 = vld [vmem:[%s3593_s30 + $0x310] sm:$0xff]  ;;  %v1763_v18 = vmin.f32 %v1251_v7, 6.0  ;;  %v1764_v19 = vmin.f32 %v1252_v8, 6.0 }
  0xa4   : > { %v1765_v20 = vmin.f32 %v1253_v9, 6.0  ;;  %v1766_v21 = vmin.f32 %v1254_v10, 6.0  ;;  %v237_v22 = vld [vmem:[%s3593_s30 + $0x318] sm:$0xff]  ;;  %v238_v23 = vld [vmem:[%s3593_s30 + $0x320] sm:$0xff]  ;;  %v2275_v24 = vmul.f32 0.16666667, %v1762_v11 }
  0xa5   : > { %v1767_v25 = vmin.f32 %v1255_v12, 6.0  ;;  %v1256_v26 = vmax.f32 %v744_v13, 0.0  ;;  %v1257_v27 = vmax.f32 %v745_v14, 0.0  ;;  %v239_v28 = vld [vmem:[%s3593_s30 + $0x328] sm:$0xff]  ;;  %v2276_v29 = vmul.f32 0.16666667, %v1763_v18 }
  0xa6   : > { %v2277_v30 = vmul.f32 0.16666667, %v1764_v19  ;;  %v2278_v31 = vmul.f32 0.16666667, %v1765_v20  ;;  %2787 = vst [vmem:[%s3615_s17 + $0x2c0] sm:$0xff] %v2275_v24  ;;  %v746_v36 = vadd.f32 3.0, %v234_v15 }
  0xa7   : > { %v2279_v32 = vmul.f32 0.16666667, %v1766_v21  ;;  %v2280_v33 = vmul.f32 0.16666667, %v1767_v25  ;;  %v1768_v34 = vmin.f32 %v1256_v26, 6.0  ;;  %v1769_v35 = vmin.f32 %v1257_v27, 6.0 }
  0xa8   : > { %2788 = vst [vmem:[%s3615_s17 + $0x2c8] sm:$0xff] %v2276_v29  ;;  %2789 = vst [vmem:[%s3615_s17 + $0x2d0] sm:$0xff] %v2277_v30  ;;  %v747_v37 = vadd.f32 3.0, %v235_v16  ;;  %v748_v38 = vadd.f32 3.0, %v236_v17  ;;  %v749_v39 = vadd.f32 3.0, %v237_v22  ;;  %v240_v40 = vld [vmem:[%s3593_s30 + $0x330] sm:$0xff] }
  0xa9   : > { %2790 = vst [vmem:[%s3615_s17 + $0x2d8] sm:$0xff] %v2278_v31  ;;  %v241_v41 = vld [vmem:[%s3593_s30 + $0x338] sm:$0xff]  ;;  %2791 = vst [vmem:[%s3615_s17 + $0x2e0] sm:$0xff] %v2279_v32  ;;  %v2281_v42 = vmul.f32 0.16666667, %v1768_v34  ;;  %v750_v44 = vadd.f32 3.0, %v238_v23 }
  0xaa   : > { %2792 = vst [vmem:[%s3615_s17 + $0x2e8] sm:$0xff] %v2280_v33  ;;  %v2282_v43 = vmul.f32 0.16666667, %v1769_v35  ;;  %v751_v45 = vadd.f32 3.0, %v239_v28  ;;  %v1258_v46 = vmax.f32 %v746_v36, 0.0  ;;  %v1259_v47 = vmax.f32 %v747_v37, 0.0 }
  0xab   : > { %v1260_v48 = vmax.f32 %v748_v38, 0.0  ;;  %v1261_v49 = vmax.f32 %v749_v39, 0.0  ;;  %2793 = vst [vmem:[%s3615_s17 + $0x2f0] sm:$0xff] %v2281_v42  ;;  %v1262_v50 = vmax.f32 %v750_v44, 0.0  ;;  %v752_v52 = vadd.f32 3.0, %v240_v40  ;;  %v242_v54 = vld [vmem:[%s3593_s30 + $0x340] sm:$0xff] }
  0xac   : > { %2794 = vst [vmem:[%s3615_s17 + $0x2f8] sm:$0xff] %v2282_v43  ;;  %v1263_v51 = vmax.f32 %v751_v45, 0.0  ;;  %v753_v53 = vadd.f32 3.0, %v241_v41  ;;  %v243_v55 = vld [vmem:[%s3593_s30 + $0x348] sm:$0xff]  ;;  %v1770_v56 = vmin.f32 %v1258_v46, 6.0  ;;  %v1771_v57 = vmin.f32 %v1259_v47, 6.0 }
  0xad   : > { %v1772_v58 = vmin.f32 %v1260_v48, 6.0  ;;  %v1773_v59 = vmin.f32 %v1261_v49, 6.0  ;;  %v244_v60 = vld [vmem:[%s3593_s30 + $0x350] sm:$0xff]  ;;  %v245_v61 = vld [vmem:[%s3593_s30 + $0x358] sm:$0xff]  ;;  %v1774_v62 = vmin.f32 %v1262_v50, 6.0  ;;  %v1264_v0 = vmax.f32 %v752_v52, 0.0 }
  0xae   : > { %v1775_v63 = vmin.f32 %v1263_v51, 6.0  ;;  %v1265_v1 = vmax.f32 %v753_v53, 0.0  ;;  %v246_v2 = vld [vmem:[%s3593_s30 + $0x360] sm:$0xff]  ;;  %v247_v3 = vld [vmem:[%s3593_s30 + $0x368] sm:$0xff]  ;;  %v2283_v4 = vmul.f32 0.16666667, %v1770_v56 }
  0xaf   : > { %v2284_v5 = vmul.f32 0.16666667, %v1771_v57  ;;  %v2285_v6 = vmul.f32 0.16666667, %v1772_v58  ;;  %v2286_v7 = vmul.f32 0.16666667, %v1773_v59 }
  0xb0   : > { %v2287_v8 = vmul.f32 0.16666667, %v1774_v62  ;;  %v2288_v9 = vmul.f32 0.16666667, %v1775_v63  ;;  %2795 = vst [vmem:[%s3615_s17 + $0x300] sm:$0xff] %v2283_v4  ;;  %v1776_v10 = vmin.f32 %v1264_v0, 6.0 }
  0xb1   : > { %2796 = vst [vmem:[%s3615_s17 + $0x308] sm:$0xff] %v2284_v5  ;;  %2797 = vst [vmem:[%s3615_s17 + $0x310] sm:$0xff] %v2285_v6  ;;  %v1777_v11 = vmin.f32 %v1265_v1, 6.0  ;;  %v754_v12 = vadd.f32 3.0, %v242_v54  ;;  %v755_v13 = vadd.f32 3.0, %v243_v55  ;;  %v756_v14 = vadd.f32 3.0, %v244_v60 }
  0xb2   : > { %2798 = vst [vmem:[%s3615_s17 + $0x318] sm:$0xff] %v2286_v7  ;;  %2799 = vst [vmem:[%s3615_s17 + $0x320] sm:$0xff] %v2287_v8  ;;  %v757_v15 = vadd.f32 3.0, %v245_v61  ;;  %v758_v16 = vadd.f32 3.0, %v246_v2  ;;  %v759_v17 = vadd.f32 3.0, %v247_v3  ;;  %v248_v18 = vld [vmem:[%s3593_s30 + $0x370] sm:$0xff] }
  0xb3   : > { %2800 = vst [vmem:[%s3615_s17 + $0x328] sm:$0xff] %v2288_v9  ;;  %v249_v19 = vld [vmem:[%s3593_s30 + $0x378] sm:$0xff]  ;;  %v2289_v20 = vmul.f32 0.16666667, %v1776_v10  ;;  %v2290_v21 = vmul.f32 0.16666667, %v1777_v11 }
  0xb4   : > { %v1266_v22 = vmax.f32 %v754_v12, 0.0  ;;  %v1267_v23 = vmax.f32 %v755_v13, 0.0  ;;  %v1268_v24 = vmax.f32 %v756_v14, 0.0  ;;  %v1269_v25 = vmax.f32 %v757_v15, 0.0  ;;  %v250_v28 = vld [vmem:[%s3593_s30 + $0x380] sm:$0xff]  ;;  %v251_v33 = vld [vmem:[%s3593_s30 + $0x388] sm:$0xff] }
  0xb5   : > { %v1270_v26 = vmax.f32 %v758_v16, 0.0  ;;  %v1271_v27 = vmax.f32 %v759_v17, 0.0  ;;  %2801 = vst [vmem:[%s3615_s17 + $0x330] sm:$0xff] %v2289_v20  ;;  %2802 = vst [vmem:[%s3615_s17 + $0x338] sm:$0xff] %v2290_v21  ;;  %v760_v31 = vadd.f32 3.0, %v248_v18  ;;  %v761_v32 = vadd.f32 3.0, %v249_v19 }
  0xb6   : > { %v1778_v29 = vmin.f32 %v1266_v22, 6.0  ;;  %v1779_v30 = vmin.f32 %v1267_v23, 6.0  ;;  %v252_v34 = vld [vmem:[%s3593_s30 + $0x390] sm:$0xff]  ;;  %v253_v35 = vld [vmem:[%s3593_s30 + $0x398] sm:$0xff]  ;;  %v1780_v36 = vmin.f32 %v1268_v24, 6.0  ;;  %v1781_v37 = vmin.f32 %v1269_v25, 6.0 }
  0xb7   : > { %v1782_v38 = vmin.f32 %v1270_v26, 6.0  ;;  %v1783_v39 = vmin.f32 %v1271_v27, 6.0  ;;  %v254_v40 = vld [vmem:[%s3593_s30 + $0x3a0] sm:$0xff]  ;;  %v255_v41 = vld [vmem:[%s3593_s30 + $0x3a8] sm:$0xff]  ;;  %v1272_v44 = vmax.f32 %v760_v31, 0.0  ;;  %v1273_v45 = vmax.f32 %v761_v32, 0.0 }
  0xb8   : > { %v2291_v42 = vmul.f32 0.16666667, %v1778_v29  ;;  %v2292_v43 = vmul.f32 0.16666667, %v1779_v30  ;;  %v2293_v46 = vmul.f32 0.16666667, %v1780_v36 }
  0xb9   : > { %v2294_v47 = vmul.f32 0.16666667, %v1781_v37  ;;  %v2295_v48 = vmul.f32 0.16666667, %v1782_v38  ;;  %v2296_v49 = vmul.f32 0.16666667, %v1783_v39 }
  0xba   : > { %2803 = vst [vmem:[%s3615_s17 + $0x340] sm:$0xff] %v2291_v42  ;;  %2804 = vst [vmem:[%s3615_s17 + $0x348] sm:$0xff] %v2292_v43  ;;  %v1784_v50 = vmin.f32 %v1272_v44, 6.0  ;;  %v1785_v51 = vmin.f32 %v1273_v45, 6.0  ;;  %v762_v52 = vadd.f32 3.0, %v250_v28  ;;  %v763_v53 = vadd.f32 3.0, %v251_v33 }
  0xbb   : > { %2805 = vst [vmem:[%s3615_s17 + $0x350] sm:$0xff] %v2293_v46  ;;  %2806 = vst [vmem:[%s3615_s17 + $0x358] sm:$0xff] %v2294_v47  ;;  %v764_v54 = vadd.f32 3.0, %v252_v34  ;;  %v765_v55 = vadd.f32 3.0, %v253_v35  ;;  %v766_v56 = vadd.f32 3.0, %v254_v40  ;;  %v256_v57 = vld [vmem:[%s3593_s30 + $0x3b0] sm:$0xff] }
  0xbc   : > { %2807 = vst [vmem:[%s3615_s17 + $0x360] sm:$0xff] %v2295_v48  ;;  %v257_v58 = vld [vmem:[%s3593_s30 + $0x3b8] sm:$0xff]  ;;  %2808 = vst [vmem:[%s3615_s17 + $0x368] sm:$0xff] %v2296_v49  ;;  %v2297_v59 = vmul.f32 0.16666667, %v1784_v50  ;;  %v1274_v61 = vmax.f32 %v762_v52, 0.0 }
  0xbd   : > { %v2298_v60 = vmul.f32 0.16666667, %v1785_v51  ;;  %v767_v62 = vadd.f32 3.0, %v255_v41  ;;  %v1275_v63 = vmax.f32 %v763_v53, 0.0  ;;  %v1276_v0 = vmax.f32 %v764_v54, 0.0  ;;  %v258_v7 = vld [vmem:[%s3593_s30 + $0x3c0] sm:$0xff] }
  0xbe   : > { %v1277_v1 = vmax.f32 %v765_v55, 0.0  ;;  %v1278_v2 = vmax.f32 %v766_v56, 0.0  ;;  %2809 = vst [vmem:[%s3615_s17 + $0x370] sm:$0xff] %v2297_v59  ;;  %v1786_v3 = vmin.f32 %v1274_v61, 6.0  ;;  %v768_v5 = vadd.f32 3.0, %v256_v57  ;;  %v259_v8 = vld [vmem:[%s3593_s30 + $0x3c8] sm:$0xff] }
  0xbf   : > { %2810 = vst [vmem:[%s3615_s17 + $0x378] sm:$0xff] %v2298_v60  ;;  %v1279_v4 = vmax.f32 %v767_v62, 0.0  ;;  %v769_v6 = vadd.f32 3.0, %v257_v58  ;;  %v260_v9 = vld [vmem:[%s3593_s30 + $0x3d0] sm:$0xff]  ;;  %v1787_v10 = vmin.f32 %v1275_v63, 6.0  ;;  %v1788_v11 = vmin.f32 %v1276_v0, 6.0 }
  0xc0   : > { %v1789_v12 = vmin.f32 %v1277_v1, 6.0  ;;  %v1790_v13 = vmin.f32 %v1278_v2, 6.0  ;;  %v261_v14 = vld [vmem:[%s3593_s30 + $0x3d8] sm:$0xff]  ;;  %v262_v15 = vld [vmem:[%s3593_s30 + $0x3e0] sm:$0xff]  ;;  %v2299_v16 = vmul.f32 0.16666667, %v1786_v3 }
  0xc1   : > { %v1791_v17 = vmin.f32 %v1279_v4, 6.0  ;;  %v1280_v18 = vmax.f32 %v768_v5, 0.0  ;;  %v1281_v19 = vmax.f32 %v769_v6, 0.0  ;;  %v263_v20 = vld [vmem:[%s3593_s30 + $0x3e8] sm:$0xff]  ;;  %v2300_v21 = vmul.f32 0.16666667, %v1787_v10 }
  0xc2   : > { %v2301_v22 = vmul.f32 0.16666667, %v1788_v11  ;;  %v2302_v23 = vmul.f32 0.16666667, %v1789_v12  ;;  %2811 = vst [vmem:[%s3615_s17 + $0x380] sm:$0xff] %v2299_v16  ;;  %v770_v28 = vadd.f32 3.0, %v258_v7 }
  0xc3   : > { %v2303_v24 = vmul.f32 0.16666667, %v1790_v13  ;;  %v2304_v25 = vmul.f32 0.16666667, %v1791_v17  ;;  %v1792_v26 = vmin.f32 %v1280_v18, 6.0  ;;  %v1793_v27 = vmin.f32 %v1281_v19, 6.0 }
  0xc4   : > { %2812 = vst [vmem:[%s3615_s17 + $0x388] sm:$0xff] %v2300_v21  ;;  %2813 = vst [vmem:[%s3615_s17 + $0x390] sm:$0xff] %v2301_v22  ;;  %v771_v29 = vadd.f32 3.0, %v259_v8  ;;  %v772_v30 = vadd.f32 3.0, %v260_v9  ;;  %v773_v31 = vadd.f32 3.0, %v261_v14  ;;  %v264_v32 = vld [vmem:[%s3593_s30 + $0x3f0] sm:$0xff] }
  0xc5   : > { %2814 = vst [vmem:[%s3615_s17 + $0x398] sm:$0xff] %v2302_v23  ;;  %v265_v33 = vld [vmem:[%s3593_s30 + $0x3f8] sm:$0xff]  ;;  %2815 = vst [vmem:[%s3615_s17 + $0x3a0] sm:$0xff] %v2303_v24  ;;  %v2305_v34 = vmul.f32 0.16666667, %v1792_v26  ;;  %v774_v36 = vadd.f32 3.0, %v262_v15 }
  0xc6   : > { %2816 = vst [vmem:[%s3615_s17 + $0x3a8] sm:$0xff] %v2304_v25  ;;  %v2306_v35 = vmul.f32 0.16666667, %v1793_v27  ;;  %v775_v37 = vadd.f32 3.0, %v263_v20  ;;  %v1282_v38 = vmax.f32 %v770_v28, 0.0  ;;  %v1283_v39 = vmax.f32 %v771_v29, 0.0 }
  0xc7   : > { %v1284_v40 = vmax.f32 %v772_v30, 0.0  ;;  %v1285_v41 = vmax.f32 %v773_v31, 0.0  ;;  %2817 = vst [vmem:[%s3615_s17 + $0x3b0] sm:$0xff] %v2305_v34  ;;  %v1286_v42 = vmax.f32 %v774_v36, 0.0  ;;  %v776_v44 = vadd.f32 3.0, %v264_v32  ;;  %v266_v46 = vld [vmem:[%s3593_s30 + $0x400] sm:$0xff] }
  0xc8   : > { %2818 = vst [vmem:[%s3615_s17 + $0x3b8] sm:$0xff] %v2306_v35  ;;  %v1287_v43 = vmax.f32 %v775_v37, 0.0  ;;  %v777_v45 = vadd.f32 3.0, %v265_v33  ;;  %v267_v47 = vld [vmem:[%s3593_s30 + $0x408] sm:$0xff]  ;;  %v1794_v48 = vmin.f32 %v1282_v38, 6.0  ;;  %v1795_v49 = vmin.f32 %v1283_v39, 6.0 }
  0xc9   : > { %v1796_v50 = vmin.f32 %v1284_v40, 6.0  ;;  %v1797_v51 = vmin.f32 %v1285_v41, 6.0  ;;  %v268_v52 = vld [vmem:[%s3593_s30 + $0x410] sm:$0xff]  ;;  %v269_v53 = vld [vmem:[%s3593_s30 + $0x418] sm:$0xff]  ;;  %v1798_v54 = vmin.f32 %v1286_v42, 6.0  ;;  %v1288_v56 = vmax.f32 %v776_v44, 0.0 }
  0xca   : > { %v1799_v55 = vmin.f32 %v1287_v43, 6.0  ;;  %v1289_v57 = vmax.f32 %v777_v45, 0.0  ;;  %v270_v58 = vld [vmem:[%s3593_s30 + $0x420] sm:$0xff]  ;;  %v271_v59 = vld [vmem:[%s3593_s30 + $0x428] sm:$0xff]  ;;  %v2307_v60 = vmul.f32 0.16666667, %v1794_v48 }
  0xcb   : > { %v2308_v61 = vmul.f32 0.16666667, %v1795_v49  ;;  %v2309_v62 = vmul.f32 0.16666667, %v1796_v50  ;;  %v2310_v63 = vmul.f32 0.16666667, %v1797_v51 }
  0xcc   : > { %v2311_v0 = vmul.f32 0.16666667, %v1798_v54  ;;  %v2312_v1 = vmul.f32 0.16666667, %v1799_v55  ;;  %2819 = vst [vmem:[%s3615_s17 + $0x3c0] sm:$0xff] %v2307_v60  ;;  %v1800_v2 = vmin.f32 %v1288_v56, 6.0 }
  0xcd   : > { %2820 = vst [vmem:[%s3615_s17 + $0x3c8] sm:$0xff] %v2308_v61  ;;  %2821 = vst [vmem:[%s3615_s17 + $0x3d0] sm:$0xff] %v2309_v62  ;;  %v1801_v3 = vmin.f32 %v1289_v57, 6.0  ;;  %v778_v4 = vadd.f32 3.0, %v266_v46  ;;  %v779_v5 = vadd.f32 3.0, %v267_v47  ;;  %v780_v6 = vadd.f32 3.0, %v268_v52 }
  0xce   : > { %2822 = vst [vmem:[%s3615_s17 + $0x3d8] sm:$0xff] %v2310_v63  ;;  %2823 = vst [vmem:[%s3615_s17 + $0x3e0] sm:$0xff] %v2311_v0  ;;  %v781_v7 = vadd.f32 3.0, %v269_v53  ;;  %v782_v8 = vadd.f32 3.0, %v270_v58  ;;  %v783_v9 = vadd.f32 3.0, %v271_v59  ;;  %v272_v10 = vld [vmem:[%s3593_s30 + $0x430] sm:$0xff] }
  0xcf   : > { %2824 = vst [vmem:[%s3615_s17 + $0x3e8] sm:$0xff] %v2312_v1  ;;  %v273_v11 = vld [vmem:[%s3593_s30 + $0x438] sm:$0xff]  ;;  %v2313_v12 = vmul.f32 0.16666667, %v1800_v2  ;;  %v2314_v13 = vmul.f32 0.16666667, %v1801_v3 }
  0xd0   : > { %v1290_v14 = vmax.f32 %v778_v4, 0.0  ;;  %v1291_v15 = vmax.f32 %v779_v5, 0.0  ;;  %v1292_v16 = vmax.f32 %v780_v6, 0.0  ;;  %v1293_v17 = vmax.f32 %v781_v7, 0.0  ;;  %v274_v20 = vld [vmem:[%s3593_s30 + $0x440] sm:$0xff]  ;;  %v275_v25 = vld [vmem:[%s3593_s30 + $0x448] sm:$0xff] }
  0xd1   : > { %v1294_v18 = vmax.f32 %v782_v8, 0.0  ;;  %v1295_v19 = vmax.f32 %v783_v9, 0.0  ;;  %2825 = vst [vmem:[%s3615_s17 + $0x3f0] sm:$0xff] %v2313_v12  ;;  %2826 = vst [vmem:[%s3615_s17 + $0x3f8] sm:$0xff] %v2314_v13  ;;  %v784_v23 = vadd.f32 3.0, %v272_v10  ;;  %v785_v24 = vadd.f32 3.0, %v273_v11 }
  0xd2   : > { %v1802_v21 = vmin.f32 %v1290_v14, 6.0  ;;  %v1803_v22 = vmin.f32 %v1291_v15, 6.0  ;;  %v276_v26 = vld [vmem:[%s3593_s30 + $0x450] sm:$0xff]  ;;  %v277_v27 = vld [vmem:[%s3593_s30 + $0x458] sm:$0xff]  ;;  %v1804_v28 = vmin.f32 %v1292_v16, 6.0  ;;  %v1805_v29 = vmin.f32 %v1293_v17, 6.0 }
  0xd3   : > { %v1806_v30 = vmin.f32 %v1294_v18, 6.0  ;;  %v1807_v31 = vmin.f32 %v1295_v19, 6.0  ;;  %v278_v32 = vld [vmem:[%s3593_s30 + $0x460] sm:$0xff]  ;;  %v279_v33 = vld [vmem:[%s3593_s30 + $0x468] sm:$0xff]  ;;  %v1296_v36 = vmax.f32 %v784_v23, 0.0  ;;  %v1297_v37 = vmax.f32 %v785_v24, 0.0 }
  0xd4   : > { %v2315_v34 = vmul.f32 0.16666667, %v1802_v21  ;;  %v2316_v35 = vmul.f32 0.16666667, %v1803_v22  ;;  %v2317_v38 = vmul.f32 0.16666667, %v1804_v28 }
  0xd5   : > { %v2318_v39 = vmul.f32 0.16666667, %v1805_v29  ;;  %v2319_v40 = vmul.f32 0.16666667, %v1806_v30  ;;  %v2320_v41 = vmul.f32 0.16666667, %v1807_v31 }
  0xd6   : > { %2827 = vst [vmem:[%s3615_s17 + $0x400] sm:$0xff] %v2315_v34  ;;  %2828 = vst [vmem:[%s3615_s17 + $0x408] sm:$0xff] %v2316_v35  ;;  %v1808_v42 = vmin.f32 %v1296_v36, 6.0  ;;  %v1809_v43 = vmin.f32 %v1297_v37, 6.0  ;;  %v786_v44 = vadd.f32 3.0, %v274_v20  ;;  %v787_v45 = vadd.f32 3.0, %v275_v25 }
  0xd7   : > { %2829 = vst [vmem:[%s3615_s17 + $0x410] sm:$0xff] %v2317_v38  ;;  %2830 = vst [vmem:[%s3615_s17 + $0x418] sm:$0xff] %v2318_v39  ;;  %v788_v46 = vadd.f32 3.0, %v276_v26  ;;  %v789_v47 = vadd.f32 3.0, %v277_v27  ;;  %v790_v48 = vadd.f32 3.0, %v278_v32  ;;  %v280_v49 = vld [vmem:[%s3593_s30 + $0x470] sm:$0xff] }
  0xd8   : > { %2831 = vst [vmem:[%s3615_s17 + $0x420] sm:$0xff] %v2319_v40  ;;  %v281_v50 = vld [vmem:[%s3593_s30 + $0x478] sm:$0xff]  ;;  %2832 = vst [vmem:[%s3615_s17 + $0x428] sm:$0xff] %v2320_v41  ;;  %v2321_v51 = vmul.f32 0.16666667, %v1808_v42  ;;  %v1298_v53 = vmax.f32 %v786_v44, 0.0 }
  0xd9   : > { %v2322_v52 = vmul.f32 0.16666667, %v1809_v43  ;;  %v791_v54 = vadd.f32 3.0, %v279_v33  ;;  %v1299_v55 = vmax.f32 %v787_v45, 0.0  ;;  %v1300_v56 = vmax.f32 %v788_v46, 0.0  ;;  %v282_v63 = vld [vmem:[%s3593_s30 + $0x480] sm:$0xff] }
  0xda   : > { %v1301_v57 = vmax.f32 %v789_v47, 0.0  ;;  %v1302_v58 = vmax.f32 %v790_v48, 0.0  ;;  %2833 = vst [vmem:[%s3615_s17 + $0x430] sm:$0xff] %v2321_v51  ;;  %v1810_v59 = vmin.f32 %v1298_v53, 6.0  ;;  %v792_v61 = vadd.f32 3.0, %v280_v49  ;;  %v283_v0 = vld [vmem:[%s3593_s30 + $0x488] sm:$0xff] }
  0xdb   : > { %2834 = vst [vmem:[%s3615_s17 + $0x438] sm:$0xff] %v2322_v52  ;;  %v1303_v60 = vmax.f32 %v791_v54, 0.0  ;;  %v793_v62 = vadd.f32 3.0, %v281_v50  ;;  %v284_v1 = vld [vmem:[%s3593_s30 + $0x490] sm:$0xff]  ;;  %v1811_v2 = vmin.f32 %v1299_v55, 6.0  ;;  %v1812_v3 = vmin.f32 %v1300_v56, 6.0 }
  0xdc   : > { %v1813_v4 = vmin.f32 %v1301_v57, 6.0  ;;  %v1814_v5 = vmin.f32 %v1302_v58, 6.0  ;;  %v285_v6 = vld [vmem:[%s3593_s30 + $0x498] sm:$0xff]  ;;  %v286_v7 = vld [vmem:[%s3593_s30 + $0x4a0] sm:$0xff]  ;;  %v2323_v8 = vmul.f32 0.16666667, %v1810_v59 }
  0xdd   : > { %v1815_v9 = vmin.f32 %v1303_v60, 6.0  ;;  %v1304_v10 = vmax.f32 %v792_v61, 0.0  ;;  %v1305_v11 = vmax.f32 %v793_v62, 0.0  ;;  %v287_v12 = vld [vmem:[%s3593_s30 + $0x4a8] sm:$0xff]  ;;  %v2324_v13 = vmul.f32 0.16666667, %v1811_v2 }
  0xde   : > { %v2325_v14 = vmul.f32 0.16666667, %v1812_v3  ;;  %v2326_v15 = vmul.f32 0.16666667, %v1813_v4  ;;  %2835 = vst [vmem:[%s3615_s17 + $0x440] sm:$0xff] %v2323_v8  ;;  %v794_v20 = vadd.f32 3.0, %v282_v63 }
  0xdf   : > { %v2327_v16 = vmul.f32 0.16666667, %v1814_v5  ;;  %v2328_v17 = vmul.f32 0.16666667, %v1815_v9  ;;  %v1816_v18 = vmin.f32 %v1304_v10, 6.0  ;;  %v1817_v19 = vmin.f32 %v1305_v11, 6.0 }
  0xe0   : > { %2836 = vst [vmem:[%s3615_s17 + $0x448] sm:$0xff] %v2324_v13  ;;  %2837 = vst [vmem:[%s3615_s17 + $0x450] sm:$0xff] %v2325_v14  ;;  %v795_v21 = vadd.f32 3.0, %v283_v0  ;;  %v796_v22 = vadd.f32 3.0, %v284_v1  ;;  %v797_v23 = vadd.f32 3.0, %v285_v6  ;;  %v288_v24 = vld [vmem:[%s3593_s30 + $0x4b0] sm:$0xff] }
  0xe1   : > { %2838 = vst [vmem:[%s3615_s17 + $0x458] sm:$0xff] %v2326_v15  ;;  %v289_v25 = vld [vmem:[%s3593_s30 + $0x4b8] sm:$0xff]  ;;  %2839 = vst [vmem:[%s3615_s17 + $0x460] sm:$0xff] %v2327_v16  ;;  %v2329_v26 = vmul.f32 0.16666667, %v1816_v18  ;;  %v798_v28 = vadd.f32 3.0, %v286_v7 }
  0xe2   : > { %2840 = vst [vmem:[%s3615_s17 + $0x468] sm:$0xff] %v2328_v17  ;;  %v2330_v27 = vmul.f32 0.16666667, %v1817_v19  ;;  %v799_v29 = vadd.f32 3.0, %v287_v12  ;;  %v1306_v30 = vmax.f32 %v794_v20, 0.0  ;;  %v1307_v31 = vmax.f32 %v795_v21, 0.0 }
  0xe3   : > { %v1308_v32 = vmax.f32 %v796_v22, 0.0  ;;  %v1309_v33 = vmax.f32 %v797_v23, 0.0  ;;  %2841 = vst [vmem:[%s3615_s17 + $0x470] sm:$0xff] %v2329_v26  ;;  %v1310_v34 = vmax.f32 %v798_v28, 0.0  ;;  %v800_v36 = vadd.f32 3.0, %v288_v24  ;;  %v290_v38 = vld [vmem:[%s3593_s30 + $0x4c0] sm:$0xff] }
  0xe4   : > { %2842 = vst [vmem:[%s3615_s17 + $0x478] sm:$0xff] %v2330_v27  ;;  %v1311_v35 = vmax.f32 %v799_v29, 0.0  ;;  %v801_v37 = vadd.f32 3.0, %v289_v25  ;;  %v291_v39 = vld [vmem:[%s3593_s30 + $0x4c8] sm:$0xff]  ;;  %v1818_v40 = vmin.f32 %v1306_v30, 6.0  ;;  %v1819_v41 = vmin.f32 %v1307_v31, 6.0 }
  0xe5   : > { %v1820_v42 = vmin.f32 %v1308_v32, 6.0  ;;  %v1821_v43 = vmin.f32 %v1309_v33, 6.0  ;;  %v292_v44 = vld [vmem:[%s3593_s30 + $0x4d0] sm:$0xff]  ;;  %v293_v45 = vld [vmem:[%s3593_s30 + $0x4d8] sm:$0xff]  ;;  %v1822_v46 = vmin.f32 %v1310_v34, 6.0  ;;  %v1312_v48 = vmax.f32 %v800_v36, 0.0 }
  0xe6   : > { %v1823_v47 = vmin.f32 %v1311_v35, 6.0  ;;  %v1313_v49 = vmax.f32 %v801_v37, 0.0  ;;  %v294_v50 = vld [vmem:[%s3593_s30 + $0x4e0] sm:$0xff]  ;;  %v295_v51 = vld [vmem:[%s3593_s30 + $0x4e8] sm:$0xff]  ;;  %v2331_v52 = vmul.f32 0.16666667, %v1818_v40 }
  0xe7   : > { %v2332_v53 = vmul.f32 0.16666667, %v1819_v41  ;;  %v2333_v54 = vmul.f32 0.16666667, %v1820_v42  ;;  %v2334_v55 = vmul.f32 0.16666667, %v1821_v43 }
  0xe8   : > { %v2335_v56 = vmul.f32 0.16666667, %v1822_v46  ;;  %v2336_v57 = vmul.f32 0.16666667, %v1823_v47  ;;  %2843 = vst [vmem:[%s3615_s17 + $0x480] sm:$0xff] %v2331_v52  ;;  %v1824_v58 = vmin.f32 %v1312_v48, 6.0 }
  0xe9   : > { %2844 = vst [vmem:[%s3615_s17 + $0x488] sm:$0xff] %v2332_v53  ;;  %2845 = vst [vmem:[%s3615_s17 + $0x490] sm:$0xff] %v2333_v54  ;;  %v1825_v59 = vmin.f32 %v1313_v49, 6.0  ;;  %v802_v60 = vadd.f32 3.0, %v290_v38  ;;  %v803_v61 = vadd.f32 3.0, %v291_v39  ;;  %v804_v62 = vadd.f32 3.0, %v292_v44 }
  0xea   : > { %2846 = vst [vmem:[%s3615_s17 + $0x498] sm:$0xff] %v2334_v55  ;;  %2847 = vst [vmem:[%s3615_s17 + $0x4a0] sm:$0xff] %v2335_v56  ;;  %v805_v63 = vadd.f32 3.0, %v293_v45  ;;  %v806_v0 = vadd.f32 3.0, %v294_v50  ;;  %v807_v1 = vadd.f32 3.0, %v295_v51  ;;  %v296_v2 = vld [vmem:[%s3593_s30 + $0x4f0] sm:$0xff] }
  0xeb   : > { %2848 = vst [vmem:[%s3615_s17 + $0x4a8] sm:$0xff] %v2336_v57  ;;  %v297_v3 = vld [vmem:[%s3593_s30 + $0x4f8] sm:$0xff]  ;;  %v2337_v4 = vmul.f32 0.16666667, %v1824_v58  ;;  %v2338_v5 = vmul.f32 0.16666667, %v1825_v59 }
  0xec   : > { %v1314_v6 = vmax.f32 %v802_v60, 0.0  ;;  %v1315_v7 = vmax.f32 %v803_v61, 0.0  ;;  %v1316_v8 = vmax.f32 %v804_v62, 0.0  ;;  %v1317_v9 = vmax.f32 %v805_v63, 0.0  ;;  %v298_v12 = vld [vmem:[%s3593_s30 + $0x500] sm:$0xff]  ;;  %v299_v17 = vld [vmem:[%s3593_s30 + $0x508] sm:$0xff] }
  0xed   : > { %v1318_v10 = vmax.f32 %v806_v0, 0.0  ;;  %v1319_v11 = vmax.f32 %v807_v1, 0.0  ;;  %2849 = vst [vmem:[%s3615_s17 + $0x4b0] sm:$0xff] %v2337_v4  ;;  %2850 = vst [vmem:[%s3615_s17 + $0x4b8] sm:$0xff] %v2338_v5  ;;  %v808_v15 = vadd.f32 3.0, %v296_v2  ;;  %v809_v16 = vadd.f32 3.0, %v297_v3 }
  0xee   : > { %v1826_v13 = vmin.f32 %v1314_v6, 6.0  ;;  %v1827_v14 = vmin.f32 %v1315_v7, 6.0  ;;  %v300_v18 = vld [vmem:[%s3593_s30 + $0x510] sm:$0xff]  ;;  %v301_v19 = vld [vmem:[%s3593_s30 + $0x518] sm:$0xff]  ;;  %v1828_v20 = vmin.f32 %v1316_v8, 6.0  ;;  %v1829_v21 = vmin.f32 %v1317_v9, 6.0 }
  0xef   : > { %v1830_v22 = vmin.f32 %v1318_v10, 6.0  ;;  %v1831_v23 = vmin.f32 %v1319_v11, 6.0  ;;  %v302_v24 = vld [vmem:[%s3593_s30 + $0x520] sm:$0xff]  ;;  %v303_v25 = vld [vmem:[%s3593_s30 + $0x528] sm:$0xff]  ;;  %v1320_v28 = vmax.f32 %v808_v15, 0.0  ;;  %v1321_v29 = vmax.f32 %v809_v16, 0.0 }
  0xf0   : > { %v2339_v26 = vmul.f32 0.16666667, %v1826_v13  ;;  %v2340_v27 = vmul.f32 0.16666667, %v1827_v14  ;;  %v2341_v30 = vmul.f32 0.16666667, %v1828_v20 }
  0xf1   : > { %v2342_v31 = vmul.f32 0.16666667, %v1829_v21  ;;  %v2343_v32 = vmul.f32 0.16666667, %v1830_v22  ;;  %v2344_v33 = vmul.f32 0.16666667, %v1831_v23 }
  0xf2   : > { %2851 = vst [vmem:[%s3615_s17 + $0x4c0] sm:$0xff] %v2339_v26  ;;  %2852 = vst [vmem:[%s3615_s17 + $0x4c8] sm:$0xff] %v2340_v27  ;;  %v1832_v34 = vmin.f32 %v1320_v28, 6.0  ;;  %v1833_v35 = vmin.f32 %v1321_v29, 6.0  ;;  %v810_v36 = vadd.f32 3.0, %v298_v12  ;;  %v811_v37 = vadd.f32 3.0, %v299_v17 }
  0xf3   : > { %2853 = vst [vmem:[%s3615_s17 + $0x4d0] sm:$0xff] %v2341_v30  ;;  %2854 = vst [vmem:[%s3615_s17 + $0x4d8] sm:$0xff] %v2342_v31  ;;  %v812_v38 = vadd.f32 3.0, %v300_v18  ;;  %v813_v39 = vadd.f32 3.0, %v301_v19  ;;  %v814_v40 = vadd.f32 3.0, %v302_v24  ;;  %v304_v41 = vld [vmem:[%s3593_s30 + $0x530] sm:$0xff] }
  0xf4   : > { %2855 = vst [vmem:[%s3615_s17 + $0x4e0] sm:$0xff] %v2343_v32  ;;  %v305_v42 = vld [vmem:[%s3593_s30 + $0x538] sm:$0xff]  ;;  %2856 = vst [vmem:[%s3615_s17 + $0x4e8] sm:$0xff] %v2344_v33  ;;  %v2345_v43 = vmul.f32 0.16666667, %v1832_v34  ;;  %v1322_v45 = vmax.f32 %v810_v36, 0.0 }
  0xf5   : > { %v2346_v44 = vmul.f32 0.16666667, %v1833_v35  ;;  %v815_v46 = vadd.f32 3.0, %v303_v25  ;;  %v1323_v47 = vmax.f32 %v811_v37, 0.0  ;;  %v1324_v48 = vmax.f32 %v812_v38, 0.0  ;;  %v306_v55 = vld [vmem:[%s3593_s30 + $0x540] sm:$0xff] }
  0xf6   : > { %v1325_v49 = vmax.f32 %v813_v39, 0.0  ;;  %v1326_v50 = vmax.f32 %v814_v40, 0.0  ;;  %2857 = vst [vmem:[%s3615_s17 + $0x4f0] sm:$0xff] %v2345_v43  ;;  %v1834_v51 = vmin.f32 %v1322_v45, 6.0  ;;  %v816_v53 = vadd.f32 3.0, %v304_v41  ;;  %v307_v56 = vld [vmem:[%s3593_s30 + $0x548] sm:$0xff] }
  0xf7   : > { %2858 = vst [vmem:[%s3615_s17 + $0x4f8] sm:$0xff] %v2346_v44  ;;  %v1327_v52 = vmax.f32 %v815_v46, 0.0  ;;  %v817_v54 = vadd.f32 3.0, %v305_v42  ;;  %v308_v57 = vld [vmem:[%s3593_s30 + $0x550] sm:$0xff]  ;;  %v1835_v58 = vmin.f32 %v1323_v47, 6.0  ;;  %v1836_v59 = vmin.f32 %v1324_v48, 6.0 }
  0xf8   : > { %v1837_v60 = vmin.f32 %v1325_v49, 6.0  ;;  %v1838_v61 = vmin.f32 %v1326_v50, 6.0  ;;  %v309_v62 = vld [vmem:[%s3593_s30 + $0x558] sm:$0xff]  ;;  %v310_v63 = vld [vmem:[%s3593_s30 + $0x560] sm:$0xff]  ;;  %v2347_v0 = vmul.f32 0.16666667, %v1834_v51 }
  0xf9   : > { %v1839_v1 = vmin.f32 %v1327_v52, 6.0  ;;  %v1328_v2 = vmax.f32 %v816_v53, 0.0  ;;  %v1329_v3 = vmax.f32 %v817_v54, 0.0  ;;  %v311_v4 = vld [vmem:[%s3593_s30 + $0x568] sm:$0xff]  ;;  %v2348_v5 = vmul.f32 0.16666667, %v1835_v58 }
  0xfa   : > { %v2349_v6 = vmul.f32 0.16666667, %v1836_v59  ;;  %v2350_v7 = vmul.f32 0.16666667, %v1837_v60  ;;  %2859 = vst [vmem:[%s3615_s17 + $0x500] sm:$0xff] %v2347_v0  ;;  %v818_v12 = vadd.f32 3.0, %v306_v55 }
  0xfb   : > { %v2351_v8 = vmul.f32 0.16666667, %v1838_v61  ;;  %v2352_v9 = vmul.f32 0.16666667, %v1839_v1  ;;  %v1840_v10 = vmin.f32 %v1328_v2, 6.0  ;;  %v1841_v11 = vmin.f32 %v1329_v3, 6.0 }
  0xfc   : > { %2860 = vst [vmem:[%s3615_s17 + $0x508] sm:$0xff] %v2348_v5  ;;  %2861 = vst [vmem:[%s3615_s17 + $0x510] sm:$0xff] %v2349_v6  ;;  %v819_v13 = vadd.f32 3.0, %v307_v56  ;;  %v820_v14 = vadd.f32 3.0, %v308_v57  ;;  %v821_v15 = vadd.f32 3.0, %v309_v62  ;;  %v312_v16 = vld [vmem:[%s3593_s30 + $0x570] sm:$0xff] }
  0xfd   : > { %2862 = vst [vmem:[%s3615_s17 + $0x518] sm:$0xff] %v2350_v7  ;;  %v313_v17 = vld [vmem:[%s3593_s30 + $0x578] sm:$0xff]  ;;  %2863 = vst [vmem:[%s3615_s17 + $0x520] sm:$0xff] %v2351_v8  ;;  %v2353_v18 = vmul.f32 0.16666667, %v1840_v10  ;;  %v822_v20 = vadd.f32 3.0, %v310_v63 }
  0xfe   : > { %2864 = vst [vmem:[%s3615_s17 + $0x528] sm:$0xff] %v2352_v9  ;;  %v2354_v19 = vmul.f32 0.16666667, %v1841_v11  ;;  %v823_v21 = vadd.f32 3.0, %v311_v4  ;;  %v1330_v22 = vmax.f32 %v818_v12, 0.0  ;;  %v1331_v23 = vmax.f32 %v819_v13, 0.0 }
  0xff   : > { %v1332_v24 = vmax.f32 %v820_v14, 0.0  ;;  %v1333_v25 = vmax.f32 %v821_v15, 0.0  ;;  %2865 = vst [vmem:[%s3615_s17 + $0x530] sm:$0xff] %v2353_v18  ;;  %v1334_v26 = vmax.f32 %v822_v20, 0.0  ;;  %v824_v28 = vadd.f32 3.0, %v312_v16  ;;  %v314_v30 = vld [vmem:[%s3593_s30 + $0x580] sm:$0xff] }
 0x100   : > { %2866 = vst [vmem:[%s3615_s17 + $0x538] sm:$0xff] %v2354_v19  ;;  %v1335_v27 = vmax.f32 %v823_v21, 0.0  ;;  %v825_v29 = vadd.f32 3.0, %v313_v17  ;;  %v315_v31 = vld [vmem:[%s3593_s30 + $0x588] sm:$0xff]  ;;  %v1842_v32 = vmin.f32 %v1330_v22, 6.0  ;;  %v1843_v33 = vmin.f32 %v1331_v23, 6.0 }
 0x101   : > { %v1844_v34 = vmin.f32 %v1332_v24, 6.0  ;;  %v1845_v35 = vmin.f32 %v1333_v25, 6.0  ;;  %v316_v36 = vld [vmem:[%s3593_s30 + $0x590] sm:$0xff]  ;;  %v317_v37 = vld [vmem:[%s3593_s30 + $0x598] sm:$0xff]  ;;  %v1846_v38 = vmin.f32 %v1334_v26, 6.0  ;;  %v1336_v40 = vmax.f32 %v824_v28, 0.0 }
 0x102   : > { %v1847_v39 = vmin.f32 %v1335_v27, 6.0  ;;  %v1337_v41 = vmax.f32 %v825_v29, 0.0  ;;  %v318_v42 = vld [vmem:[%s3593_s30 + $0x5a0] sm:$0xff]  ;;  %v319_v43 = vld [vmem:[%s3593_s30 + $0x5a8] sm:$0xff]  ;;  %v2355_v44 = vmul.f32 0.16666667, %v1842_v32 }
 0x103   : > { %v2356_v45 = vmul.f32 0.16666667, %v1843_v33  ;;  %v2357_v46 = vmul.f32 0.16666667, %v1844_v34  ;;  %v2358_v47 = vmul.f32 0.16666667, %v1845_v35 }
 0x104   : > { %v2359_v48 = vmul.f32 0.16666667, %v1846_v38  ;;  %v2360_v49 = vmul.f32 0.16666667, %v1847_v39  ;;  %2867 = vst [vmem:[%s3615_s17 + $0x540] sm:$0xff] %v2355_v44  ;;  %v1848_v50 = vmin.f32 %v1336_v40, 6.0 }
 0x105   : > { %2868 = vst [vmem:[%s3615_s17 + $0x548] sm:$0xff] %v2356_v45  ;;  %2869 = vst [vmem:[%s3615_s17 + $0x550] sm:$0xff] %v2357_v46  ;;  %v1849_v51 = vmin.f32 %v1337_v41, 6.0  ;;  %v826_v52 = vadd.f32 3.0, %v314_v30  ;;  %v827_v53 = vadd.f32 3.0, %v315_v31  ;;  %v828_v54 = vadd.f32 3.0, %v316_v36 }
 0x106   : > { %2870 = vst [vmem:[%s3615_s17 + $0x558] sm:$0xff] %v2358_v47  ;;  %2871 = vst [vmem:[%s3615_s17 + $0x560] sm:$0xff] %v2359_v48  ;;  %v829_v55 = vadd.f32 3.0, %v317_v37  ;;  %v830_v56 = vadd.f32 3.0, %v318_v42  ;;  %v831_v57 = vadd.f32 3.0, %v319_v43  ;;  %v320_v58 = vld [vmem:[%s3593_s30 + $0x5b0] sm:$0xff] }
 0x107   : > { %2872 = vst [vmem:[%s3615_s17 + $0x568] sm:$0xff] %v2360_v49  ;;  %v321_v59 = vld [vmem:[%s3593_s30 + $0x5b8] sm:$0xff]  ;;  %v2361_v60 = vmul.f32 0.16666667, %v1848_v50  ;;  %v2362_v61 = vmul.f32 0.16666667, %v1849_v51 }
 0x108   : > { %v1338_v62 = vmax.f32 %v826_v52, 0.0  ;;  %v1339_v63 = vmax.f32 %v827_v53, 0.0  ;;  %v1340_v0 = vmax.f32 %v828_v54, 0.0  ;;  %v1341_v1 = vmax.f32 %v829_v55, 0.0  ;;  %v322_v4 = vld [vmem:[%s3593_s30 + $0x5c0] sm:$0xff]  ;;  %v323_v9 = vld [vmem:[%s3593_s30 + $0x5c8] sm:$0xff] }
 0x109   : > { %v1342_v2 = vmax.f32 %v830_v56, 0.0  ;;  %v1343_v3 = vmax.f32 %v831_v57, 0.0  ;;  %2873 = vst [vmem:[%s3615_s17 + $0x570] sm:$0xff] %v2361_v60  ;;  %2874 = vst [vmem:[%s3615_s17 + $0x578] sm:$0xff] %v2362_v61  ;;  %v832_v7 = vadd.f32 3.0, %v320_v58  ;;  %v833_v8 = vadd.f32 3.0, %v321_v59 }
 0x10a   : > { %v1850_v5 = vmin.f32 %v1338_v62, 6.0  ;;  %v1851_v6 = vmin.f32 %v1339_v63, 6.0  ;;  %v324_v10 = vld [vmem:[%s3593_s30 + $0x5d0] sm:$0xff]  ;;  %v325_v11 = vld [vmem:[%s3593_s30 + $0x5d8] sm:$0xff]  ;;  %v1852_v12 = vmin.f32 %v1340_v0, 6.0  ;;  %v1853_v13 = vmin.f32 %v1341_v1, 6.0 }
 0x10b   : > { %v1854_v14 = vmin.f32 %v1342_v2, 6.0  ;;  %v1855_v15 = vmin.f32 %v1343_v3, 6.0  ;;  %v326_v16 = vld [vmem:[%s3593_s30 + $0x5e0] sm:$0xff]  ;;  %v327_v17 = vld [vmem:[%s3593_s30 + $0x5e8] sm:$0xff]  ;;  %v1344_v20 = vmax.f32 %v832_v7, 0.0  ;;  %v1345_v21 = vmax.f32 %v833_v8, 0.0 }
 0x10c   : > { %v2363_v18 = vmul.f32 0.16666667, %v1850_v5  ;;  %v2364_v19 = vmul.f32 0.16666667, %v1851_v6  ;;  %v2365_v22 = vmul.f32 0.16666667, %v1852_v12 }
 0x10d   : > { %v2366_v23 = vmul.f32 0.16666667, %v1853_v13  ;;  %v2367_v24 = vmul.f32 0.16666667, %v1854_v14  ;;  %v2368_v25 = vmul.f32 0.16666667, %v1855_v15 }
 0x10e   : > { %2875 = vst [vmem:[%s3615_s17 + $0x580] sm:$0xff] %v2363_v18  ;;  %2876 = vst [vmem:[%s3615_s17 + $0x588] sm:$0xff] %v2364_v19  ;;  %v1856_v26 = vmin.f32 %v1344_v20, 6.0  ;;  %v1857_v27 = vmin.f32 %v1345_v21, 6.0  ;;  %v834_v28 = vadd.f32 3.0, %v322_v4  ;;  %v835_v29 = vadd.f32 3.0, %v323_v9 }
 0x10f   : > { %2877 = vst [vmem:[%s3615_s17 + $0x590] sm:$0xff] %v2365_v22  ;;  %2878 = vst [vmem:[%s3615_s17 + $0x598] sm:$0xff] %v2366_v23  ;;  %v836_v30 = vadd.f32 3.0, %v324_v10  ;;  %v837_v31 = vadd.f32 3.0, %v325_v11  ;;  %v838_v32 = vadd.f32 3.0, %v326_v16  ;;  %v328_v33 = vld [vmem:[%s3593_s30 + $0x5f0] sm:$0xff] }
 0x110   : > { %2879 = vst [vmem:[%s3615_s17 + $0x5a0] sm:$0xff] %v2367_v24  ;;  %v329_v34 = vld [vmem:[%s3593_s30 + $0x5f8] sm:$0xff]  ;;  %2880 = vst [vmem:[%s3615_s17 + $0x5a8] sm:$0xff] %v2368_v25  ;;  %v2369_v35 = vmul.f32 0.16666667, %v1856_v26  ;;  %v1346_v37 = vmax.f32 %v834_v28, 0.0 }
 0x111   : > { %v2370_v36 = vmul.f32 0.16666667, %v1857_v27  ;;  %v839_v38 = vadd.f32 3.0, %v327_v17  ;;  %v1347_v39 = vmax.f32 %v835_v29, 0.0  ;;  %v1348_v40 = vmax.f32 %v836_v30, 0.0  ;;  %v330_v47 = vld [vmem:[%s3593_s30 + $0x600] sm:$0xff] }
 0x112   : > { %v1349_v41 = vmax.f32 %v837_v31, 0.0  ;;  %v1350_v42 = vmax.f32 %v838_v32, 0.0  ;;  %2881 = vst [vmem:[%s3615_s17 + $0x5b0] sm:$0xff] %v2369_v35  ;;  %v1858_v43 = vmin.f32 %v1346_v37, 6.0  ;;  %v840_v45 = vadd.f32 3.0, %v328_v33  ;;  %v331_v48 = vld [vmem:[%s3593_s30 + $0x608] sm:$0xff] }
 0x113   : > { %2882 = vst [vmem:[%s3615_s17 + $0x5b8] sm:$0xff] %v2370_v36  ;;  %v1351_v44 = vmax.f32 %v839_v38, 0.0  ;;  %v841_v46 = vadd.f32 3.0, %v329_v34  ;;  %v332_v49 = vld [vmem:[%s3593_s30 + $0x610] sm:$0xff]  ;;  %v1859_v50 = vmin.f32 %v1347_v39, 6.0  ;;  %v1860_v51 = vmin.f32 %v1348_v40, 6.0 }
 0x114   : > { %v1861_v52 = vmin.f32 %v1349_v41, 6.0  ;;  %v1862_v53 = vmin.f32 %v1350_v42, 6.0  ;;  %v333_v54 = vld [vmem:[%s3593_s30 + $0x618] sm:$0xff]  ;;  %v334_v55 = vld [vmem:[%s3593_s30 + $0x620] sm:$0xff]  ;;  %v2371_v56 = vmul.f32 0.16666667, %v1858_v43 }
 0x115   : > { %v1863_v57 = vmin.f32 %v1351_v44, 6.0  ;;  %v1352_v58 = vmax.f32 %v840_v45, 0.0  ;;  %v1353_v59 = vmax.f32 %v841_v46, 0.0  ;;  %v335_v60 = vld [vmem:[%s3593_s30 + $0x628] sm:$0xff]  ;;  %v2372_v61 = vmul.f32 0.16666667, %v1859_v50 }
 0x116   : > { %v2373_v62 = vmul.f32 0.16666667, %v1860_v51  ;;  %v2374_v63 = vmul.f32 0.16666667, %v1861_v52  ;;  %2883 = vst [vmem:[%s3615_s17 + $0x5c0] sm:$0xff] %v2371_v56  ;;  %v842_v4 = vadd.f32 3.0, %v330_v47 }
 0x117   : > { %v2375_v0 = vmul.f32 0.16666667, %v1862_v53  ;;  %v2376_v1 = vmul.f32 0.16666667, %v1863_v57  ;;  %v1864_v2 = vmin.f32 %v1352_v58, 6.0  ;;  %v1865_v3 = vmin.f32 %v1353_v59, 6.0 }
 0x118   : > { %2884 = vst [vmem:[%s3615_s17 + $0x5c8] sm:$0xff] %v2372_v61  ;;  %2885 = vst [vmem:[%s3615_s17 + $0x5d0] sm:$0xff] %v2373_v62  ;;  %v843_v5 = vadd.f32 3.0, %v331_v48  ;;  %v844_v6 = vadd.f32 3.0, %v332_v49  ;;  %v845_v7 = vadd.f32 3.0, %v333_v54  ;;  %v336_v8 = vld [vmem:[%s3593_s30 + $0x630] sm:$0xff] }
 0x119   : > { %2886 = vst [vmem:[%s3615_s17 + $0x5d8] sm:$0xff] %v2374_v63  ;;  %v337_v9 = vld [vmem:[%s3593_s30 + $0x638] sm:$0xff]  ;;  %2887 = vst [vmem:[%s3615_s17 + $0x5e0] sm:$0xff] %v2375_v0  ;;  %v2377_v10 = vmul.f32 0.16666667, %v1864_v2  ;;  %v846_v12 = vadd.f32 3.0, %v334_v55 }
 0x11a   : > { %2888 = vst [vmem:[%s3615_s17 + $0x5e8] sm:$0xff] %v2376_v1  ;;  %v2378_v11 = vmul.f32 0.16666667, %v1865_v3  ;;  %v847_v13 = vadd.f32 3.0, %v335_v60  ;;  %v1354_v14 = vmax.f32 %v842_v4, 0.0  ;;  %v1355_v15 = vmax.f32 %v843_v5, 0.0 }
 0x11b   : > { %v1356_v16 = vmax.f32 %v844_v6, 0.0  ;;  %v1357_v17 = vmax.f32 %v845_v7, 0.0  ;;  %2889 = vst [vmem:[%s3615_s17 + $0x5f0] sm:$0xff] %v2377_v10  ;;  %v1358_v18 = vmax.f32 %v846_v12, 0.0  ;;  %v848_v20 = vadd.f32 3.0, %v336_v8  ;;  %v338_v22 = vld [vmem:[%s3593_s30 + $0x640] sm:$0xff] }
 0x11c   : > { %2890 = vst [vmem:[%s3615_s17 + $0x5f8] sm:$0xff] %v2378_v11  ;;  %v1359_v19 = vmax.f32 %v847_v13, 0.0  ;;  %v849_v21 = vadd.f32 3.0, %v337_v9  ;;  %v339_v23 = vld [vmem:[%s3593_s30 + $0x648] sm:$0xff]  ;;  %v1866_v24 = vmin.f32 %v1354_v14, 6.0  ;;  %v1867_v25 = vmin.f32 %v1355_v15, 6.0 }
 0x11d   : > { %v1868_v26 = vmin.f32 %v1356_v16, 6.0  ;;  %v1869_v27 = vmin.f32 %v1357_v17, 6.0  ;;  %v340_v28 = vld [vmem:[%s3593_s30 + $0x650] sm:$0xff]  ;;  %v341_v29 = vld [vmem:[%s3593_s30 + $0x658] sm:$0xff]  ;;  %v1870_v30 = vmin.f32 %v1358_v18, 6.0  ;;  %v1360_v32 = vmax.f32 %v848_v20, 0.0 }
 0x11e   : > { %v1871_v31 = vmin.f32 %v1359_v19, 6.0  ;;  %v1361_v33 = vmax.f32 %v849_v21, 0.0  ;;  %v342_v34 = vld [vmem:[%s3593_s30 + $0x660] sm:$0xff]  ;;  %v343_v35 = vld [vmem:[%s3593_s30 + $0x668] sm:$0xff]  ;;  %v2379_v36 = vmul.f32 0.16666667, %v1866_v24 }
 0x11f   : > { %v2380_v37 = vmul.f32 0.16666667, %v1867_v25  ;;  %v2381_v38 = vmul.f32 0.16666667, %v1868_v26  ;;  %v2382_v39 = vmul.f32 0.16666667, %v1869_v27 }
 0x120   : > { %v2383_v40 = vmul.f32 0.16666667, %v1870_v30  ;;  %v2384_v41 = vmul.f32 0.16666667, %v1871_v31  ;;  %2891 = vst [vmem:[%s3615_s17 + $0x600] sm:$0xff] %v2379_v36  ;;  %v1872_v42 = vmin.f32 %v1360_v32, 6.0 }
 0x121   : > { %2892 = vst [vmem:[%s3615_s17 + $0x608] sm:$0xff] %v2380_v37  ;;  %2893 = vst [vmem:[%s3615_s17 + $0x610] sm:$0xff] %v2381_v38  ;;  %v1873_v43 = vmin.f32 %v1361_v33, 6.0  ;;  %v850_v44 = vadd.f32 3.0, %v338_v22  ;;  %v851_v45 = vadd.f32 3.0, %v339_v23  ;;  %v852_v46 = vadd.f32 3.0, %v340_v28 }
 0x122   : > { %2894 = vst [vmem:[%s3615_s17 + $0x618] sm:$0xff] %v2382_v39  ;;  %2895 = vst [vmem:[%s3615_s17 + $0x620] sm:$0xff] %v2383_v40  ;;  %v853_v47 = vadd.f32 3.0, %v341_v29  ;;  %v854_v48 = vadd.f32 3.0, %v342_v34  ;;  %v855_v49 = vadd.f32 3.0, %v343_v35  ;;  %v344_v50 = vld [vmem:[%s3593_s30 + $0x670] sm:$0xff] }
 0x123   : > { %2896 = vst [vmem:[%s3615_s17 + $0x628] sm:$0xff] %v2384_v41  ;;  %v345_v51 = vld [vmem:[%s3593_s30 + $0x678] sm:$0xff]  ;;  %v2385_v52 = vmul.f32 0.16666667, %v1872_v42  ;;  %v2386_v53 = vmul.f32 0.16666667, %v1873_v43 }
 0x124   : > { %v1362_v54 = vmax.f32 %v850_v44, 0.0  ;;  %v1363_v55 = vmax.f32 %v851_v45, 0.0  ;;  %v1364_v56 = vmax.f32 %v852_v46, 0.0  ;;  %v1365_v57 = vmax.f32 %v853_v47, 0.0  ;;  %v346_v60 = vld [vmem:[%s3593_s30 + $0x680] sm:$0xff]  ;;  %v347_v1 = vld [vmem:[%s3593_s30 + $0x688] sm:$0xff] }
 0x125   : > { %v1366_v58 = vmax.f32 %v854_v48, 0.0  ;;  %v1367_v59 = vmax.f32 %v855_v49, 0.0  ;;  %2897 = vst [vmem:[%s3615_s17 + $0x630] sm:$0xff] %v2385_v52  ;;  %2898 = vst [vmem:[%s3615_s17 + $0x638] sm:$0xff] %v2386_v53  ;;  %v856_v63 = vadd.f32 3.0, %v344_v50  ;;  %v857_v0 = vadd.f32 3.0, %v345_v51 }
 0x126   : > { %v1874_v61 = vmin.f32 %v1362_v54, 6.0  ;;  %v1875_v62 = vmin.f32 %v1363_v55, 6.0  ;;  %v348_v2 = vld [vmem:[%s3593_s30 + $0x690] sm:$0xff]  ;;  %v349_v3 = vld [vmem:[%s3593_s30 + $0x698] sm:$0xff]  ;;  %v1876_v4 = vmin.f32 %v1364_v56, 6.0  ;;  %v1877_v5 = vmin.f32 %v1365_v57, 6.0 }
 0x127   : > { %v1878_v6 = vmin.f32 %v1366_v58, 6.0  ;;  %v1879_v7 = vmin.f32 %v1367_v59, 6.0  ;;  %v350_v8 = vld [vmem:[%s3593_s30 + $0x6a0] sm:$0xff]  ;;  %v351_v9 = vld [vmem:[%s3593_s30 + $0x6a8] sm:$0xff]  ;;  %v1368_v12 = vmax.f32 %v856_v63, 0.0  ;;  %v1369_v13 = vmax.f32 %v857_v0, 0.0 }
 0x128   : > { %v2387_v10 = vmul.f32 0.16666667, %v1874_v61  ;;  %v2388_v11 = vmul.f32 0.16666667, %v1875_v62  ;;  %v2389_v14 = vmul.f32 0.16666667, %v1876_v4 }
 0x129   : > { %v2390_v15 = vmul.f32 0.16666667, %v1877_v5  ;;  %v2391_v16 = vmul.f32 0.16666667, %v1878_v6  ;;  %v2392_v17 = vmul.f32 0.16666667, %v1879_v7 }
 0x12a   : > { %2899 = vst [vmem:[%s3615_s17 + $0x640] sm:$0xff] %v2387_v10  ;;  %2900 = vst [vmem:[%s3615_s17 + $0x648] sm:$0xff] %v2388_v11  ;;  %v1880_v18 = vmin.f32 %v1368_v12, 6.0  ;;  %v1881_v19 = vmin.f32 %v1369_v13, 6.0  ;;  %v858_v20 = vadd.f32 3.0, %v346_v60  ;;  %v859_v21 = vadd.f32 3.0, %v347_v1 }
 0x12b   : > { %2901 = vst [vmem:[%s3615_s17 + $0x650] sm:$0xff] %v2389_v14  ;;  %2902 = vst [vmem:[%s3615_s17 + $0x658] sm:$0xff] %v2390_v15  ;;  %v860_v22 = vadd.f32 3.0, %v348_v2  ;;  %v861_v23 = vadd.f32 3.0, %v349_v3  ;;  %v862_v24 = vadd.f32 3.0, %v350_v8  ;;  %v352_v25 = vld [vmem:[%s3593_s30 + $0x6b0] sm:$0xff] }
 0x12c   : > { %2903 = vst [vmem:[%s3615_s17 + $0x660] sm:$0xff] %v2391_v16  ;;  %v353_v26 = vld [vmem:[%s3593_s30 + $0x6b8] sm:$0xff]  ;;  %2904 = vst [vmem:[%s3615_s17 + $0x668] sm:$0xff] %v2392_v17  ;;  %v2393_v27 = vmul.f32 0.16666667, %v1880_v18  ;;  %v1370_v29 = vmax.f32 %v858_v20, 0.0 }
 0x12d   : > { %v2394_v28 = vmul.f32 0.16666667, %v1881_v19  ;;  %v863_v30 = vadd.f32 3.0, %v351_v9  ;;  %v1371_v31 = vmax.f32 %v859_v21, 0.0  ;;  %v1372_v32 = vmax.f32 %v860_v22, 0.0  ;;  %v354_v39 = vld [vmem:[%s3593_s30 + $0x6c0] sm:$0xff] }
 0x12e   : > { %v1373_v33 = vmax.f32 %v861_v23, 0.0  ;;  %v1374_v34 = vmax.f32 %v862_v24, 0.0  ;;  %2905 = vst [vmem:[%s3615_s17 + $0x670] sm:$0xff] %v2393_v27  ;;  %v1882_v35 = vmin.f32 %v1370_v29, 6.0  ;;  %v864_v37 = vadd.f32 3.0, %v352_v25  ;;  %v355_v40 = vld [vmem:[%s3593_s30 + $0x6c8] sm:$0xff] }
 0x12f   : > { %2906 = vst [vmem:[%s3615_s17 + $0x678] sm:$0xff] %v2394_v28  ;;  %v1375_v36 = vmax.f32 %v863_v30, 0.0  ;;  %v865_v38 = vadd.f32 3.0, %v353_v26  ;;  %v356_v41 = vld [vmem:[%s3593_s30 + $0x6d0] sm:$0xff]  ;;  %v1883_v42 = vmin.f32 %v1371_v31, 6.0  ;;  %v1884_v43 = vmin.f32 %v1372_v32, 6.0 }
 0x130   : > { %v1885_v44 = vmin.f32 %v1373_v33, 6.0  ;;  %v1886_v45 = vmin.f32 %v1374_v34, 6.0  ;;  %v357_v46 = vld [vmem:[%s3593_s30 + $0x6d8] sm:$0xff]  ;;  %v358_v47 = vld [vmem:[%s3593_s30 + $0x6e0] sm:$0xff]  ;;  %v2395_v48 = vmul.f32 0.16666667, %v1882_v35 }
 0x131   : > { %v1887_v49 = vmin.f32 %v1375_v36, 6.0  ;;  %v1376_v50 = vmax.f32 %v864_v37, 0.0  ;;  %v1377_v51 = vmax.f32 %v865_v38, 0.0  ;;  %v359_v52 = vld [vmem:[%s3593_s30 + $0x6e8] sm:$0xff]  ;;  %v2396_v53 = vmul.f32 0.16666667, %v1883_v42 }
 0x132   : > { %v2397_v54 = vmul.f32 0.16666667, %v1884_v43  ;;  %v2398_v55 = vmul.f32 0.16666667, %v1885_v44  ;;  %2907 = vst [vmem:[%s3615_s17 + $0x680] sm:$0xff] %v2395_v48  ;;  %v866_v60 = vadd.f32 3.0, %v354_v39 }
 0x133   : > { %v2399_v56 = vmul.f32 0.16666667, %v1886_v45  ;;  %v2400_v57 = vmul.f32 0.16666667, %v1887_v49  ;;  %v1888_v58 = vmin.f32 %v1376_v50, 6.0  ;;  %v1889_v59 = vmin.f32 %v1377_v51, 6.0 }
 0x134   : > { %2908 = vst [vmem:[%s3615_s17 + $0x688] sm:$0xff] %v2396_v53  ;;  %2909 = vst [vmem:[%s3615_s17 + $0x690] sm:$0xff] %v2397_v54  ;;  %v867_v61 = vadd.f32 3.0, %v355_v40  ;;  %v868_v62 = vadd.f32 3.0, %v356_v41  ;;  %v869_v63 = vadd.f32 3.0, %v357_v46  ;;  %v360_v0 = vld [vmem:[%s3593_s30 + $0x6f0] sm:$0xff] }
 0x135   : > { %2910 = vst [vmem:[%s3615_s17 + $0x698] sm:$0xff] %v2398_v55  ;;  %v361_v1 = vld [vmem:[%s3593_s30 + $0x6f8] sm:$0xff]  ;;  %2911 = vst [vmem:[%s3615_s17 + $0x6a0] sm:$0xff] %v2399_v56  ;;  %v2401_v2 = vmul.f32 0.16666667, %v1888_v58  ;;  %v870_v4 = vadd.f32 3.0, %v358_v47 }
 0x136   : > { %2912 = vst [vmem:[%s3615_s17 + $0x6a8] sm:$0xff] %v2400_v57  ;;  %v2402_v3 = vmul.f32 0.16666667, %v1889_v59  ;;  %v871_v5 = vadd.f32 3.0, %v359_v52  ;;  %v1378_v6 = vmax.f32 %v866_v60, 0.0  ;;  %v1379_v7 = vmax.f32 %v867_v61, 0.0 }
 0x137   : > { %v1380_v8 = vmax.f32 %v868_v62, 0.0  ;;  %v1381_v9 = vmax.f32 %v869_v63, 0.0  ;;  %2913 = vst [vmem:[%s3615_s17 + $0x6b0] sm:$0xff] %v2401_v2  ;;  %v1382_v10 = vmax.f32 %v870_v4, 0.0  ;;  %v872_v12 = vadd.f32 3.0, %v360_v0  ;;  %v362_v14 = vld [vmem:[%s3593_s30 + $0x700] sm:$0xff] }
 0x138   : > { %2914 = vst [vmem:[%s3615_s17 + $0x6b8] sm:$0xff] %v2402_v3  ;;  %v1383_v11 = vmax.f32 %v871_v5, 0.0  ;;  %v873_v13 = vadd.f32 3.0, %v361_v1  ;;  %v363_v15 = vld [vmem:[%s3593_s30 + $0x708] sm:$0xff]  ;;  %v1890_v16 = vmin.f32 %v1378_v6, 6.0  ;;  %v1891_v17 = vmin.f32 %v1379_v7, 6.0 }
 0x139   : > { %v1892_v18 = vmin.f32 %v1380_v8, 6.0  ;;  %v1893_v19 = vmin.f32 %v1381_v9, 6.0  ;;  %v364_v20 = vld [vmem:[%s3593_s30 + $0x710] sm:$0xff]  ;;  %v365_v21 = vld [vmem:[%s3593_s30 + $0x718] sm:$0xff]  ;;  %v1894_v22 = vmin.f32 %v1382_v10, 6.0  ;;  %v1384_v24 = vmax.f32 %v872_v12, 0.0 }
 0x13a   : > { %v1895_v23 = vmin.f32 %v1383_v11, 6.0  ;;  %v1385_v25 = vmax.f32 %v873_v13, 0.0  ;;  %v366_v26 = vld [vmem:[%s3593_s30 + $0x720] sm:$0xff]  ;;  %v367_v27 = vld [vmem:[%s3593_s30 + $0x728] sm:$0xff]  ;;  %v2403_v28 = vmul.f32 0.16666667, %v1890_v16 }
 0x13b   : > { %v2404_v29 = vmul.f32 0.16666667, %v1891_v17  ;;  %v2405_v30 = vmul.f32 0.16666667, %v1892_v18  ;;  %v2406_v31 = vmul.f32 0.16666667, %v1893_v19 }
 0x13c   : > { %v2407_v32 = vmul.f32 0.16666667, %v1894_v22  ;;  %v2408_v33 = vmul.f32 0.16666667, %v1895_v23  ;;  %2915 = vst [vmem:[%s3615_s17 + $0x6c0] sm:$0xff] %v2403_v28  ;;  %v1896_v34 = vmin.f32 %v1384_v24, 6.0 }
 0x13d   : > { %2916 = vst [vmem:[%s3615_s17 + $0x6c8] sm:$0xff] %v2404_v29  ;;  %2917 = vst [vmem:[%s3615_s17 + $0x6d0] sm:$0xff] %v2405_v30  ;;  %v1897_v35 = vmin.f32 %v1385_v25, 6.0  ;;  %v874_v36 = vadd.f32 3.0, %v362_v14  ;;  %v875_v37 = vadd.f32 3.0, %v363_v15  ;;  %v876_v38 = vadd.f32 3.0, %v364_v20 }
 0x13e   : > { %2918 = vst [vmem:[%s3615_s17 + $0x6d8] sm:$0xff] %v2406_v31  ;;  %2919 = vst [vmem:[%s3615_s17 + $0x6e0] sm:$0xff] %v2407_v32  ;;  %v877_v39 = vadd.f32 3.0, %v365_v21  ;;  %v878_v40 = vadd.f32 3.0, %v366_v26  ;;  %v879_v41 = vadd.f32 3.0, %v367_v27  ;;  %v368_v42 = vld [vmem:[%s3593_s30 + $0x730] sm:$0xff] }
 0x13f   : > { %2920 = vst [vmem:[%s3615_s17 + $0x6e8] sm:$0xff] %v2408_v33  ;;  %v369_v43 = vld [vmem:[%s3593_s30 + $0x738] sm:$0xff]  ;;  %v2409_v44 = vmul.f32 0.16666667, %v1896_v34  ;;  %v2410_v45 = vmul.f32 0.16666667, %v1897_v35 }
 0x140   : > { %v1386_v46 = vmax.f32 %v874_v36, 0.0  ;;  %v1387_v47 = vmax.f32 %v875_v37, 0.0  ;;  %v1388_v48 = vmax.f32 %v876_v38, 0.0  ;;  %v1389_v49 = vmax.f32 %v877_v39, 0.0  ;;  %v370_v52 = vld [vmem:[%s3593_s30 + $0x740] sm:$0xff]  ;;  %v371_v57 = vld [vmem:[%s3593_s30 + $0x748] sm:$0xff] }
 0x141   : > { %v1390_v50 = vmax.f32 %v878_v40, 0.0  ;;  %v1391_v51 = vmax.f32 %v879_v41, 0.0  ;;  %2921 = vst [vmem:[%s3615_s17 + $0x6f0] sm:$0xff] %v2409_v44  ;;  %2922 = vst [vmem:[%s3615_s17 + $0x6f8] sm:$0xff] %v2410_v45  ;;  %v880_v55 = vadd.f32 3.0, %v368_v42  ;;  %v881_v56 = vadd.f32 3.0, %v369_v43 }
 0x142   : > { %v1898_v53 = vmin.f32 %v1386_v46, 6.0  ;;  %v1899_v54 = vmin.f32 %v1387_v47, 6.0  ;;  %v372_v58 = vld [vmem:[%s3593_s30 + $0x750] sm:$0xff]  ;;  %v373_v59 = vld [vmem:[%s3593_s30 + $0x758] sm:$0xff]  ;;  %v1900_v60 = vmin.f32 %v1388_v48, 6.0  ;;  %v1901_v61 = vmin.f32 %v1389_v49, 6.0 }
 0x143   : > { %v1902_v62 = vmin.f32 %v1390_v50, 6.0  ;;  %v1903_v63 = vmin.f32 %v1391_v51, 6.0  ;;  %v374_v0 = vld [vmem:[%s3593_s30 + $0x760] sm:$0xff]  ;;  %v375_v1 = vld [vmem:[%s3593_s30 + $0x768] sm:$0xff]  ;;  %v1392_v4 = vmax.f32 %v880_v55, 0.0  ;;  %v1393_v5 = vmax.f32 %v881_v56, 0.0 }
 0x144   : > { %v2411_v2 = vmul.f32 0.16666667, %v1898_v53  ;;  %v2412_v3 = vmul.f32 0.16666667, %v1899_v54  ;;  %v2413_v6 = vmul.f32 0.16666667, %v1900_v60 }
 0x145   : > { %v2414_v7 = vmul.f32 0.16666667, %v1901_v61  ;;  %v2415_v8 = vmul.f32 0.16666667, %v1902_v62  ;;  %v2416_v9 = vmul.f32 0.16666667, %v1903_v63 }
 0x146   : > { %2923 = vst [vmem:[%s3615_s17 + $0x700] sm:$0xff] %v2411_v2  ;;  %2924 = vst [vmem:[%s3615_s17 + $0x708] sm:$0xff] %v2412_v3  ;;  %v1904_v10 = vmin.f32 %v1392_v4, 6.0  ;;  %v1905_v11 = vmin.f32 %v1393_v5, 6.0  ;;  %v882_v12 = vadd.f32 3.0, %v370_v52  ;;  %v883_v13 = vadd.f32 3.0, %v371_v57 }
 0x147   : > { %2925 = vst [vmem:[%s3615_s17 + $0x710] sm:$0xff] %v2413_v6  ;;  %2926 = vst [vmem:[%s3615_s17 + $0x718] sm:$0xff] %v2414_v7  ;;  %v884_v14 = vadd.f32 3.0, %v372_v58  ;;  %v885_v15 = vadd.f32 3.0, %v373_v59  ;;  %v886_v16 = vadd.f32 3.0, %v374_v0  ;;  %v376_v17 = vld [vmem:[%s3593_s30 + $0x770] sm:$0xff] }
 0x148   : > { %2927 = vst [vmem:[%s3615_s17 + $0x720] sm:$0xff] %v2415_v8  ;;  %v377_v18 = vld [vmem:[%s3593_s30 + $0x778] sm:$0xff]  ;;  %2928 = vst [vmem:[%s3615_s17 + $0x728] sm:$0xff] %v2416_v9  ;;  %v2417_v19 = vmul.f32 0.16666667, %v1904_v10  ;;  %v1394_v21 = vmax.f32 %v882_v12, 0.0 }
 0x149   : > { %v2418_v20 = vmul.f32 0.16666667, %v1905_v11  ;;  %v887_v22 = vadd.f32 3.0, %v375_v1  ;;  %v1395_v23 = vmax.f32 %v883_v13, 0.0  ;;  %v1396_v24 = vmax.f32 %v884_v14, 0.0  ;;  %v378_v31 = vld [vmem:[%s3593_s30 + $0x780] sm:$0xff] }
 0x14a   : > { %v1397_v25 = vmax.f32 %v885_v15, 0.0  ;;  %v1398_v26 = vmax.f32 %v886_v16, 0.0  ;;  %2929 = vst [vmem:[%s3615_s17 + $0x730] sm:$0xff] %v2417_v19  ;;  %v1906_v27 = vmin.f32 %v1394_v21, 6.0  ;;  %v888_v29 = vadd.f32 3.0, %v376_v17  ;;  %v379_v32 = vld [vmem:[%s3593_s30 + $0x788] sm:$0xff] }
 0x14b   : > { %2930 = vst [vmem:[%s3615_s17 + $0x738] sm:$0xff] %v2418_v20  ;;  %v1399_v28 = vmax.f32 %v887_v22, 0.0  ;;  %v889_v30 = vadd.f32 3.0, %v377_v18  ;;  %v380_v33 = vld [vmem:[%s3593_s30 + $0x790] sm:$0xff]  ;;  %v1907_v34 = vmin.f32 %v1395_v23, 6.0  ;;  %v1908_v35 = vmin.f32 %v1396_v24, 6.0 }
 0x14c   : > { %v1909_v36 = vmin.f32 %v1397_v25, 6.0  ;;  %v1910_v37 = vmin.f32 %v1398_v26, 6.0  ;;  %v381_v38 = vld [vmem:[%s3593_s30 + $0x798] sm:$0xff]  ;;  %v382_v39 = vld [vmem:[%s3593_s30 + $0x7a0] sm:$0xff]  ;;  %v2419_v40 = vmul.f32 0.16666667, %v1906_v27 }
 0x14d   : > { %v1911_v41 = vmin.f32 %v1399_v28, 6.0  ;;  %v1400_v42 = vmax.f32 %v888_v29, 0.0  ;;  %v1401_v43 = vmax.f32 %v889_v30, 0.0  ;;  %v383_v44 = vld [vmem:[%s3593_s30 + $0x7a8] sm:$0xff]  ;;  %v2420_v45 = vmul.f32 0.16666667, %v1907_v34 }
 0x14e   : > { %v2421_v46 = vmul.f32 0.16666667, %v1908_v35  ;;  %v2422_v47 = vmul.f32 0.16666667, %v1909_v36  ;;  %2931 = vst [vmem:[%s3615_s17 + $0x740] sm:$0xff] %v2419_v40  ;;  %v890_v52 = vadd.f32 3.0, %v378_v31 }
 0x14f   : > { %v2423_v48 = vmul.f32 0.16666667, %v1910_v37  ;;  %v2424_v49 = vmul.f32 0.16666667, %v1911_v41  ;;  %v1912_v50 = vmin.f32 %v1400_v42, 6.0  ;;  %v1913_v51 = vmin.f32 %v1401_v43, 6.0 }
 0x150   : > { %2932 = vst [vmem:[%s3615_s17 + $0x748] sm:$0xff] %v2420_v45  ;;  %2933 = vst [vmem:[%s3615_s17 + $0x750] sm:$0xff] %v2421_v46  ;;  %v891_v53 = vadd.f32 3.0, %v379_v32  ;;  %v892_v54 = vadd.f32 3.0, %v380_v33  ;;  %v893_v55 = vadd.f32 3.0, %v381_v38  ;;  %v384_v56 = vld [vmem:[%s3593_s30 + $0x7b0] sm:$0xff] }
 0x151   : > { %2934 = vst [vmem:[%s3615_s17 + $0x758] sm:$0xff] %v2422_v47  ;;  %v385_v57 = vld [vmem:[%s3593_s30 + $0x7b8] sm:$0xff]  ;;  %2935 = vst [vmem:[%s3615_s17 + $0x760] sm:$0xff] %v2423_v48  ;;  %v2425_v58 = vmul.f32 0.16666667, %v1912_v50  ;;  %v894_v60 = vadd.f32 3.0, %v382_v39 }
 0x152   : > { %2936 = vst [vmem:[%s3615_s17 + $0x768] sm:$0xff] %v2424_v49  ;;  %v2426_v59 = vmul.f32 0.16666667, %v1913_v51  ;;  %v895_v61 = vadd.f32 3.0, %v383_v44  ;;  %v1402_v62 = vmax.f32 %v890_v52, 0.0  ;;  %v1403_v63 = vmax.f32 %v891_v53, 0.0 }
 0x153   : > { %v1404_v0 = vmax.f32 %v892_v54, 0.0  ;;  %v1405_v1 = vmax.f32 %v893_v55, 0.0  ;;  %2937 = vst [vmem:[%s3615_s17 + $0x770] sm:$0xff] %v2425_v58  ;;  %v1406_v2 = vmax.f32 %v894_v60, 0.0  ;;  %v896_v4 = vadd.f32 3.0, %v384_v56  ;;  %v386_v6 = vld [vmem:[%s3593_s30 + $0x7c0] sm:$0xff] }
 0x154   : > { %2938 = vst [vmem:[%s3615_s17 + $0x778] sm:$0xff] %v2426_v59  ;;  %v1407_v3 = vmax.f32 %v895_v61, 0.0  ;;  %v897_v5 = vadd.f32 3.0, %v385_v57  ;;  %v387_v7 = vld [vmem:[%s3593_s30 + $0x7c8] sm:$0xff]  ;;  %v1914_v8 = vmin.f32 %v1402_v62, 6.0  ;;  %v1915_v9 = vmin.f32 %v1403_v63, 6.0 }
 0x155   : > { %v1916_v10 = vmin.f32 %v1404_v0, 6.0  ;;  %v1917_v11 = vmin.f32 %v1405_v1, 6.0  ;;  %v388_v12 = vld [vmem:[%s3593_s30 + $0x7d0] sm:$0xff]  ;;  %v389_v13 = vld [vmem:[%s3593_s30 + $0x7d8] sm:$0xff]  ;;  %v1918_v14 = vmin.f32 %v1406_v2, 6.0  ;;  %v1408_v16 = vmax.f32 %v896_v4, 0.0 }
 0x156   : > { %v1919_v15 = vmin.f32 %v1407_v3, 6.0  ;;  %v1409_v17 = vmax.f32 %v897_v5, 0.0  ;;  %v390_v18 = vld [vmem:[%s3593_s30 + $0x7e0] sm:$0xff]  ;;  %v391_v19 = vld [vmem:[%s3593_s30 + $0x7e8] sm:$0xff]  ;;  %v2427_v20 = vmul.f32 0.16666667, %v1914_v8 }
 0x157   : > { %v2428_v21 = vmul.f32 0.16666667, %v1915_v9  ;;  %v2429_v22 = vmul.f32 0.16666667, %v1916_v10  ;;  %v2430_v23 = vmul.f32 0.16666667, %v1917_v11 }
 0x158   : > { %v2431_v24 = vmul.f32 0.16666667, %v1918_v14  ;;  %v2432_v25 = vmul.f32 0.16666667, %v1919_v15  ;;  %2939 = vst [vmem:[%s3615_s17 + $0x780] sm:$0xff] %v2427_v20  ;;  %v1920_v26 = vmin.f32 %v1408_v16, 6.0 }
 0x159   : > { %2940 = vst [vmem:[%s3615_s17 + $0x788] sm:$0xff] %v2428_v21  ;;  %2941 = vst [vmem:[%s3615_s17 + $0x790] sm:$0xff] %v2429_v22  ;;  %v1921_v27 = vmin.f32 %v1409_v17, 6.0  ;;  %v898_v28 = vadd.f32 3.0, %v386_v6  ;;  %v899_v29 = vadd.f32 3.0, %v387_v7  ;;  %v900_v30 = vadd.f32 3.0, %v388_v12 }
 0x15a   : > { %2942 = vst [vmem:[%s3615_s17 + $0x798] sm:$0xff] %v2430_v23  ;;  %2943 = vst [vmem:[%s3615_s17 + $0x7a0] sm:$0xff] %v2431_v24  ;;  %v901_v31 = vadd.f32 3.0, %v389_v13  ;;  %v902_v32 = vadd.f32 3.0, %v390_v18  ;;  %v903_v33 = vadd.f32 3.0, %v391_v19  ;;  %v392_v34 = vld [vmem:[%s3593_s30 + $0x7f0] sm:$0xff] }
 0x15b   : > { %2944 = vst [vmem:[%s3615_s17 + $0x7a8] sm:$0xff] %v2432_v25  ;;  %v393_v35 = vld [vmem:[%s3593_s30 + $0x7f8] sm:$0xff]  ;;  %v2433_v36 = vmul.f32 0.16666667, %v1920_v26  ;;  %v2434_v37 = vmul.f32 0.16666667, %v1921_v27 }
 0x15c   : > { %v1410_v38 = vmax.f32 %v898_v28, 0.0  ;;  %v1411_v39 = vmax.f32 %v899_v29, 0.0  ;;  %v1412_v40 = vmax.f32 %v900_v30, 0.0  ;;  %v1413_v41 = vmax.f32 %v901_v31, 0.0  ;;  %v394_v44 = vld [vmem:[%s3593_s30 + $0x800] sm:$0xff]  ;;  %v395_v49 = vld [vmem:[%s3593_s30 + $0x808] sm:$0xff] }
 0x15d   : > { %v1414_v42 = vmax.f32 %v902_v32, 0.0  ;;  %v1415_v43 = vmax.f32 %v903_v33, 0.0  ;;  %2945 = vst [vmem:[%s3615_s17 + $0x7b0] sm:$0xff] %v2433_v36  ;;  %2946 = vst [vmem:[%s3615_s17 + $0x7b8] sm:$0xff] %v2434_v37  ;;  %v904_v47 = vadd.f32 3.0, %v392_v34  ;;  %v905_v48 = vadd.f32 3.0, %v393_v35 }
 0x15e   : > { %v1922_v45 = vmin.f32 %v1410_v38, 6.0  ;;  %v1923_v46 = vmin.f32 %v1411_v39, 6.0  ;;  %v396_v50 = vld [vmem:[%s3593_s30 + $0x810] sm:$0xff]  ;;  %v397_v51 = vld [vmem:[%s3593_s30 + $0x818] sm:$0xff]  ;;  %v1924_v52 = vmin.f32 %v1412_v40, 6.0  ;;  %v1925_v53 = vmin.f32 %v1413_v41, 6.0 }
 0x15f   : > { %v1926_v54 = vmin.f32 %v1414_v42, 6.0  ;;  %v1927_v55 = vmin.f32 %v1415_v43, 6.0  ;;  %v398_v56 = vld [vmem:[%s3593_s30 + $0x820] sm:$0xff]  ;;  %v399_v57 = vld [vmem:[%s3593_s30 + $0x828] sm:$0xff]  ;;  %v1416_v60 = vmax.f32 %v904_v47, 0.0  ;;  %v1417_v61 = vmax.f32 %v905_v48, 0.0 }
 0x160   : > { %v2435_v58 = vmul.f32 0.16666667, %v1922_v45  ;;  %v2436_v59 = vmul.f32 0.16666667, %v1923_v46  ;;  %v2437_v62 = vmul.f32 0.16666667, %v1924_v52 }
 0x161   : > { %v2438_v63 = vmul.f32 0.16666667, %v1925_v53  ;;  %v2439_v0 = vmul.f32 0.16666667, %v1926_v54  ;;  %v2440_v1 = vmul.f32 0.16666667, %v1927_v55 }
 0x162   : > { %2947 = vst [vmem:[%s3615_s17 + $0x7c0] sm:$0xff] %v2435_v58  ;;  %2948 = vst [vmem:[%s3615_s17 + $0x7c8] sm:$0xff] %v2436_v59  ;;  %v1928_v2 = vmin.f32 %v1416_v60, 6.0  ;;  %v1929_v3 = vmin.f32 %v1417_v61, 6.0  ;;  %v906_v4 = vadd.f32 3.0, %v394_v44  ;;  %v907_v5 = vadd.f32 3.0, %v395_v49 }
 0x163   : > { %2949 = vst [vmem:[%s3615_s17 + $0x7d0] sm:$0xff] %v2437_v62  ;;  %2950 = vst [vmem:[%s3615_s17 + $0x7d8] sm:$0xff] %v2438_v63  ;;  %v908_v6 = vadd.f32 3.0, %v396_v50  ;;  %v909_v7 = vadd.f32 3.0, %v397_v51  ;;  %v910_v8 = vadd.f32 3.0, %v398_v56  ;;  %v400_v9 = vld [vmem:[%s3593_s30 + $0x830] sm:$0xff] }
 0x164   : > { %2951 = vst [vmem:[%s3615_s17 + $0x7e0] sm:$0xff] %v2439_v0  ;;  %v401_v10 = vld [vmem:[%s3593_s30 + $0x838] sm:$0xff]  ;;  %2952 = vst [vmem:[%s3615_s17 + $0x7e8] sm:$0xff] %v2440_v1  ;;  %v2441_v11 = vmul.f32 0.16666667, %v1928_v2  ;;  %v1418_v13 = vmax.f32 %v906_v4, 0.0 }
 0x165   : > { %v2442_v12 = vmul.f32 0.16666667, %v1929_v3  ;;  %v911_v14 = vadd.f32 3.0, %v399_v57  ;;  %v1419_v15 = vmax.f32 %v907_v5, 0.0  ;;  %v1420_v16 = vmax.f32 %v908_v6, 0.0  ;;  %v402_v23 = vld [vmem:[%s3593_s30 + $0x840] sm:$0xff] }
 0x166   : > { %v1421_v17 = vmax.f32 %v909_v7, 0.0  ;;  %v1422_v18 = vmax.f32 %v910_v8, 0.0  ;;  %2953 = vst [vmem:[%s3615_s17 + $0x7f0] sm:$0xff] %v2441_v11  ;;  %v1930_v19 = vmin.f32 %v1418_v13, 6.0  ;;  %v912_v21 = vadd.f32 3.0, %v400_v9  ;;  %v403_v24 = vld [vmem:[%s3593_s30 + $0x848] sm:$0xff] }
 0x167   : > { %2954 = vst [vmem:[%s3615_s17 + $0x7f8] sm:$0xff] %v2442_v12  ;;  %v1423_v20 = vmax.f32 %v911_v14, 0.0  ;;  %v913_v22 = vadd.f32 3.0, %v401_v10  ;;  %v404_v25 = vld [vmem:[%s3593_s30 + $0x850] sm:$0xff]  ;;  %v1931_v26 = vmin.f32 %v1419_v15, 6.0  ;;  %v1932_v27 = vmin.f32 %v1420_v16, 6.0 }
 0x168   : > { %v1933_v28 = vmin.f32 %v1421_v17, 6.0  ;;  %v1934_v29 = vmin.f32 %v1422_v18, 6.0  ;;  %v405_v30 = vld [vmem:[%s3593_s30 + $0x858] sm:$0xff]  ;;  %v406_v31 = vld [vmem:[%s3593_s30 + $0x860] sm:$0xff]  ;;  %v2443_v32 = vmul.f32 0.16666667, %v1930_v19 }
 0x169   : > { %v1935_v33 = vmin.f32 %v1423_v20, 6.0  ;;  %v1424_v34 = vmax.f32 %v912_v21, 0.0  ;;  %v1425_v35 = vmax.f32 %v913_v22, 0.0  ;;  %v407_v36 = vld [vmem:[%s3593_s30 + $0x868] sm:$0xff]  ;;  %v2444_v37 = vmul.f32 0.16666667, %v1931_v26 }
 0x16a   : > { %v2445_v38 = vmul.f32 0.16666667, %v1932_v27  ;;  %v2446_v39 = vmul.f32 0.16666667, %v1933_v28  ;;  %2955 = vst [vmem:[%s3615_s17 + $0x800] sm:$0xff] %v2443_v32  ;;  %v914_v44 = vadd.f32 3.0, %v402_v23 }
 0x16b   : > { %v2447_v40 = vmul.f32 0.16666667, %v1934_v29  ;;  %v2448_v41 = vmul.f32 0.16666667, %v1935_v33  ;;  %v1936_v42 = vmin.f32 %v1424_v34, 6.0  ;;  %v1937_v43 = vmin.f32 %v1425_v35, 6.0 }
 0x16c   : > { %2956 = vst [vmem:[%s3615_s17 + $0x808] sm:$0xff] %v2444_v37  ;;  %2957 = vst [vmem:[%s3615_s17 + $0x810] sm:$0xff] %v2445_v38  ;;  %v915_v45 = vadd.f32 3.0, %v403_v24  ;;  %v916_v46 = vadd.f32 3.0, %v404_v25  ;;  %v917_v47 = vadd.f32 3.0, %v405_v30  ;;  %v408_v48 = vld [vmem:[%s3593_s30 + $0x870] sm:$0xff] }
 0x16d   : > { %2958 = vst [vmem:[%s3615_s17 + $0x818] sm:$0xff] %v2446_v39  ;;  %v409_v49 = vld [vmem:[%s3593_s30 + $0x878] sm:$0xff]  ;;  %2959 = vst [vmem:[%s3615_s17 + $0x820] sm:$0xff] %v2447_v40  ;;  %v2449_v50 = vmul.f32 0.16666667, %v1936_v42  ;;  %v918_v52 = vadd.f32 3.0, %v406_v31 }
 0x16e   : > { %2960 = vst [vmem:[%s3615_s17 + $0x828] sm:$0xff] %v2448_v41  ;;  %v2450_v51 = vmul.f32 0.16666667, %v1937_v43  ;;  %v919_v53 = vadd.f32 3.0, %v407_v36  ;;  %v1426_v54 = vmax.f32 %v914_v44, 0.0  ;;  %v1427_v55 = vmax.f32 %v915_v45, 0.0 }
 0x16f   : > { %v1428_v56 = vmax.f32 %v916_v46, 0.0  ;;  %v1429_v57 = vmax.f32 %v917_v47, 0.0  ;;  %2961 = vst [vmem:[%s3615_s17 + $0x830] sm:$0xff] %v2449_v50  ;;  %v1430_v58 = vmax.f32 %v918_v52, 0.0  ;;  %v920_v60 = vadd.f32 3.0, %v408_v48  ;;  %v410_v62 = vld [vmem:[%s3593_s30 + $0x880] sm:$0xff] }
 0x170   : > { %2962 = vst [vmem:[%s3615_s17 + $0x838] sm:$0xff] %v2450_v51  ;;  %v1431_v59 = vmax.f32 %v919_v53, 0.0  ;;  %v921_v61 = vadd.f32 3.0, %v409_v49  ;;  %v411_v63 = vld [vmem:[%s3593_s30 + $0x888] sm:$0xff]  ;;  %v1938_v0 = vmin.f32 %v1426_v54, 6.0  ;;  %v1939_v1 = vmin.f32 %v1427_v55, 6.0 }
 0x171   : > { %v1940_v2 = vmin.f32 %v1428_v56, 6.0  ;;  %v1941_v3 = vmin.f32 %v1429_v57, 6.0  ;;  %v412_v4 = vld [vmem:[%s3593_s30 + $0x890] sm:$0xff]  ;;  %v413_v5 = vld [vmem:[%s3593_s30 + $0x898] sm:$0xff]  ;;  %v1942_v6 = vmin.f32 %v1430_v58, 6.0  ;;  %v1432_v8 = vmax.f32 %v920_v60, 0.0 }
 0x172   : > { %v1943_v7 = vmin.f32 %v1431_v59, 6.0  ;;  %v1433_v9 = vmax.f32 %v921_v61, 0.0  ;;  %v414_v10 = vld [vmem:[%s3593_s30 + $0x8a0] sm:$0xff]  ;;  %v415_v11 = vld [vmem:[%s3593_s30 + $0x8a8] sm:$0xff]  ;;  %v2451_v12 = vmul.f32 0.16666667, %v1938_v0 }
 0x173   : > { %v2452_v13 = vmul.f32 0.16666667, %v1939_v1  ;;  %v2453_v14 = vmul.f32 0.16666667, %v1940_v2  ;;  %v2454_v15 = vmul.f32 0.16666667, %v1941_v3 }
 0x174   : > { %v2455_v16 = vmul.f32 0.16666667, %v1942_v6  ;;  %v2456_v17 = vmul.f32 0.16666667, %v1943_v7  ;;  %2963 = vst [vmem:[%s3615_s17 + $0x840] sm:$0xff] %v2451_v12  ;;  %v1944_v18 = vmin.f32 %v1432_v8, 6.0 }
 0x175   : > { %2964 = vst [vmem:[%s3615_s17 + $0x848] sm:$0xff] %v2452_v13  ;;  %2965 = vst [vmem:[%s3615_s17 + $0x850] sm:$0xff] %v2453_v14  ;;  %v1945_v19 = vmin.f32 %v1433_v9, 6.0  ;;  %v922_v20 = vadd.f32 3.0, %v410_v62  ;;  %v923_v21 = vadd.f32 3.0, %v411_v63  ;;  %v924_v22 = vadd.f32 3.0, %v412_v4 }
 0x176   : > { %2966 = vst [vmem:[%s3615_s17 + $0x858] sm:$0xff] %v2454_v15  ;;  %2967 = vst [vmem:[%s3615_s17 + $0x860] sm:$0xff] %v2455_v16  ;;  %v925_v23 = vadd.f32 3.0, %v413_v5  ;;  %v926_v24 = vadd.f32 3.0, %v414_v10  ;;  %v927_v25 = vadd.f32 3.0, %v415_v11  ;;  %v416_v26 = vld [vmem:[%s3593_s30 + $0x8b0] sm:$0xff] }
 0x177   : > { %2968 = vst [vmem:[%s3615_s17 + $0x868] sm:$0xff] %v2456_v17  ;;  %v417_v27 = vld [vmem:[%s3593_s30 + $0x8b8] sm:$0xff]  ;;  %v2457_v28 = vmul.f32 0.16666667, %v1944_v18  ;;  %v2458_v29 = vmul.f32 0.16666667, %v1945_v19 }
 0x178   : > { %v1434_v30 = vmax.f32 %v922_v20, 0.0  ;;  %v1435_v31 = vmax.f32 %v923_v21, 0.0  ;;  %v1436_v32 = vmax.f32 %v924_v22, 0.0  ;;  %v1437_v33 = vmax.f32 %v925_v23, 0.0  ;;  %v418_v36 = vld [vmem:[%s3593_s30 + $0x8c0] sm:$0xff]  ;;  %v419_v41 = vld [vmem:[%s3593_s30 + $0x8c8] sm:$0xff] }
 0x179   : > { %v1438_v34 = vmax.f32 %v926_v24, 0.0  ;;  %v1439_v35 = vmax.f32 %v927_v25, 0.0  ;;  %2969 = vst [vmem:[%s3615_s17 + $0x870] sm:$0xff] %v2457_v28  ;;  %2970 = vst [vmem:[%s3615_s17 + $0x878] sm:$0xff] %v2458_v29  ;;  %v928_v39 = vadd.f32 3.0, %v416_v26  ;;  %v929_v40 = vadd.f32 3.0, %v417_v27 }
 0x17a   : > { %v1946_v37 = vmin.f32 %v1434_v30, 6.0  ;;  %v1947_v38 = vmin.f32 %v1435_v31, 6.0  ;;  %v420_v42 = vld [vmem:[%s3593_s30 + $0x8d0] sm:$0xff]  ;;  %v421_v43 = vld [vmem:[%s3593_s30 + $0x8d8] sm:$0xff]  ;;  %v1948_v44 = vmin.f32 %v1436_v32, 6.0  ;;  %v1949_v45 = vmin.f32 %v1437_v33, 6.0 }
 0x17b   : > { %v1950_v46 = vmin.f32 %v1438_v34, 6.0  ;;  %v1951_v47 = vmin.f32 %v1439_v35, 6.0  ;;  %v422_v48 = vld [vmem:[%s3593_s30 + $0x8e0] sm:$0xff]  ;;  %v423_v49 = vld [vmem:[%s3593_s30 + $0x8e8] sm:$0xff]  ;;  %v1440_v52 = vmax.f32 %v928_v39, 0.0  ;;  %v1441_v53 = vmax.f32 %v929_v40, 0.0 }
 0x17c   : > { %v2459_v50 = vmul.f32 0.16666667, %v1946_v37  ;;  %v2460_v51 = vmul.f32 0.16666667, %v1947_v38  ;;  %v2461_v54 = vmul.f32 0.16666667, %v1948_v44 }
 0x17d   : > { %v2462_v55 = vmul.f32 0.16666667, %v1949_v45  ;;  %v2463_v56 = vmul.f32 0.16666667, %v1950_v46  ;;  %v2464_v57 = vmul.f32 0.16666667, %v1951_v47 }
 0x17e   : > { %2971 = vst [vmem:[%s3615_s17 + $0x880] sm:$0xff] %v2459_v50  ;;  %2972 = vst [vmem:[%s3615_s17 + $0x888] sm:$0xff] %v2460_v51  ;;  %v1952_v58 = vmin.f32 %v1440_v52, 6.0  ;;  %v1953_v59 = vmin.f32 %v1441_v53, 6.0  ;;  %v930_v60 = vadd.f32 3.0, %v418_v36  ;;  %v931_v61 = vadd.f32 3.0, %v419_v41 }
 0x17f   : > { %2973 = vst [vmem:[%s3615_s17 + $0x890] sm:$0xff] %v2461_v54  ;;  %2974 = vst [vmem:[%s3615_s17 + $0x898] sm:$0xff] %v2462_v55  ;;  %v932_v62 = vadd.f32 3.0, %v420_v42  ;;  %v933_v63 = vadd.f32 3.0, %v421_v43  ;;  %v934_v0 = vadd.f32 3.0, %v422_v48  ;;  %v424_v1 = vld [vmem:[%s3593_s30 + $0x8f0] sm:$0xff] }
 0x180   : > { %2975 = vst [vmem:[%s3615_s17 + $0x8a0] sm:$0xff] %v2463_v56  ;;  %v425_v2 = vld [vmem:[%s3593_s30 + $0x8f8] sm:$0xff]  ;;  %2976 = vst [vmem:[%s3615_s17 + $0x8a8] sm:$0xff] %v2464_v57  ;;  %v2465_v3 = vmul.f32 0.16666667, %v1952_v58  ;;  %v1442_v5 = vmax.f32 %v930_v60, 0.0 }
 0x181   : > { %v2466_v4 = vmul.f32 0.16666667, %v1953_v59  ;;  %v935_v6 = vadd.f32 3.0, %v423_v49  ;;  %v1443_v7 = vmax.f32 %v931_v61, 0.0  ;;  %v1444_v8 = vmax.f32 %v932_v62, 0.0  ;;  %v426_v15 = vld [vmem:[%s3593_s30 + $0x900] sm:$0xff] }
 0x182   : > { %v1445_v9 = vmax.f32 %v933_v63, 0.0  ;;  %v1446_v10 = vmax.f32 %v934_v0, 0.0  ;;  %2977 = vst [vmem:[%s3615_s17 + $0x8b0] sm:$0xff] %v2465_v3  ;;  %v1954_v11 = vmin.f32 %v1442_v5, 6.0  ;;  %v936_v13 = vadd.f32 3.0, %v424_v1  ;;  %v427_v16 = vld [vmem:[%s3593_s30 + $0x908] sm:$0xff] }
 0x183   : > { %2978 = vst [vmem:[%s3615_s17 + $0x8b8] sm:$0xff] %v2466_v4  ;;  %v1447_v12 = vmax.f32 %v935_v6, 0.0  ;;  %v937_v14 = vadd.f32 3.0, %v425_v2  ;;  %v428_v17 = vld [vmem:[%s3593_s30 + $0x910] sm:$0xff]  ;;  %v1955_v18 = vmin.f32 %v1443_v7, 6.0  ;;  %v1956_v19 = vmin.f32 %v1444_v8, 6.0 }
 0x184   : > { %v1957_v20 = vmin.f32 %v1445_v9, 6.0  ;;  %v1958_v21 = vmin.f32 %v1446_v10, 6.0  ;;  %v429_v22 = vld [vmem:[%s3593_s30 + $0x918] sm:$0xff]  ;;  %v430_v23 = vld [vmem:[%s3593_s30 + $0x920] sm:$0xff]  ;;  %v2467_v24 = vmul.f32 0.16666667, %v1954_v11 }
 0x185   : > { %v1959_v25 = vmin.f32 %v1447_v12, 6.0  ;;  %v1448_v26 = vmax.f32 %v936_v13, 0.0  ;;  %v1449_v27 = vmax.f32 %v937_v14, 0.0  ;;  %v431_v28 = vld [vmem:[%s3593_s30 + $0x928] sm:$0xff]  ;;  %v2468_v29 = vmul.f32 0.16666667, %v1955_v18 }
 0x186   : > { %v2469_v30 = vmul.f32 0.16666667, %v1956_v19  ;;  %v2470_v31 = vmul.f32 0.16666667, %v1957_v20  ;;  %2979 = vst [vmem:[%s3615_s17 + $0x8c0] sm:$0xff] %v2467_v24  ;;  %v938_v36 = vadd.f32 3.0, %v426_v15 }
 0x187   : > { %v2471_v32 = vmul.f32 0.16666667, %v1958_v21  ;;  %v2472_v33 = vmul.f32 0.16666667, %v1959_v25  ;;  %v1960_v34 = vmin.f32 %v1448_v26, 6.0  ;;  %v1961_v35 = vmin.f32 %v1449_v27, 6.0 }
 0x188   : > { %2980 = vst [vmem:[%s3615_s17 + $0x8c8] sm:$0xff] %v2468_v29  ;;  %2981 = vst [vmem:[%s3615_s17 + $0x8d0] sm:$0xff] %v2469_v30  ;;  %v939_v37 = vadd.f32 3.0, %v427_v16  ;;  %v940_v38 = vadd.f32 3.0, %v428_v17  ;;  %v941_v39 = vadd.f32 3.0, %v429_v22  ;;  %v432_v40 = vld [vmem:[%s3593_s30 + $0x930] sm:$0xff] }
 0x189   : > { %2982 = vst [vmem:[%s3615_s17 + $0x8d8] sm:$0xff] %v2470_v31  ;;  %v433_v41 = vld [vmem:[%s3593_s30 + $0x938] sm:$0xff]  ;;  %2983 = vst [vmem:[%s3615_s17 + $0x8e0] sm:$0xff] %v2471_v32  ;;  %v2473_v42 = vmul.f32 0.16666667, %v1960_v34  ;;  %v942_v44 = vadd.f32 3.0, %v430_v23 }
 0x18a   : > { %2984 = vst [vmem:[%s3615_s17 + $0x8e8] sm:$0xff] %v2472_v33  ;;  %v2474_v43 = vmul.f32 0.16666667, %v1961_v35  ;;  %v943_v45 = vadd.f32 3.0, %v431_v28  ;;  %v1450_v46 = vmax.f32 %v938_v36, 0.0  ;;  %v1451_v47 = vmax.f32 %v939_v37, 0.0 }
 0x18b   : > { %v1452_v48 = vmax.f32 %v940_v38, 0.0  ;;  %v1453_v49 = vmax.f32 %v941_v39, 0.0  ;;  %2985 = vst [vmem:[%s3615_s17 + $0x8f0] sm:$0xff] %v2473_v42  ;;  %v1454_v50 = vmax.f32 %v942_v44, 0.0  ;;  %v944_v52 = vadd.f32 3.0, %v432_v40  ;;  %v434_v54 = vld [vmem:[%s3593_s30 + $0x940] sm:$0xff] }
 0x18c   : > { %2986 = vst [vmem:[%s3615_s17 + $0x8f8] sm:$0xff] %v2474_v43  ;;  %v1455_v51 = vmax.f32 %v943_v45, 0.0  ;;  %v945_v53 = vadd.f32 3.0, %v433_v41  ;;  %v435_v55 = vld [vmem:[%s3593_s30 + $0x948] sm:$0xff]  ;;  %v1962_v56 = vmin.f32 %v1450_v46, 6.0  ;;  %v1963_v57 = vmin.f32 %v1451_v47, 6.0 }
 0x18d   : > { %v1964_v58 = vmin.f32 %v1452_v48, 6.0  ;;  %v1965_v59 = vmin.f32 %v1453_v49, 6.0  ;;  %v436_v60 = vld [vmem:[%s3593_s30 + $0x950] sm:$0xff]  ;;  %v437_v61 = vld [vmem:[%s3593_s30 + $0x958] sm:$0xff]  ;;  %v1966_v62 = vmin.f32 %v1454_v50, 6.0  ;;  %v1456_v0 = vmax.f32 %v944_v52, 0.0 }
 0x18e   : > { %v1967_v63 = vmin.f32 %v1455_v51, 6.0  ;;  %v1457_v1 = vmax.f32 %v945_v53, 0.0  ;;  %v438_v2 = vld [vmem:[%s3593_s30 + $0x960] sm:$0xff]  ;;  %v439_v3 = vld [vmem:[%s3593_s30 + $0x968] sm:$0xff]  ;;  %v2475_v4 = vmul.f32 0.16666667, %v1962_v56 }
 0x18f   : > { %v2476_v5 = vmul.f32 0.16666667, %v1963_v57  ;;  %v2477_v6 = vmul.f32 0.16666667, %v1964_v58  ;;  %v2478_v7 = vmul.f32 0.16666667, %v1965_v59 }
 0x190   : > { %v2479_v8 = vmul.f32 0.16666667, %v1966_v62  ;;  %v2480_v9 = vmul.f32 0.16666667, %v1967_v63  ;;  %2987 = vst [vmem:[%s3615_s17 + $0x900] sm:$0xff] %v2475_v4  ;;  %v1968_v10 = vmin.f32 %v1456_v0, 6.0 }
 0x191   : > { %2988 = vst [vmem:[%s3615_s17 + $0x908] sm:$0xff] %v2476_v5  ;;  %2989 = vst [vmem:[%s3615_s17 + $0x910] sm:$0xff] %v2477_v6  ;;  %v1969_v11 = vmin.f32 %v1457_v1, 6.0  ;;  %v946_v12 = vadd.f32 3.0, %v434_v54  ;;  %v947_v13 = vadd.f32 3.0, %v435_v55  ;;  %v948_v14 = vadd.f32 3.0, %v436_v60 }
 0x192   : > { %2990 = vst [vmem:[%s3615_s17 + $0x918] sm:$0xff] %v2478_v7  ;;  %2991 = vst [vmem:[%s3615_s17 + $0x920] sm:$0xff] %v2479_v8  ;;  %v949_v15 = vadd.f32 3.0, %v437_v61  ;;  %v950_v16 = vadd.f32 3.0, %v438_v2  ;;  %v951_v17 = vadd.f32 3.0, %v439_v3  ;;  %v440_v18 = vld [vmem:[%s3593_s30 + $0x970] sm:$0xff] }
 0x193   : > { %2992 = vst [vmem:[%s3615_s17 + $0x928] sm:$0xff] %v2480_v9  ;;  %v441_v19 = vld [vmem:[%s3593_s30 + $0x978] sm:$0xff]  ;;  %v2481_v20 = vmul.f32 0.16666667, %v1968_v10  ;;  %v2482_v21 = vmul.f32 0.16666667, %v1969_v11 }
 0x194   : > { %v1458_v22 = vmax.f32 %v946_v12, 0.0  ;;  %v1459_v23 = vmax.f32 %v947_v13, 0.0  ;;  %v1460_v24 = vmax.f32 %v948_v14, 0.0  ;;  %v1461_v25 = vmax.f32 %v949_v15, 0.0  ;;  %v442_v28 = vld [vmem:[%s3593_s30 + $0x980] sm:$0xff]  ;;  %v443_v33 = vld [vmem:[%s3593_s30 + $0x988] sm:$0xff] }
 0x195   : > { %v1462_v26 = vmax.f32 %v950_v16, 0.0  ;;  %v1463_v27 = vmax.f32 %v951_v17, 0.0  ;;  %2993 = vst [vmem:[%s3615_s17 + $0x930] sm:$0xff] %v2481_v20  ;;  %2994 = vst [vmem:[%s3615_s17 + $0x938] sm:$0xff] %v2482_v21  ;;  %v952_v31 = vadd.f32 3.0, %v440_v18  ;;  %v953_v32 = vadd.f32 3.0, %v441_v19 }
 0x196   : > { %v1970_v29 = vmin.f32 %v1458_v22, 6.0  ;;  %v1971_v30 = vmin.f32 %v1459_v23, 6.0  ;;  %v444_v34 = vld [vmem:[%s3593_s30 + $0x990] sm:$0xff]  ;;  %v445_v35 = vld [vmem:[%s3593_s30 + $0x998] sm:$0xff]  ;;  %v1972_v36 = vmin.f32 %v1460_v24, 6.0  ;;  %v1973_v37 = vmin.f32 %v1461_v25, 6.0 }
 0x197   : > { %v1974_v38 = vmin.f32 %v1462_v26, 6.0  ;;  %v1975_v39 = vmin.f32 %v1463_v27, 6.0  ;;  %v446_v40 = vld [vmem:[%s3593_s30 + $0x9a0] sm:$0xff]  ;;  %v447_v41 = vld [vmem:[%s3593_s30 + $0x9a8] sm:$0xff]  ;;  %v1464_v44 = vmax.f32 %v952_v31, 0.0  ;;  %v1465_v45 = vmax.f32 %v953_v32, 0.0 }
 0x198   : > { %v2483_v42 = vmul.f32 0.16666667, %v1970_v29  ;;  %v2484_v43 = vmul.f32 0.16666667, %v1971_v30  ;;  %v2485_v46 = vmul.f32 0.16666667, %v1972_v36 }
 0x199   : > { %v2486_v47 = vmul.f32 0.16666667, %v1973_v37  ;;  %v2487_v48 = vmul.f32 0.16666667, %v1974_v38  ;;  %v2488_v49 = vmul.f32 0.16666667, %v1975_v39 }
 0x19a   : > { %2995 = vst [vmem:[%s3615_s17 + $0x940] sm:$0xff] %v2483_v42  ;;  %2996 = vst [vmem:[%s3615_s17 + $0x948] sm:$0xff] %v2484_v43  ;;  %v1976_v50 = vmin.f32 %v1464_v44, 6.0  ;;  %v1977_v51 = vmin.f32 %v1465_v45, 6.0  ;;  %v954_v52 = vadd.f32 3.0, %v442_v28  ;;  %v955_v53 = vadd.f32 3.0, %v443_v33 }
 0x19b   : > { %2997 = vst [vmem:[%s3615_s17 + $0x950] sm:$0xff] %v2485_v46  ;;  %2998 = vst [vmem:[%s3615_s17 + $0x958] sm:$0xff] %v2486_v47  ;;  %v956_v54 = vadd.f32 3.0, %v444_v34  ;;  %v957_v55 = vadd.f32 3.0, %v445_v35  ;;  %v958_v56 = vadd.f32 3.0, %v446_v40  ;;  %v448_v57 = vld [vmem:[%s3593_s30 + $0x9b0] sm:$0xff] }
 0x19c   : > { %2999 = vst [vmem:[%s3615_s17 + $0x960] sm:$0xff] %v2487_v48  ;;  %v449_v58 = vld [vmem:[%s3593_s30 + $0x9b8] sm:$0xff]  ;;  %3000 = vst [vmem:[%s3615_s17 + $0x968] sm:$0xff] %v2488_v49  ;;  %v2489_v59 = vmul.f32 0.16666667, %v1976_v50  ;;  %v1466_v61 = vmax.f32 %v954_v52, 0.0 }
 0x19d   : > { %v2490_v60 = vmul.f32 0.16666667, %v1977_v51  ;;  %v959_v62 = vadd.f32 3.0, %v447_v41  ;;  %v1467_v63 = vmax.f32 %v955_v53, 0.0  ;;  %v1468_v0 = vmax.f32 %v956_v54, 0.0  ;;  %v450_v7 = vld [vmem:[%s3593_s30 + $0x9c0] sm:$0xff] }
 0x19e   : > { %v1469_v1 = vmax.f32 %v957_v55, 0.0  ;;  %v1470_v2 = vmax.f32 %v958_v56, 0.0  ;;  %3001 = vst [vmem:[%s3615_s17 + $0x970] sm:$0xff] %v2489_v59  ;;  %v1978_v3 = vmin.f32 %v1466_v61, 6.0  ;;  %v960_v5 = vadd.f32 3.0, %v448_v57  ;;  %v451_v8 = vld [vmem:[%s3593_s30 + $0x9c8] sm:$0xff] }
 0x19f   : > { %3002 = vst [vmem:[%s3615_s17 + $0x978] sm:$0xff] %v2490_v60  ;;  %v1471_v4 = vmax.f32 %v959_v62, 0.0  ;;  %v961_v6 = vadd.f32 3.0, %v449_v58  ;;  %v452_v9 = vld [vmem:[%s3593_s30 + $0x9d0] sm:$0xff]  ;;  %v1979_v10 = vmin.f32 %v1467_v63, 6.0  ;;  %v1980_v11 = vmin.f32 %v1468_v0, 6.0 }
 0x1a0   : > { %v1981_v12 = vmin.f32 %v1469_v1, 6.0  ;;  %v1982_v13 = vmin.f32 %v1470_v2, 6.0  ;;  %v453_v14 = vld [vmem:[%s3593_s30 + $0x9d8] sm:$0xff]  ;;  %v454_v15 = vld [vmem:[%s3593_s30 + $0x9e0] sm:$0xff]  ;;  %v2491_v16 = vmul.f32 0.16666667, %v1978_v3 }
 0x1a1   : > { %v1983_v17 = vmin.f32 %v1471_v4, 6.0  ;;  %v1472_v18 = vmax.f32 %v960_v5, 0.0  ;;  %v1473_v19 = vmax.f32 %v961_v6, 0.0  ;;  %v455_v20 = vld [vmem:[%s3593_s30 + $0x9e8] sm:$0xff]  ;;  %v2492_v21 = vmul.f32 0.16666667, %v1979_v10 }
 0x1a2   : > { %v2493_v22 = vmul.f32 0.16666667, %v1980_v11  ;;  %v2494_v23 = vmul.f32 0.16666667, %v1981_v12  ;;  %3003 = vst [vmem:[%s3615_s17 + $0x980] sm:$0xff] %v2491_v16  ;;  %v962_v28 = vadd.f32 3.0, %v450_v7 }
 0x1a3   : > { %v2495_v24 = vmul.f32 0.16666667, %v1982_v13  ;;  %v2496_v25 = vmul.f32 0.16666667, %v1983_v17  ;;  %v1984_v26 = vmin.f32 %v1472_v18, 6.0  ;;  %v1985_v27 = vmin.f32 %v1473_v19, 6.0 }
 0x1a4   : > { %3004 = vst [vmem:[%s3615_s17 + $0x988] sm:$0xff] %v2492_v21  ;;  %3005 = vst [vmem:[%s3615_s17 + $0x990] sm:$0xff] %v2493_v22  ;;  %v963_v29 = vadd.f32 3.0, %v451_v8  ;;  %v964_v30 = vadd.f32 3.0, %v452_v9  ;;  %v965_v31 = vadd.f32 3.0, %v453_v14  ;;  %v456_v32 = vld [vmem:[%s3593_s30 + $0x9f0] sm:$0xff] }
 0x1a5   : > { %3006 = vst [vmem:[%s3615_s17 + $0x998] sm:$0xff] %v2494_v23  ;;  %v457_v33 = vld [vmem:[%s3593_s30 + $0x9f8] sm:$0xff]  ;;  %3007 = vst [vmem:[%s3615_s17 + $0x9a0] sm:$0xff] %v2495_v24  ;;  %v2497_v34 = vmul.f32 0.16666667, %v1984_v26  ;;  %v966_v36 = vadd.f32 3.0, %v454_v15 }
 0x1a6   : > { %3008 = vst [vmem:[%s3615_s17 + $0x9a8] sm:$0xff] %v2496_v25  ;;  %v2498_v35 = vmul.f32 0.16666667, %v1985_v27  ;;  %v967_v37 = vadd.f32 3.0, %v455_v20  ;;  %v1474_v38 = vmax.f32 %v962_v28, 0.0  ;;  %v1475_v39 = vmax.f32 %v963_v29, 0.0 }
 0x1a7   : > { %v1476_v40 = vmax.f32 %v964_v30, 0.0  ;;  %v1477_v41 = vmax.f32 %v965_v31, 0.0  ;;  %3009 = vst [vmem:[%s3615_s17 + $0x9b0] sm:$0xff] %v2497_v34  ;;  %v1478_v42 = vmax.f32 %v966_v36, 0.0  ;;  %v968_v44 = vadd.f32 3.0, %v456_v32  ;;  %v458_v46 = vld [vmem:[%s3593_s30 + $0xa00] sm:$0xff] }
 0x1a8   : > { %3010 = vst [vmem:[%s3615_s17 + $0x9b8] sm:$0xff] %v2498_v35  ;;  %v1479_v43 = vmax.f32 %v967_v37, 0.0  ;;  %v969_v45 = vadd.f32 3.0, %v457_v33  ;;  %v459_v47 = vld [vmem:[%s3593_s30 + $0xa08] sm:$0xff]  ;;  %v1986_v48 = vmin.f32 %v1474_v38, 6.0  ;;  %v1987_v49 = vmin.f32 %v1475_v39, 6.0 }
 0x1a9   : > { %v1988_v50 = vmin.f32 %v1476_v40, 6.0  ;;  %v1989_v51 = vmin.f32 %v1477_v41, 6.0  ;;  %v460_v52 = vld [vmem:[%s3593_s30 + $0xa10] sm:$0xff]  ;;  %v461_v53 = vld [vmem:[%s3593_s30 + $0xa18] sm:$0xff]  ;;  %v1990_v54 = vmin.f32 %v1478_v42, 6.0  ;;  %v1480_v56 = vmax.f32 %v968_v44, 0.0 }
 0x1aa   : > { %v1991_v55 = vmin.f32 %v1479_v43, 6.0  ;;  %v1481_v57 = vmax.f32 %v969_v45, 0.0  ;;  %v462_v58 = vld [vmem:[%s3593_s30 + $0xa20] sm:$0xff]  ;;  %v463_v59 = vld [vmem:[%s3593_s30 + $0xa28] sm:$0xff]  ;;  %v2499_v60 = vmul.f32 0.16666667, %v1986_v48 }
 0x1ab   : > { %v2500_v61 = vmul.f32 0.16666667, %v1987_v49  ;;  %v2501_v62 = vmul.f32 0.16666667, %v1988_v50  ;;  %v2502_v63 = vmul.f32 0.16666667, %v1989_v51 }
 0x1ac   : > { %v2503_v0 = vmul.f32 0.16666667, %v1990_v54  ;;  %v2504_v1 = vmul.f32 0.16666667, %v1991_v55  ;;  %3011 = vst [vmem:[%s3615_s17 + $0x9c0] sm:$0xff] %v2499_v60  ;;  %v1992_v2 = vmin.f32 %v1480_v56, 6.0 }
 0x1ad   : > { %3012 = vst [vmem:[%s3615_s17 + $0x9c8] sm:$0xff] %v2500_v61  ;;  %3013 = vst [vmem:[%s3615_s17 + $0x9d0] sm:$0xff] %v2501_v62  ;;  %v1993_v3 = vmin.f32 %v1481_v57, 6.0  ;;  %v970_v4 = vadd.f32 3.0, %v458_v46  ;;  %v971_v5 = vadd.f32 3.0, %v459_v47  ;;  %v972_v6 = vadd.f32 3.0, %v460_v52 }
 0x1ae   : > { %3014 = vst [vmem:[%s3615_s17 + $0x9d8] sm:$0xff] %v2502_v63  ;;  %3015 = vst [vmem:[%s3615_s17 + $0x9e0] sm:$0xff] %v2503_v0  ;;  %v973_v7 = vadd.f32 3.0, %v461_v53  ;;  %v974_v8 = vadd.f32 3.0, %v462_v58  ;;  %v975_v9 = vadd.f32 3.0, %v463_v59  ;;  %v464_v10 = vld [vmem:[%s3593_s30 + $0xa30] sm:$0xff] }
 0x1af   : > { %3016 = vst [vmem:[%s3615_s17 + $0x9e8] sm:$0xff] %v2504_v1  ;;  %v465_v11 = vld [vmem:[%s3593_s30 + $0xa38] sm:$0xff]  ;;  %v2505_v12 = vmul.f32 0.16666667, %v1992_v2  ;;  %v2506_v13 = vmul.f32 0.16666667, %v1993_v3 }
 0x1b0   : > { %v1482_v14 = vmax.f32 %v970_v4, 0.0  ;;  %v1483_v15 = vmax.f32 %v971_v5, 0.0  ;;  %v1484_v16 = vmax.f32 %v972_v6, 0.0  ;;  %v1485_v17 = vmax.f32 %v973_v7, 0.0  ;;  %v466_v20 = vld [vmem:[%s3593_s30 + $0xa40] sm:$0xff]  ;;  %v467_v25 = vld [vmem:[%s3593_s30 + $0xa48] sm:$0xff] }
 0x1b1   : > { %v1486_v18 = vmax.f32 %v974_v8, 0.0  ;;  %v1487_v19 = vmax.f32 %v975_v9, 0.0  ;;  %3017 = vst [vmem:[%s3615_s17 + $0x9f0] sm:$0xff] %v2505_v12  ;;  %3018 = vst [vmem:[%s3615_s17 + $0x9f8] sm:$0xff] %v2506_v13  ;;  %v976_v23 = vadd.f32 3.0, %v464_v10  ;;  %v977_v24 = vadd.f32 3.0, %v465_v11 }
 0x1b2   : > { %v1994_v21 = vmin.f32 %v1482_v14, 6.0  ;;  %v1995_v22 = vmin.f32 %v1483_v15, 6.0  ;;  %v468_v26 = vld [vmem:[%s3593_s30 + $0xa50] sm:$0xff]  ;;  %v469_v27 = vld [vmem:[%s3593_s30 + $0xa58] sm:$0xff]  ;;  %v1996_v28 = vmin.f32 %v1484_v16, 6.0  ;;  %v1997_v29 = vmin.f32 %v1485_v17, 6.0 }
 0x1b3   : > { %v1998_v30 = vmin.f32 %v1486_v18, 6.0  ;;  %v1999_v31 = vmin.f32 %v1487_v19, 6.0  ;;  %v470_v32 = vld [vmem:[%s3593_s30 + $0xa60] sm:$0xff]  ;;  %v471_v33 = vld [vmem:[%s3593_s30 + $0xa68] sm:$0xff]  ;;  %v1488_v36 = vmax.f32 %v976_v23, 0.0  ;;  %v1489_v37 = vmax.f32 %v977_v24, 0.0 }
 0x1b4   : > { %v2507_v34 = vmul.f32 0.16666667, %v1994_v21  ;;  %v2508_v35 = vmul.f32 0.16666667, %v1995_v22  ;;  %v2509_v38 = vmul.f32 0.16666667, %v1996_v28 }
 0x1b5   : > { %v2510_v39 = vmul.f32 0.16666667, %v1997_v29  ;;  %v2511_v40 = vmul.f32 0.16666667, %v1998_v30  ;;  %v2512_v41 = vmul.f32 0.16666667, %v1999_v31 }
 0x1b6   : > { %3019 = vst [vmem:[%s3615_s17 + $0xa00] sm:$0xff] %v2507_v34  ;;  %3020 = vst [vmem:[%s3615_s17 + $0xa08] sm:$0xff] %v2508_v35  ;;  %v2000_v42 = vmin.f32 %v1488_v36, 6.0  ;;  %v2001_v43 = vmin.f32 %v1489_v37, 6.0  ;;  %v978_v44 = vadd.f32 3.0, %v466_v20  ;;  %v979_v45 = vadd.f32 3.0, %v467_v25 }
 0x1b7   : > { %3021 = vst [vmem:[%s3615_s17 + $0xa10] sm:$0xff] %v2509_v38  ;;  %3022 = vst [vmem:[%s3615_s17 + $0xa18] sm:$0xff] %v2510_v39  ;;  %v980_v46 = vadd.f32 3.0, %v468_v26  ;;  %v981_v47 = vadd.f32 3.0, %v469_v27  ;;  %v982_v48 = vadd.f32 3.0, %v470_v32  ;;  %v472_v49 = vld [vmem:[%s3593_s30 + $0xa70] sm:$0xff] }
 0x1b8   : > { %3023 = vst [vmem:[%s3615_s17 + $0xa20] sm:$0xff] %v2511_v40  ;;  %v473_v50 = vld [vmem:[%s3593_s30 + $0xa78] sm:$0xff]  ;;  %3024 = vst [vmem:[%s3615_s17 + $0xa28] sm:$0xff] %v2512_v41  ;;  %v2513_v51 = vmul.f32 0.16666667, %v2000_v42  ;;  %v1490_v53 = vmax.f32 %v978_v44, 0.0 }
 0x1b9   : > { %v2514_v52 = vmul.f32 0.16666667, %v2001_v43  ;;  %v983_v54 = vadd.f32 3.0, %v471_v33  ;;  %v1491_v55 = vmax.f32 %v979_v45, 0.0  ;;  %v1492_v56 = vmax.f32 %v980_v46, 0.0  ;;  %v474_v63 = vld [vmem:[%s3593_s30 + $0xa80] sm:$0xff] }
 0x1ba   : > { %v1493_v57 = vmax.f32 %v981_v47, 0.0  ;;  %v1494_v58 = vmax.f32 %v982_v48, 0.0  ;;  %3025 = vst [vmem:[%s3615_s17 + $0xa30] sm:$0xff] %v2513_v51  ;;  %v2002_v59 = vmin.f32 %v1490_v53, 6.0  ;;  %v984_v61 = vadd.f32 3.0, %v472_v49  ;;  %v475_v0 = vld [vmem:[%s3593_s30 + $0xa88] sm:$0xff] }
 0x1bb   : > { %3026 = vst [vmem:[%s3615_s17 + $0xa38] sm:$0xff] %v2514_v52  ;;  %v1495_v60 = vmax.f32 %v983_v54, 0.0  ;;  %v985_v62 = vadd.f32 3.0, %v473_v50  ;;  %v476_v1 = vld [vmem:[%s3593_s30 + $0xa90] sm:$0xff]  ;;  %v2003_v2 = vmin.f32 %v1491_v55, 6.0  ;;  %v2004_v3 = vmin.f32 %v1492_v56, 6.0 }
 0x1bc   : > { %v2005_v4 = vmin.f32 %v1493_v57, 6.0  ;;  %v2006_v5 = vmin.f32 %v1494_v58, 6.0  ;;  %v477_v6 = vld [vmem:[%s3593_s30 + $0xa98] sm:$0xff]  ;;  %v478_v7 = vld [vmem:[%s3593_s30 + $0xaa0] sm:$0xff]  ;;  %v2515_v8 = vmul.f32 0.16666667, %v2002_v59 }
 0x1bd   : > { %v2007_v9 = vmin.f32 %v1495_v60, 6.0  ;;  %v1496_v10 = vmax.f32 %v984_v61, 0.0  ;;  %v1497_v11 = vmax.f32 %v985_v62, 0.0  ;;  %v479_v12 = vld [vmem:[%s3593_s30 + $0xaa8] sm:$0xff]  ;;  %v2516_v13 = vmul.f32 0.16666667, %v2003_v2 }
 0x1be   : > { %v2517_v14 = vmul.f32 0.16666667, %v2004_v3  ;;  %v2518_v15 = vmul.f32 0.16666667, %v2005_v4  ;;  %3027 = vst [vmem:[%s3615_s17 + $0xa40] sm:$0xff] %v2515_v8  ;;  %v986_v20 = vadd.f32 3.0, %v474_v63 }
 0x1bf   : > { %v2519_v16 = vmul.f32 0.16666667, %v2006_v5  ;;  %v2520_v17 = vmul.f32 0.16666667, %v2007_v9  ;;  %v2008_v18 = vmin.f32 %v1496_v10, 6.0  ;;  %v2009_v19 = vmin.f32 %v1497_v11, 6.0 }
 0x1c0   : > { %3028 = vst [vmem:[%s3615_s17 + $0xa48] sm:$0xff] %v2516_v13  ;;  %3029 = vst [vmem:[%s3615_s17 + $0xa50] sm:$0xff] %v2517_v14  ;;  %v987_v21 = vadd.f32 3.0, %v475_v0  ;;  %v988_v22 = vadd.f32 3.0, %v476_v1  ;;  %v989_v23 = vadd.f32 3.0, %v477_v6  ;;  %v480_v24 = vld [vmem:[%s3593_s30 + $0xab0] sm:$0xff] }
 0x1c1   : > { %3030 = vst [vmem:[%s3615_s17 + $0xa58] sm:$0xff] %v2518_v15  ;;  %v481_v25 = vld [vmem:[%s3593_s30 + $0xab8] sm:$0xff]  ;;  %3031 = vst [vmem:[%s3615_s17 + $0xa60] sm:$0xff] %v2519_v16  ;;  %v2521_v26 = vmul.f32 0.16666667, %v2008_v18  ;;  %v990_v28 = vadd.f32 3.0, %v478_v7 }
 0x1c2   : > { %3032 = vst [vmem:[%s3615_s17 + $0xa68] sm:$0xff] %v2520_v17  ;;  %v2522_v27 = vmul.f32 0.16666667, %v2009_v19  ;;  %v991_v29 = vadd.f32 3.0, %v479_v12  ;;  %v1498_v30 = vmax.f32 %v986_v20, 0.0  ;;  %v1499_v31 = vmax.f32 %v987_v21, 0.0 }
 0x1c3   : > { %v1500_v32 = vmax.f32 %v988_v22, 0.0  ;;  %v1501_v33 = vmax.f32 %v989_v23, 0.0  ;;  %3033 = vst [vmem:[%s3615_s17 + $0xa70] sm:$0xff] %v2521_v26  ;;  %v1502_v34 = vmax.f32 %v990_v28, 0.0  ;;  %v992_v36 = vadd.f32 3.0, %v480_v24  ;;  %v482_v38 = vld [vmem:[%s3593_s30 + $0xac0] sm:$0xff] }
 0x1c4   : > { %3034 = vst [vmem:[%s3615_s17 + $0xa78] sm:$0xff] %v2522_v27  ;;  %v1503_v35 = vmax.f32 %v991_v29, 0.0  ;;  %v993_v37 = vadd.f32 3.0, %v481_v25  ;;  %v483_v39 = vld [vmem:[%s3593_s30 + $0xac8] sm:$0xff]  ;;  %v2010_v40 = vmin.f32 %v1498_v30, 6.0  ;;  %v2011_v41 = vmin.f32 %v1499_v31, 6.0 }
 0x1c5   : > { %v2012_v42 = vmin.f32 %v1500_v32, 6.0  ;;  %v2013_v43 = vmin.f32 %v1501_v33, 6.0  ;;  %v484_v44 = vld [vmem:[%s3593_s30 + $0xad0] sm:$0xff]  ;;  %v485_v45 = vld [vmem:[%s3593_s30 + $0xad8] sm:$0xff]  ;;  %v2014_v46 = vmin.f32 %v1502_v34, 6.0  ;;  %v1504_v48 = vmax.f32 %v992_v36, 0.0 }
 0x1c6   : > { %v2015_v47 = vmin.f32 %v1503_v35, 6.0  ;;  %v1505_v49 = vmax.f32 %v993_v37, 0.0  ;;  %v486_v50 = vld [vmem:[%s3593_s30 + $0xae0] sm:$0xff]  ;;  %v487_v51 = vld [vmem:[%s3593_s30 + $0xae8] sm:$0xff]  ;;  %v2523_v52 = vmul.f32 0.16666667, %v2010_v40 }
 0x1c7   : > { %v2524_v53 = vmul.f32 0.16666667, %v2011_v41  ;;  %v2525_v54 = vmul.f32 0.16666667, %v2012_v42  ;;  %v2526_v55 = vmul.f32 0.16666667, %v2013_v43 }
 0x1c8   : > { %v2527_v56 = vmul.f32 0.16666667, %v2014_v46  ;;  %v2528_v57 = vmul.f32 0.16666667, %v2015_v47  ;;  %3035 = vst [vmem:[%s3615_s17 + $0xa80] sm:$0xff] %v2523_v52  ;;  %v2016_v58 = vmin.f32 %v1504_v48, 6.0 }
 0x1c9   : > { %3036 = vst [vmem:[%s3615_s17 + $0xa88] sm:$0xff] %v2524_v53  ;;  %3037 = vst [vmem:[%s3615_s17 + $0xa90] sm:$0xff] %v2525_v54  ;;  %v2017_v59 = vmin.f32 %v1505_v49, 6.0  ;;  %v994_v60 = vadd.f32 3.0, %v482_v38  ;;  %v995_v61 = vadd.f32 3.0, %v483_v39  ;;  %v996_v62 = vadd.f32 3.0, %v484_v44 }
 0x1ca   : > { %3038 = vst [vmem:[%s3615_s17 + $0xa98] sm:$0xff] %v2526_v55  ;;  %3039 = vst [vmem:[%s3615_s17 + $0xaa0] sm:$0xff] %v2527_v56  ;;  %v997_v63 = vadd.f32 3.0, %v485_v45  ;;  %v998_v0 = vadd.f32 3.0, %v486_v50  ;;  %v999_v1 = vadd.f32 3.0, %v487_v51  ;;  %v488_v2 = vld [vmem:[%s3593_s30 + $0xaf0] sm:$0xff] }
 0x1cb   : > { %3040 = vst [vmem:[%s3615_s17 + $0xaa8] sm:$0xff] %v2528_v57  ;;  %v489_v3 = vld [vmem:[%s3593_s30 + $0xaf8] sm:$0xff]  ;;  %v2529_v4 = vmul.f32 0.16666667, %v2016_v58  ;;  %v2530_v5 = vmul.f32 0.16666667, %v2017_v59 }
 0x1cc   : > { %v1506_v6 = vmax.f32 %v994_v60, 0.0  ;;  %v1507_v7 = vmax.f32 %v995_v61, 0.0  ;;  %v1508_v8 = vmax.f32 %v996_v62, 0.0  ;;  %v1509_v9 = vmax.f32 %v997_v63, 0.0  ;;  %v490_v12 = vld [vmem:[%s3593_s30 + $0xb00] sm:$0xff]  ;;  %v491_v17 = vld [vmem:[%s3593_s30 + $0xb08] sm:$0xff] }
 0x1cd   : > { %v1510_v10 = vmax.f32 %v998_v0, 0.0  ;;  %v1511_v11 = vmax.f32 %v999_v1, 0.0  ;;  %3041 = vst [vmem:[%s3615_s17 + $0xab0] sm:$0xff] %v2529_v4  ;;  %3042 = vst [vmem:[%s3615_s17 + $0xab8] sm:$0xff] %v2530_v5  ;;  %v1000_v15 = vadd.f32 3.0, %v488_v2  ;;  %v1001_v16 = vadd.f32 3.0, %v489_v3 }
 0x1ce   : > { %v2018_v13 = vmin.f32 %v1506_v6, 6.0  ;;  %v2019_v14 = vmin.f32 %v1507_v7, 6.0  ;;  %v492_v18 = vld [vmem:[%s3593_s30 + $0xb10] sm:$0xff]  ;;  %v493_v19 = vld [vmem:[%s3593_s30 + $0xb18] sm:$0xff]  ;;  %v2020_v20 = vmin.f32 %v1508_v8, 6.0  ;;  %v2021_v21 = vmin.f32 %v1509_v9, 6.0 }
 0x1cf   : > { %v2022_v22 = vmin.f32 %v1510_v10, 6.0  ;;  %v2023_v23 = vmin.f32 %v1511_v11, 6.0  ;;  %v494_v24 = vld [vmem:[%s3593_s30 + $0xb20] sm:$0xff]  ;;  %v495_v25 = vld [vmem:[%s3593_s30 + $0xb28] sm:$0xff]  ;;  %v1512_v28 = vmax.f32 %v1000_v15, 0.0  ;;  %v1513_v29 = vmax.f32 %v1001_v16, 0.0 }
 0x1d0   : > { %v2531_v26 = vmul.f32 0.16666667, %v2018_v13  ;;  %v2532_v27 = vmul.f32 0.16666667, %v2019_v14  ;;  %v2533_v30 = vmul.f32 0.16666667, %v2020_v20 }
 0x1d1   : > { %v2534_v31 = vmul.f32 0.16666667, %v2021_v21  ;;  %v2535_v32 = vmul.f32 0.16666667, %v2022_v22  ;;  %v2536_v33 = vmul.f32 0.16666667, %v2023_v23 }
 0x1d2   : > { %3043 = vst [vmem:[%s3615_s17 + $0xac0] sm:$0xff] %v2531_v26  ;;  %3044 = vst [vmem:[%s3615_s17 + $0xac8] sm:$0xff] %v2532_v27  ;;  %v2024_v34 = vmin.f32 %v1512_v28, 6.0  ;;  %v2025_v35 = vmin.f32 %v1513_v29, 6.0  ;;  %v1002_v36 = vadd.f32 3.0, %v490_v12  ;;  %v1003_v37 = vadd.f32 3.0, %v491_v17 }
 0x1d3   : > { %3045 = vst [vmem:[%s3615_s17 + $0xad0] sm:$0xff] %v2533_v30  ;;  %3046 = vst [vmem:[%s3615_s17 + $0xad8] sm:$0xff] %v2534_v31  ;;  %v1004_v38 = vadd.f32 3.0, %v492_v18  ;;  %v1005_v39 = vadd.f32 3.0, %v493_v19  ;;  %v1006_v40 = vadd.f32 3.0, %v494_v24  ;;  %v496_v41 = vld [vmem:[%s3593_s30 + $0xb30] sm:$0xff] }
 0x1d4   : > { %3047 = vst [vmem:[%s3615_s17 + $0xae0] sm:$0xff] %v2535_v32  ;;  %v497_v42 = vld [vmem:[%s3593_s30 + $0xb38] sm:$0xff]  ;;  %3048 = vst [vmem:[%s3615_s17 + $0xae8] sm:$0xff] %v2536_v33  ;;  %v2537_v43 = vmul.f32 0.16666667, %v2024_v34  ;;  %v1514_v45 = vmax.f32 %v1002_v36, 0.0 }
 0x1d5   : > { %v2538_v44 = vmul.f32 0.16666667, %v2025_v35  ;;  %v1007_v46 = vadd.f32 3.0, %v495_v25  ;;  %v1515_v47 = vmax.f32 %v1003_v37, 0.0  ;;  %v1516_v48 = vmax.f32 %v1004_v38, 0.0  ;;  %v498_v55 = vld [vmem:[%s3593_s30 + $0xb40] sm:$0xff] }
 0x1d6   : > { %v1517_v49 = vmax.f32 %v1005_v39, 0.0  ;;  %v1518_v50 = vmax.f32 %v1006_v40, 0.0  ;;  %3049 = vst [vmem:[%s3615_s17 + $0xaf0] sm:$0xff] %v2537_v43  ;;  %v2026_v51 = vmin.f32 %v1514_v45, 6.0  ;;  %v1008_v53 = vadd.f32 3.0, %v496_v41  ;;  %v499_v56 = vld [vmem:[%s3593_s30 + $0xb48] sm:$0xff] }
 0x1d7   : > { %3050 = vst [vmem:[%s3615_s17 + $0xaf8] sm:$0xff] %v2538_v44  ;;  %v1519_v52 = vmax.f32 %v1007_v46, 0.0  ;;  %v1009_v54 = vadd.f32 3.0, %v497_v42  ;;  %v500_v57 = vld [vmem:[%s3593_s30 + $0xb50] sm:$0xff]  ;;  %v2027_v58 = vmin.f32 %v1515_v47, 6.0  ;;  %v2028_v59 = vmin.f32 %v1516_v48, 6.0 }
 0x1d8   : > { %v2029_v60 = vmin.f32 %v1517_v49, 6.0  ;;  %v2030_v61 = vmin.f32 %v1518_v50, 6.0  ;;  %v501_v62 = vld [vmem:[%s3593_s30 + $0xb58] sm:$0xff]  ;;  %v502_v63 = vld [vmem:[%s3593_s30 + $0xb60] sm:$0xff]  ;;  %v2539_v0 = vmul.f32 0.16666667, %v2026_v51 }
 0x1d9   : > { %v2031_v1 = vmin.f32 %v1519_v52, 6.0  ;;  %v1520_v2 = vmax.f32 %v1008_v53, 0.0  ;;  %v1521_v3 = vmax.f32 %v1009_v54, 0.0  ;;  %v503_v4 = vld [vmem:[%s3593_s30 + $0xb68] sm:$0xff]  ;;  %v2540_v5 = vmul.f32 0.16666667, %v2027_v58 }
 0x1da   : > { %v2541_v6 = vmul.f32 0.16666667, %v2028_v59  ;;  %v2542_v7 = vmul.f32 0.16666667, %v2029_v60  ;;  %3051 = vst [vmem:[%s3615_s17 + $0xb00] sm:$0xff] %v2539_v0  ;;  %v1010_v12 = vadd.f32 3.0, %v498_v55 }
 0x1db   : > { %v2543_v8 = vmul.f32 0.16666667, %v2030_v61  ;;  %v2544_v9 = vmul.f32 0.16666667, %v2031_v1  ;;  %v2032_v10 = vmin.f32 %v1520_v2, 6.0  ;;  %v2033_v11 = vmin.f32 %v1521_v3, 6.0 }
 0x1dc   : > { %3052 = vst [vmem:[%s3615_s17 + $0xb08] sm:$0xff] %v2540_v5  ;;  %3053 = vst [vmem:[%s3615_s17 + $0xb10] sm:$0xff] %v2541_v6  ;;  %v1011_v13 = vadd.f32 3.0, %v499_v56  ;;  %v1012_v14 = vadd.f32 3.0, %v500_v57  ;;  %v1013_v15 = vadd.f32 3.0, %v501_v62  ;;  %v504_v16 = vld [vmem:[%s3593_s30 + $0xb70] sm:$0xff] }
 0x1dd   : > { %3054 = vst [vmem:[%s3615_s17 + $0xb18] sm:$0xff] %v2542_v7  ;;  %v505_v17 = vld [vmem:[%s3593_s30 + $0xb78] sm:$0xff]  ;;  %3055 = vst [vmem:[%s3615_s17 + $0xb20] sm:$0xff] %v2543_v8  ;;  %v2545_v18 = vmul.f32 0.16666667, %v2032_v10  ;;  %v1014_v20 = vadd.f32 3.0, %v502_v63 }
 0x1de   : > { %3056 = vst [vmem:[%s3615_s17 + $0xb28] sm:$0xff] %v2544_v9  ;;  %v2546_v19 = vmul.f32 0.16666667, %v2033_v11  ;;  %v1015_v21 = vadd.f32 3.0, %v503_v4  ;;  %v1522_v22 = vmax.f32 %v1010_v12, 0.0  ;;  %v1523_v23 = vmax.f32 %v1011_v13, 0.0 }
 0x1df   : > { %v1524_v24 = vmax.f32 %v1012_v14, 0.0  ;;  %v1525_v25 = vmax.f32 %v1013_v15, 0.0  ;;  %3057 = vst [vmem:[%s3615_s17 + $0xb30] sm:$0xff] %v2545_v18  ;;  %v1526_v26 = vmax.f32 %v1014_v20, 0.0  ;;  %v1016_v28 = vadd.f32 3.0, %v504_v16  ;;  %v506_v30 = vld [vmem:[%s3593_s30 + $0xb80] sm:$0xff] }
 0x1e0   : > { %3058 = vst [vmem:[%s3615_s17 + $0xb38] sm:$0xff] %v2546_v19  ;;  %v1527_v27 = vmax.f32 %v1015_v21, 0.0  ;;  %v1017_v29 = vadd.f32 3.0, %v505_v17  ;;  %v507_v31 = vld [vmem:[%s3593_s30 + $0xb88] sm:$0xff]  ;;  %v2034_v32 = vmin.f32 %v1522_v22, 6.0  ;;  %v2035_v33 = vmin.f32 %v1523_v23, 6.0 }
 0x1e1   : > { %v2036_v34 = vmin.f32 %v1524_v24, 6.0  ;;  %v2037_v35 = vmin.f32 %v1525_v25, 6.0  ;;  %v508_v36 = vld [vmem:[%s3593_s30 + $0xb90] sm:$0xff]  ;;  %v509_v37 = vld [vmem:[%s3593_s30 + $0xb98] sm:$0xff]  ;;  %v2038_v38 = vmin.f32 %v1526_v26, 6.0  ;;  %v1528_v40 = vmax.f32 %v1016_v28, 0.0 }
 0x1e2   : > { %v2039_v39 = vmin.f32 %v1527_v27, 6.0  ;;  %v1529_v41 = vmax.f32 %v1017_v29, 0.0  ;;  %v510_v42 = vld [vmem:[%s3593_s30 + $0xba0] sm:$0xff]  ;;  %v511_v43 = vld [vmem:[%s3593_s30 + $0xba8] sm:$0xff]  ;;  %v2547_v44 = vmul.f32 0.16666667, %v2034_v32 }
 0x1e3   : > { %v2548_v45 = vmul.f32 0.16666667, %v2035_v33  ;;  %v2549_v46 = vmul.f32 0.16666667, %v2036_v34  ;;  %v2550_v47 = vmul.f32 0.16666667, %v2037_v35 }
 0x1e4   : > { %v2551_v48 = vmul.f32 0.16666667, %v2038_v38  ;;  %v2552_v49 = vmul.f32 0.16666667, %v2039_v39  ;;  %3059 = vst [vmem:[%s3615_s17 + $0xb40] sm:$0xff] %v2547_v44  ;;  %v2040_v50 = vmin.f32 %v1528_v40, 6.0 }
 0x1e5   : > { %3060 = vst [vmem:[%s3615_s17 + $0xb48] sm:$0xff] %v2548_v45  ;;  %3061 = vst [vmem:[%s3615_s17 + $0xb50] sm:$0xff] %v2549_v46  ;;  %v2041_v51 = vmin.f32 %v1529_v41, 6.0  ;;  %v1018_v52 = vadd.f32 3.0, %v506_v30  ;;  %v1019_v53 = vadd.f32 3.0, %v507_v31  ;;  %v1020_v54 = vadd.f32 3.0, %v508_v36 }
 0x1e6   : > { %3062 = vst [vmem:[%s3615_s17 + $0xb58] sm:$0xff] %v2550_v47  ;;  %3063 = vst [vmem:[%s3615_s17 + $0xb60] sm:$0xff] %v2551_v48  ;;  %v1021_v55 = vadd.f32 3.0, %v509_v37  ;;  %v1022_v56 = vadd.f32 3.0, %v510_v42  ;;  %v1023_v57 = vadd.f32 3.0, %v511_v43  ;;  %v512_v58 = vld [vmem:[%s3593_s30 + $0xbb0] sm:$0xff] }
 0x1e7   : > { %3064 = vst [vmem:[%s3615_s17 + $0xb68] sm:$0xff] %v2552_v49  ;;  %v513_v59 = vld [vmem:[%s3593_s30 + $0xbb8] sm:$0xff]  ;;  %v2553_v60 = vmul.f32 0.16666667, %v2040_v50  ;;  %v2554_v61 = vmul.f32 0.16666667, %v2041_v51 }
 0x1e8   : > { %v1530_v62 = vmax.f32 %v1018_v52, 0.0  ;;  %v1531_v63 = vmax.f32 %v1019_v53, 0.0  ;;  %v1532_v0 = vmax.f32 %v1020_v54, 0.0  ;;  %v1533_v1 = vmax.f32 %v1021_v55, 0.0  ;;  %v514_v4 = vld [vmem:[%s3593_s30 + $0xbc0] sm:$0xff]  ;;  %v515_v9 = vld [vmem:[%s3593_s30 + $0xbc8] sm:$0xff] }
 0x1e9   : > { %v1534_v2 = vmax.f32 %v1022_v56, 0.0  ;;  %v1535_v3 = vmax.f32 %v1023_v57, 0.0  ;;  %3065 = vst [vmem:[%s3615_s17 + $0xb70] sm:$0xff] %v2553_v60  ;;  %3066 = vst [vmem:[%s3615_s17 + $0xb78] sm:$0xff] %v2554_v61  ;;  %v1024_v7 = vadd.f32 3.0, %v512_v58  ;;  %v1025_v8 = vadd.f32 3.0, %v513_v59 }
 0x1ea   : > { %v2042_v5 = vmin.f32 %v1530_v62, 6.0  ;;  %v2043_v6 = vmin.f32 %v1531_v63, 6.0  ;;  %v516_v10 = vld [vmem:[%s3593_s30 + $0xbd0] sm:$0xff]  ;;  %v517_v11 = vld [vmem:[%s3593_s30 + $0xbd8] sm:$0xff]  ;;  %v2044_v12 = vmin.f32 %v1532_v0, 6.0  ;;  %v2045_v13 = vmin.f32 %v1533_v1, 6.0 }
 0x1eb   : > { %v2046_v14 = vmin.f32 %v1534_v2, 6.0  ;;  %v2047_v15 = vmin.f32 %v1535_v3, 6.0  ;;  %v518_v16 = vld [vmem:[%s3593_s30 + $0xbe0] sm:$0xff]  ;;  %v519_v17 = vld [vmem:[%s3593_s30 + $0xbe8] sm:$0xff]  ;;  %v1536_v20 = vmax.f32 %v1024_v7, 0.0  ;;  %v1537_v21 = vmax.f32 %v1025_v8, 0.0 }
 0x1ec   : > { %v2555_v18 = vmul.f32 0.16666667, %v2042_v5  ;;  %v2556_v19 = vmul.f32 0.16666667, %v2043_v6  ;;  %v2557_v22 = vmul.f32 0.16666667, %v2044_v12 }
 0x1ed   : > { %v2558_v23 = vmul.f32 0.16666667, %v2045_v13  ;;  %v2559_v24 = vmul.f32 0.16666667, %v2046_v14  ;;  %v2560_v25 = vmul.f32 0.16666667, %v2047_v15 }
 0x1ee   : > { %3067 = vst [vmem:[%s3615_s17 + $0xb80] sm:$0xff] %v2555_v18  ;;  %3068 = vst [vmem:[%s3615_s17 + $0xb88] sm:$0xff] %v2556_v19  ;;  %v2048_v26 = vmin.f32 %v1536_v20, 6.0  ;;  %v2049_v27 = vmin.f32 %v1537_v21, 6.0  ;;  %v1026_v28 = vadd.f32 3.0, %v514_v4  ;;  %v1027_v29 = vadd.f32 3.0, %v515_v9 }
 0x1ef   : > { %3069 = vst [vmem:[%s3615_s17 + $0xb90] sm:$0xff] %v2557_v22  ;;  %3070 = vst [vmem:[%s3615_s17 + $0xb98] sm:$0xff] %v2558_v23  ;;  %v1028_v30 = vadd.f32 3.0, %v516_v10  ;;  %v1029_v31 = vadd.f32 3.0, %v517_v11  ;;  %v1030_v32 = vadd.f32 3.0, %v518_v16  ;;  %v520_v33 = vld [vmem:[%s3593_s30 + $0xbf0] sm:$0xff] }
 0x1f0   : > { %3071 = vst [vmem:[%s3615_s17 + $0xba0] sm:$0xff] %v2559_v24  ;;  %v521_v34 = vld [vmem:[%s3593_s30 + $0xbf8] sm:$0xff]  ;;  %3072 = vst [vmem:[%s3615_s17 + $0xba8] sm:$0xff] %v2560_v25  ;;  %v2561_v35 = vmul.f32 0.16666667, %v2048_v26  ;;  %v1538_v37 = vmax.f32 %v1026_v28, 0.0 }
 0x1f1   : > { %v2562_v36 = vmul.f32 0.16666667, %v2049_v27  ;;  %v1031_v38 = vadd.f32 3.0, %v519_v17  ;;  %v1539_v39 = vmax.f32 %v1027_v29, 0.0  ;;  %v1540_v40 = vmax.f32 %v1028_v30, 0.0  ;;  %v522_v47 = vld [vmem:[%s3593_s30 + $0xc00] sm:$0xff] }
 0x1f2   : > { %v1541_v41 = vmax.f32 %v1029_v31, 0.0  ;;  %v1542_v42 = vmax.f32 %v1030_v32, 0.0  ;;  %3073 = vst [vmem:[%s3615_s17 + $0xbb0] sm:$0xff] %v2561_v35  ;;  %v2050_v43 = vmin.f32 %v1538_v37, 6.0  ;;  %v1032_v45 = vadd.f32 3.0, %v520_v33  ;;  %v523_v48 = vld [vmem:[%s3593_s30 + $0xc08] sm:$0xff] }
 0x1f3   : > { %3074 = vst [vmem:[%s3615_s17 + $0xbb8] sm:$0xff] %v2562_v36  ;;  %v1543_v44 = vmax.f32 %v1031_v38, 0.0  ;;  %v1033_v46 = vadd.f32 3.0, %v521_v34  ;;  %v524_v49 = vld [vmem:[%s3593_s30 + $0xc10] sm:$0xff]  ;;  %v2051_v50 = vmin.f32 %v1539_v39, 6.0  ;;  %v2052_v51 = vmin.f32 %v1540_v40, 6.0 }
 0x1f4   : > { %v2053_v52 = vmin.f32 %v1541_v41, 6.0  ;;  %v2054_v53 = vmin.f32 %v1542_v42, 6.0  ;;  %v525_v54 = vld [vmem:[%s3593_s30 + $0xc18] sm:$0xff]  ;;  %v526_v55 = vld [vmem:[%s3593_s30 + $0xc20] sm:$0xff]  ;;  %v2563_v56 = vmul.f32 0.16666667, %v2050_v43 }
 0x1f5   : > { %v2055_v57 = vmin.f32 %v1543_v44, 6.0  ;;  %v1544_v58 = vmax.f32 %v1032_v45, 0.0  ;;  %v1545_v59 = vmax.f32 %v1033_v46, 0.0  ;;  %v527_v60 = vld [vmem:[%s3593_s30 + $0xc28] sm:$0xff]  ;;  %v2564_v61 = vmul.f32 0.16666667, %v2051_v50 }
 0x1f6   : > { %v2565_v62 = vmul.f32 0.16666667, %v2052_v51  ;;  %v2566_v63 = vmul.f32 0.16666667, %v2053_v52  ;;  %3075 = vst [vmem:[%s3615_s17 + $0xbc0] sm:$0xff] %v2563_v56  ;;  %v1034_v4 = vadd.f32 3.0, %v522_v47 }
 0x1f7   : > { %v2567_v0 = vmul.f32 0.16666667, %v2054_v53  ;;  %v2568_v1 = vmul.f32 0.16666667, %v2055_v57  ;;  %v2056_v2 = vmin.f32 %v1544_v58, 6.0  ;;  %v2057_v3 = vmin.f32 %v1545_v59, 6.0 }
 0x1f8   : > { %3076 = vst [vmem:[%s3615_s17 + $0xbc8] sm:$0xff] %v2564_v61  ;;  %3077 = vst [vmem:[%s3615_s17 + $0xbd0] sm:$0xff] %v2565_v62  ;;  %v1035_v5 = vadd.f32 3.0, %v523_v48  ;;  %v1036_v6 = vadd.f32 3.0, %v524_v49  ;;  %v1037_v7 = vadd.f32 3.0, %v525_v54  ;;  %v528_v8 = vld [vmem:[%s3593_s30 + $0xc30] sm:$0xff] }
 0x1f9   : > { %3078 = vst [vmem:[%s3615_s17 + $0xbd8] sm:$0xff] %v2566_v63  ;;  %v529_v9 = vld [vmem:[%s3593_s30 + $0xc38] sm:$0xff]  ;;  %3079 = vst [vmem:[%s3615_s17 + $0xbe0] sm:$0xff] %v2567_v0  ;;  %v2569_v10 = vmul.f32 0.16666667, %v2056_v2  ;;  %v1038_v12 = vadd.f32 3.0, %v526_v55 }
 0x1fa   : > { %3080 = vst [vmem:[%s3615_s17 + $0xbe8] sm:$0xff] %v2568_v1  ;;  %v2570_v11 = vmul.f32 0.16666667, %v2057_v3  ;;  %v1039_v13 = vadd.f32 3.0, %v527_v60  ;;  %v1546_v14 = vmax.f32 %v1034_v4, 0.0  ;;  %v1547_v15 = vmax.f32 %v1035_v5, 0.0 }
 0x1fb   : > { %v1548_v16 = vmax.f32 %v1036_v6, 0.0  ;;  %v1549_v17 = vmax.f32 %v1037_v7, 0.0  ;;  %3081 = vst [vmem:[%s3615_s17 + $0xbf0] sm:$0xff] %v2569_v10  ;;  %v1550_v18 = vmax.f32 %v1038_v12, 0.0  ;;  %v1040_v20 = vadd.f32 3.0, %v528_v8  ;;  %v530_v22 = vld [vmem:[%s3593_s30 + $0xc40] sm:$0xff] }
 0x1fc   : > { %3082 = vst [vmem:[%s3615_s17 + $0xbf8] sm:$0xff] %v2570_v11  ;;  %v1551_v19 = vmax.f32 %v1039_v13, 0.0  ;;  %v1041_v21 = vadd.f32 3.0, %v529_v9  ;;  %v531_v23 = vld [vmem:[%s3593_s30 + $0xc48] sm:$0xff]  ;;  %v2058_v24 = vmin.f32 %v1546_v14, 6.0  ;;  %v2059_v25 = vmin.f32 %v1547_v15, 6.0 }
 0x1fd   : > { %v2060_v26 = vmin.f32 %v1548_v16, 6.0  ;;  %v2061_v27 = vmin.f32 %v1549_v17, 6.0  ;;  %v532_v28 = vld [vmem:[%s3593_s30 + $0xc50] sm:$0xff]  ;;  %v533_v29 = vld [vmem:[%s3593_s30 + $0xc58] sm:$0xff]  ;;  %v2062_v30 = vmin.f32 %v1550_v18, 6.0  ;;  %v1552_v32 = vmax.f32 %v1040_v20, 0.0 }
 0x1fe   : > { %v2063_v31 = vmin.f32 %v1551_v19, 6.0  ;;  %v1553_v33 = vmax.f32 %v1041_v21, 0.0  ;;  %v534_v34 = vld [vmem:[%s3593_s30 + $0xc60] sm:$0xff]  ;;  %v535_v35 = vld [vmem:[%s3593_s30 + $0xc68] sm:$0xff]  ;;  %v2571_v36 = vmul.f32 0.16666667, %v2058_v24 }
 0x1ff   : > { %v2572_v37 = vmul.f32 0.16666667, %v2059_v25  ;;  %v2573_v38 = vmul.f32 0.16666667, %v2060_v26  ;;  %v2574_v39 = vmul.f32 0.16666667, %v2061_v27 }
 0x200   : > { %v2575_v40 = vmul.f32 0.16666667, %v2062_v30  ;;  %v2576_v41 = vmul.f32 0.16666667, %v2063_v31  ;;  %3083 = vst [vmem:[%s3615_s17 + $0xc00] sm:$0xff] %v2571_v36  ;;  %v2064_v42 = vmin.f32 %v1552_v32, 6.0 }
 0x201   : > { %3084 = vst [vmem:[%s3615_s17 + $0xc08] sm:$0xff] %v2572_v37  ;;  %3085 = vst [vmem:[%s3615_s17 + $0xc10] sm:$0xff] %v2573_v38  ;;  %v2065_v43 = vmin.f32 %v1553_v33, 6.0  ;;  %v1042_v44 = vadd.f32 3.0, %v530_v22  ;;  %v1043_v45 = vadd.f32 3.0, %v531_v23  ;;  %v1044_v46 = vadd.f32 3.0, %v532_v28 }
 0x202   : > { %3086 = vst [vmem:[%s3615_s17 + $0xc18] sm:$0xff] %v2574_v39  ;;  %3087 = vst [vmem:[%s3615_s17 + $0xc20] sm:$0xff] %v2575_v40  ;;  %v1045_v47 = vadd.f32 3.0, %v533_v29  ;;  %v1046_v48 = vadd.f32 3.0, %v534_v34  ;;  %v1047_v49 = vadd.f32 3.0, %v535_v35  ;;  %v536_v50 = vld [vmem:[%s3593_s30 + $0xc70] sm:$0xff] }
 0x203   : > { %3088 = vst [vmem:[%s3615_s17 + $0xc28] sm:$0xff] %v2576_v41  ;;  %v537_v51 = vld [vmem:[%s3593_s30 + $0xc78] sm:$0xff]  ;;  %v2577_v52 = vmul.f32 0.16666667, %v2064_v42  ;;  %v2578_v53 = vmul.f32 0.16666667, %v2065_v43 }
 0x204   : > { %v1554_v54 = vmax.f32 %v1042_v44, 0.0  ;;  %v1555_v55 = vmax.f32 %v1043_v45, 0.0  ;;  %v1556_v56 = vmax.f32 %v1044_v46, 0.0  ;;  %v1557_v57 = vmax.f32 %v1045_v47, 0.0  ;;  %v538_v60 = vld [vmem:[%s3593_s30 + $0xc80] sm:$0xff]  ;;  %v539_v1 = vld [vmem:[%s3593_s30 + $0xc88] sm:$0xff] }
 0x205   : > { %v1558_v58 = vmax.f32 %v1046_v48, 0.0  ;;  %v1559_v59 = vmax.f32 %v1047_v49, 0.0  ;;  %3089 = vst [vmem:[%s3615_s17 + $0xc30] sm:$0xff] %v2577_v52  ;;  %3090 = vst [vmem:[%s3615_s17 + $0xc38] sm:$0xff] %v2578_v53  ;;  %v1048_v63 = vadd.f32 3.0, %v536_v50  ;;  %v1049_v0 = vadd.f32 3.0, %v537_v51 }
 0x206   : > { %v2066_v61 = vmin.f32 %v1554_v54, 6.0  ;;  %v2067_v62 = vmin.f32 %v1555_v55, 6.0  ;;  %v540_v2 = vld [vmem:[%s3593_s30 + $0xc90] sm:$0xff]  ;;  %v541_v3 = vld [vmem:[%s3593_s30 + $0xc98] sm:$0xff]  ;;  %v2068_v4 = vmin.f32 %v1556_v56, 6.0  ;;  %v2069_v5 = vmin.f32 %v1557_v57, 6.0 }
 0x207   : > { %v2070_v6 = vmin.f32 %v1558_v58, 6.0  ;;  %v2071_v7 = vmin.f32 %v1559_v59, 6.0  ;;  %v542_v8 = vld [vmem:[%s3593_s30 + $0xca0] sm:$0xff]  ;;  %v543_v9 = vld [vmem:[%s3593_s30 + $0xca8] sm:$0xff]  ;;  %v1560_v12 = vmax.f32 %v1048_v63, 0.0  ;;  %v1561_v13 = vmax.f32 %v1049_v0, 0.0 }
 0x208   : > { %v2579_v10 = vmul.f32 0.16666667, %v2066_v61  ;;  %v2580_v11 = vmul.f32 0.16666667, %v2067_v62  ;;  %v2581_v14 = vmul.f32 0.16666667, %v2068_v4 }
 0x209   : > { %v2582_v15 = vmul.f32 0.16666667, %v2069_v5  ;;  %v2583_v16 = vmul.f32 0.16666667, %v2070_v6  ;;  %v2584_v17 = vmul.f32 0.16666667, %v2071_v7 }
 0x20a   : > { %3091 = vst [vmem:[%s3615_s17 + $0xc40] sm:$0xff] %v2579_v10  ;;  %3092 = vst [vmem:[%s3615_s17 + $0xc48] sm:$0xff] %v2580_v11  ;;  %v2072_v18 = vmin.f32 %v1560_v12, 6.0  ;;  %v2073_v19 = vmin.f32 %v1561_v13, 6.0  ;;  %v1050_v20 = vadd.f32 3.0, %v538_v60  ;;  %v1051_v21 = vadd.f32 3.0, %v539_v1 }
 0x20b   : > { %3093 = vst [vmem:[%s3615_s17 + $0xc50] sm:$0xff] %v2581_v14  ;;  %3094 = vst [vmem:[%s3615_s17 + $0xc58] sm:$0xff] %v2582_v15  ;;  %v1052_v22 = vadd.f32 3.0, %v540_v2  ;;  %v1053_v23 = vadd.f32 3.0, %v541_v3  ;;  %v1054_v24 = vadd.f32 3.0, %v542_v8  ;;  %v544_v25 = vld [vmem:[%s3593_s30 + $0xcb0] sm:$0xff] }
 0x20c   : > { %3095 = vst [vmem:[%s3615_s17 + $0xc60] sm:$0xff] %v2583_v16  ;;  %v545_v26 = vld [vmem:[%s3593_s30 + $0xcb8] sm:$0xff]  ;;  %3096 = vst [vmem:[%s3615_s17 + $0xc68] sm:$0xff] %v2584_v17  ;;  %v2585_v27 = vmul.f32 0.16666667, %v2072_v18  ;;  %v1562_v29 = vmax.f32 %v1050_v20, 0.0 }
 0x20d   : > { %v2586_v28 = vmul.f32 0.16666667, %v2073_v19  ;;  %v1055_v30 = vadd.f32 3.0, %v543_v9  ;;  %v1563_v31 = vmax.f32 %v1051_v21, 0.0  ;;  %v1564_v32 = vmax.f32 %v1052_v22, 0.0  ;;  %v546_v39 = vld [vmem:[%s3593_s30 + $0xcc0] sm:$0xff] }
 0x20e   : > { %v1565_v33 = vmax.f32 %v1053_v23, 0.0  ;;  %v1566_v34 = vmax.f32 %v1054_v24, 0.0  ;;  %3097 = vst [vmem:[%s3615_s17 + $0xc70] sm:$0xff] %v2585_v27  ;;  %v2074_v35 = vmin.f32 %v1562_v29, 6.0  ;;  %v1056_v37 = vadd.f32 3.0, %v544_v25  ;;  %v547_v40 = vld [vmem:[%s3593_s30 + $0xcc8] sm:$0xff] }
 0x20f   : > { %3098 = vst [vmem:[%s3615_s17 + $0xc78] sm:$0xff] %v2586_v28  ;;  %v1567_v36 = vmax.f32 %v1055_v30, 0.0  ;;  %v1057_v38 = vadd.f32 3.0, %v545_v26  ;;  %v548_v41 = vld [vmem:[%s3593_s30 + $0xcd0] sm:$0xff]  ;;  %v2075_v42 = vmin.f32 %v1563_v31, 6.0  ;;  %v2076_v43 = vmin.f32 %v1564_v32, 6.0 }
 0x210   : > { %v2077_v44 = vmin.f32 %v1565_v33, 6.0  ;;  %v2078_v45 = vmin.f32 %v1566_v34, 6.0  ;;  %v549_v46 = vld [vmem:[%s3593_s30 + $0xcd8] sm:$0xff]  ;;  %v550_v47 = vld [vmem:[%s3593_s30 + $0xce0] sm:$0xff]  ;;  %v2587_v48 = vmul.f32 0.16666667, %v2074_v35 }
 0x211   : > { %v2079_v49 = vmin.f32 %v1567_v36, 6.0  ;;  %v1568_v50 = vmax.f32 %v1056_v37, 0.0  ;;  %v1569_v51 = vmax.f32 %v1057_v38, 0.0  ;;  %v551_v52 = vld [vmem:[%s3593_s30 + $0xce8] sm:$0xff]  ;;  %v2588_v53 = vmul.f32 0.16666667, %v2075_v42 }
 0x212   : > { %v2589_v54 = vmul.f32 0.16666667, %v2076_v43  ;;  %v2590_v55 = vmul.f32 0.16666667, %v2077_v44  ;;  %3099 = vst [vmem:[%s3615_s17 + $0xc80] sm:$0xff] %v2587_v48  ;;  %v1058_v60 = vadd.f32 3.0, %v546_v39 }
 0x213   : > { %v2591_v56 = vmul.f32 0.16666667, %v2078_v45  ;;  %v2592_v57 = vmul.f32 0.16666667, %v2079_v49  ;;  %v2080_v58 = vmin.f32 %v1568_v50, 6.0  ;;  %v2081_v59 = vmin.f32 %v1569_v51, 6.0 }
 0x214   : > { %3100 = vst [vmem:[%s3615_s17 + $0xc88] sm:$0xff] %v2588_v53  ;;  %3101 = vst [vmem:[%s3615_s17 + $0xc90] sm:$0xff] %v2589_v54  ;;  %v1059_v61 = vadd.f32 3.0, %v547_v40  ;;  %v1060_v62 = vadd.f32 3.0, %v548_v41  ;;  %v1061_v63 = vadd.f32 3.0, %v549_v46  ;;  %v552_v0 = vld [vmem:[%s3593_s30 + $0xcf0] sm:$0xff] }
 0x215   : > { %3102 = vst [vmem:[%s3615_s17 + $0xc98] sm:$0xff] %v2590_v55  ;;  %v553_v1 = vld [vmem:[%s3593_s30 + $0xcf8] sm:$0xff]  ;;  %3103 = vst [vmem:[%s3615_s17 + $0xca0] sm:$0xff] %v2591_v56  ;;  %v2593_v2 = vmul.f32 0.16666667, %v2080_v58  ;;  %v1062_v4 = vadd.f32 3.0, %v550_v47 }
 0x216   : > { %3104 = vst [vmem:[%s3615_s17 + $0xca8] sm:$0xff] %v2592_v57  ;;  %v2594_v3 = vmul.f32 0.16666667, %v2081_v59  ;;  %v1063_v5 = vadd.f32 3.0, %v551_v52  ;;  %v1570_v6 = vmax.f32 %v1058_v60, 0.0  ;;  %v1571_v7 = vmax.f32 %v1059_v61, 0.0 }
 0x217   : > { %v1572_v8 = vmax.f32 %v1060_v62, 0.0  ;;  %v1573_v9 = vmax.f32 %v1061_v63, 0.0  ;;  %3105 = vst [vmem:[%s3615_s17 + $0xcb0] sm:$0xff] %v2593_v2  ;;  %v1574_v10 = vmax.f32 %v1062_v4, 0.0  ;;  %v1064_v12 = vadd.f32 3.0, %v552_v0  ;;  %v554_v14 = vld [vmem:[%s3593_s30 + $0xd00] sm:$0xff] }
 0x218   : > { %3106 = vst [vmem:[%s3615_s17 + $0xcb8] sm:$0xff] %v2594_v3  ;;  %v1575_v11 = vmax.f32 %v1063_v5, 0.0  ;;  %v1065_v13 = vadd.f32 3.0, %v553_v1  ;;  %v555_v15 = vld [vmem:[%s3593_s30 + $0xd08] sm:$0xff]  ;;  %v2082_v16 = vmin.f32 %v1570_v6, 6.0  ;;  %v2083_v17 = vmin.f32 %v1571_v7, 6.0 }
 0x219   : > { %v2084_v18 = vmin.f32 %v1572_v8, 6.0  ;;  %v2085_v19 = vmin.f32 %v1573_v9, 6.0  ;;  %v556_v20 = vld [vmem:[%s3593_s30 + $0xd10] sm:$0xff]  ;;  %v557_v21 = vld [vmem:[%s3593_s30 + $0xd18] sm:$0xff]  ;;  %v2086_v22 = vmin.f32 %v1574_v10, 6.0  ;;  %v1576_v24 = vmax.f32 %v1064_v12, 0.0 }
 0x21a   : > { %v2087_v23 = vmin.f32 %v1575_v11, 6.0  ;;  %v1577_v25 = vmax.f32 %v1065_v13, 0.0  ;;  %v558_v26 = vld [vmem:[%s3593_s30 + $0xd20] sm:$0xff]  ;;  %v559_v27 = vld [vmem:[%s3593_s30 + $0xd28] sm:$0xff]  ;;  %v2595_v28 = vmul.f32 0.16666667, %v2082_v16 }
 0x21b   : > { %v2596_v29 = vmul.f32 0.16666667, %v2083_v17  ;;  %v2597_v30 = vmul.f32 0.16666667, %v2084_v18  ;;  %v2598_v31 = vmul.f32 0.16666667, %v2085_v19 }
 0x21c   : > { %v2599_v32 = vmul.f32 0.16666667, %v2086_v22  ;;  %v2600_v33 = vmul.f32 0.16666667, %v2087_v23  ;;  %3107 = vst [vmem:[%s3615_s17 + $0xcc0] sm:$0xff] %v2595_v28  ;;  %v2088_v34 = vmin.f32 %v1576_v24, 6.0 }
 0x21d   : > { %3108 = vst [vmem:[%s3615_s17 + $0xcc8] sm:$0xff] %v2596_v29  ;;  %3109 = vst [vmem:[%s3615_s17 + $0xcd0] sm:$0xff] %v2597_v30  ;;  %v2089_v35 = vmin.f32 %v1577_v25, 6.0  ;;  %v1066_v36 = vadd.f32 3.0, %v554_v14  ;;  %v1067_v37 = vadd.f32 3.0, %v555_v15  ;;  %v1068_v38 = vadd.f32 3.0, %v556_v20 }
 0x21e   : > { %3110 = vst [vmem:[%s3615_s17 + $0xcd8] sm:$0xff] %v2598_v31  ;;  %3111 = vst [vmem:[%s3615_s17 + $0xce0] sm:$0xff] %v2599_v32  ;;  %v1069_v39 = vadd.f32 3.0, %v557_v21  ;;  %v1070_v40 = vadd.f32 3.0, %v558_v26  ;;  %v1071_v41 = vadd.f32 3.0, %v559_v27  ;;  %v560_v42 = vld [vmem:[%s3593_s30 + $0xd30] sm:$0xff] }
 0x21f   : > { %3112 = vst [vmem:[%s3615_s17 + $0xce8] sm:$0xff] %v2600_v33  ;;  %v561_v43 = vld [vmem:[%s3593_s30 + $0xd38] sm:$0xff]  ;;  %v2601_v44 = vmul.f32 0.16666667, %v2088_v34  ;;  %v2602_v45 = vmul.f32 0.16666667, %v2089_v35 }
 0x220   : > { %v1578_v46 = vmax.f32 %v1066_v36, 0.0  ;;  %v1579_v47 = vmax.f32 %v1067_v37, 0.0  ;;  %v1580_v48 = vmax.f32 %v1068_v38, 0.0  ;;  %v1581_v49 = vmax.f32 %v1069_v39, 0.0  ;;  %v562_v52 = vld [vmem:[%s3593_s30 + $0xd40] sm:$0xff]  ;;  %v563_v57 = vld [vmem:[%s3593_s30 + $0xd48] sm:$0xff] }
 0x221   : > { %v1582_v50 = vmax.f32 %v1070_v40, 0.0  ;;  %v1583_v51 = vmax.f32 %v1071_v41, 0.0  ;;  %3113 = vst [vmem:[%s3615_s17 + $0xcf0] sm:$0xff] %v2601_v44  ;;  %3114 = vst [vmem:[%s3615_s17 + $0xcf8] sm:$0xff] %v2602_v45  ;;  %v1072_v55 = vadd.f32 3.0, %v560_v42  ;;  %v1073_v56 = vadd.f32 3.0, %v561_v43 }
 0x222   : > { %v2090_v53 = vmin.f32 %v1578_v46, 6.0  ;;  %v2091_v54 = vmin.f32 %v1579_v47, 6.0  ;;  %v564_v58 = vld [vmem:[%s3593_s30 + $0xd50] sm:$0xff]  ;;  %v565_v59 = vld [vmem:[%s3593_s30 + $0xd58] sm:$0xff]  ;;  %v2092_v60 = vmin.f32 %v1580_v48, 6.0  ;;  %v2093_v61 = vmin.f32 %v1581_v49, 6.0 }
 0x223   : > { %v2094_v62 = vmin.f32 %v1582_v50, 6.0  ;;  %v2095_v63 = vmin.f32 %v1583_v51, 6.0  ;;  %v566_v0 = vld [vmem:[%s3593_s30 + $0xd60] sm:$0xff]  ;;  %v567_v1 = vld [vmem:[%s3593_s30 + $0xd68] sm:$0xff]  ;;  %v1584_v4 = vmax.f32 %v1072_v55, 0.0  ;;  %v1585_v5 = vmax.f32 %v1073_v56, 0.0 }
 0x224   : > { %v2603_v2 = vmul.f32 0.16666667, %v2090_v53  ;;  %v2604_v3 = vmul.f32 0.16666667, %v2091_v54  ;;  %v2605_v6 = vmul.f32 0.16666667, %v2092_v60 }
 0x225   : > { %v2606_v7 = vmul.f32 0.16666667, %v2093_v61  ;;  %v2607_v8 = vmul.f32 0.16666667, %v2094_v62  ;;  %v2608_v9 = vmul.f32 0.16666667, %v2095_v63 }
 0x226   : > { %3115 = vst [vmem:[%s3615_s17 + $0xd00] sm:$0xff] %v2603_v2  ;;  %3116 = vst [vmem:[%s3615_s17 + $0xd08] sm:$0xff] %v2604_v3  ;;  %v2096_v10 = vmin.f32 %v1584_v4, 6.0  ;;  %v2097_v11 = vmin.f32 %v1585_v5, 6.0  ;;  %v1074_v12 = vadd.f32 3.0, %v562_v52  ;;  %v1075_v13 = vadd.f32 3.0, %v563_v57 }
 0x227   : > { %3117 = vst [vmem:[%s3615_s17 + $0xd10] sm:$0xff] %v2605_v6  ;;  %3118 = vst [vmem:[%s3615_s17 + $0xd18] sm:$0xff] %v2606_v7  ;;  %v1076_v14 = vadd.f32 3.0, %v564_v58  ;;  %v1077_v15 = vadd.f32 3.0, %v565_v59  ;;  %v1078_v16 = vadd.f32 3.0, %v566_v0  ;;  %v568_v17 = vld [vmem:[%s3593_s30 + $0xd70] sm:$0xff] }
 0x228   : > { %3119 = vst [vmem:[%s3615_s17 + $0xd20] sm:$0xff] %v2607_v8  ;;  %v569_v18 = vld [vmem:[%s3593_s30 + $0xd78] sm:$0xff]  ;;  %3120 = vst [vmem:[%s3615_s17 + $0xd28] sm:$0xff] %v2608_v9  ;;  %v2609_v19 = vmul.f32 0.16666667, %v2096_v10  ;;  %v1586_v21 = vmax.f32 %v1074_v12, 0.0 }
 0x229   : > { %v2610_v20 = vmul.f32 0.16666667, %v2097_v11  ;;  %v1079_v22 = vadd.f32 3.0, %v567_v1  ;;  %v1587_v23 = vmax.f32 %v1075_v13, 0.0  ;;  %v1588_v24 = vmax.f32 %v1076_v14, 0.0  ;;  %v570_v31 = vld [vmem:[%s3593_s30 + $0xd80] sm:$0xff] }
 0x22a   : > { %v1589_v25 = vmax.f32 %v1077_v15, 0.0  ;;  %v1590_v26 = vmax.f32 %v1078_v16, 0.0  ;;  %3121 = vst [vmem:[%s3615_s17 + $0xd30] sm:$0xff] %v2609_v19  ;;  %v2098_v27 = vmin.f32 %v1586_v21, 6.0  ;;  %v1080_v29 = vadd.f32 3.0, %v568_v17  ;;  %v571_v32 = vld [vmem:[%s3593_s30 + $0xd88] sm:$0xff] }
 0x22b   : > { %3122 = vst [vmem:[%s3615_s17 + $0xd38] sm:$0xff] %v2610_v20  ;;  %v1591_v28 = vmax.f32 %v1079_v22, 0.0  ;;  %v1081_v30 = vadd.f32 3.0, %v569_v18  ;;  %v572_v33 = vld [vmem:[%s3593_s30 + $0xd90] sm:$0xff]  ;;  %v2099_v34 = vmin.f32 %v1587_v23, 6.0  ;;  %v2100_v35 = vmin.f32 %v1588_v24, 6.0 }
 0x22c   : > { %v2101_v36 = vmin.f32 %v1589_v25, 6.0  ;;  %v2102_v37 = vmin.f32 %v1590_v26, 6.0  ;;  %v573_v38 = vld [vmem:[%s3593_s30 + $0xd98] sm:$0xff]  ;;  %v574_v39 = vld [vmem:[%s3593_s30 + $0xda0] sm:$0xff]  ;;  %v2611_v40 = vmul.f32 0.16666667, %v2098_v27 }
 0x22d   : > { %v2103_v41 = vmin.f32 %v1591_v28, 6.0  ;;  %v1592_v42 = vmax.f32 %v1080_v29, 0.0  ;;  %v1593_v43 = vmax.f32 %v1081_v30, 0.0  ;;  %v575_v44 = vld [vmem:[%s3593_s30 + $0xda8] sm:$0xff]  ;;  %v2612_v45 = vmul.f32 0.16666667, %v2099_v34 }
 0x22e   : > { %v2613_v46 = vmul.f32 0.16666667, %v2100_v35  ;;  %v2614_v47 = vmul.f32 0.16666667, %v2101_v36  ;;  %3123 = vst [vmem:[%s3615_s17 + $0xd40] sm:$0xff] %v2611_v40  ;;  %v1082_v52 = vadd.f32 3.0, %v570_v31 }
 0x22f   : > { %v2615_v48 = vmul.f32 0.16666667, %v2102_v37  ;;  %v2616_v49 = vmul.f32 0.16666667, %v2103_v41  ;;  %v2104_v50 = vmin.f32 %v1592_v42, 6.0  ;;  %v2105_v51 = vmin.f32 %v1593_v43, 6.0 }
 0x230   : > { %3124 = vst [vmem:[%s3615_s17 + $0xd48] sm:$0xff] %v2612_v45  ;;  %3125 = vst [vmem:[%s3615_s17 + $0xd50] sm:$0xff] %v2613_v46  ;;  %v1083_v53 = vadd.f32 3.0, %v571_v32  ;;  %v1084_v54 = vadd.f32 3.0, %v572_v33  ;;  %v1085_v55 = vadd.f32 3.0, %v573_v38  ;;  %v576_v56 = vld [vmem:[%s3593_s30 + $0xdb0] sm:$0xff] }
 0x231   : > { %3126 = vst [vmem:[%s3615_s17 + $0xd58] sm:$0xff] %v2614_v47  ;;  %v577_v57 = vld [vmem:[%s3593_s30 + $0xdb8] sm:$0xff]  ;;  %3127 = vst [vmem:[%s3615_s17 + $0xd60] sm:$0xff] %v2615_v48  ;;  %v2617_v58 = vmul.f32 0.16666667, %v2104_v50  ;;  %v1086_v60 = vadd.f32 3.0, %v574_v39 }
 0x232   : > { %3128 = vst [vmem:[%s3615_s17 + $0xd68] sm:$0xff] %v2616_v49  ;;  %v2618_v59 = vmul.f32 0.16666667, %v2105_v51  ;;  %v1087_v61 = vadd.f32 3.0, %v575_v44  ;;  %v1594_v62 = vmax.f32 %v1082_v52, 0.0  ;;  %v1595_v63 = vmax.f32 %v1083_v53, 0.0 }
 0x233   : > { %v1596_v0 = vmax.f32 %v1084_v54, 0.0  ;;  %v1597_v1 = vmax.f32 %v1085_v55, 0.0  ;;  %3129 = vst [vmem:[%s3615_s17 + $0xd70] sm:$0xff] %v2617_v58  ;;  %v1598_v2 = vmax.f32 %v1086_v60, 0.0  ;;  %v1088_v4 = vadd.f32 3.0, %v576_v56  ;;  %v578_v6 = vld [vmem:[%s3593_s30 + $0xdc0] sm:$0xff] }
 0x234   : > { %3130 = vst [vmem:[%s3615_s17 + $0xd78] sm:$0xff] %v2618_v59  ;;  %v1599_v3 = vmax.f32 %v1087_v61, 0.0  ;;  %v1089_v5 = vadd.f32 3.0, %v577_v57  ;;  %v579_v7 = vld [vmem:[%s3593_s30 + $0xdc8] sm:$0xff]  ;;  %v2106_v8 = vmin.f32 %v1594_v62, 6.0  ;;  %v2107_v9 = vmin.f32 %v1595_v63, 6.0 }
 0x235   : > { %v2108_v10 = vmin.f32 %v1596_v0, 6.0  ;;  %v2109_v11 = vmin.f32 %v1597_v1, 6.0  ;;  %v580_v12 = vld [vmem:[%s3593_s30 + $0xdd0] sm:$0xff]  ;;  %v581_v13 = vld [vmem:[%s3593_s30 + $0xdd8] sm:$0xff]  ;;  %v2110_v14 = vmin.f32 %v1598_v2, 6.0  ;;  %v1600_v16 = vmax.f32 %v1088_v4, 0.0 }
 0x236   : > { %v2111_v15 = vmin.f32 %v1599_v3, 6.0  ;;  %v1601_v17 = vmax.f32 %v1089_v5, 0.0  ;;  %v582_v18 = vld [vmem:[%s3593_s30 + $0xde0] sm:$0xff]  ;;  %v583_v19 = vld [vmem:[%s3593_s30 + $0xde8] sm:$0xff]  ;;  %v2619_v20 = vmul.f32 0.16666667, %v2106_v8 }
 0x237   : > { %v2620_v21 = vmul.f32 0.16666667, %v2107_v9  ;;  %v2621_v22 = vmul.f32 0.16666667, %v2108_v10  ;;  %v2622_v23 = vmul.f32 0.16666667, %v2109_v11 }
 0x238   : > { %v2623_v24 = vmul.f32 0.16666667, %v2110_v14  ;;  %v2624_v25 = vmul.f32 0.16666667, %v2111_v15  ;;  %3131 = vst [vmem:[%s3615_s17 + $0xd80] sm:$0xff] %v2619_v20  ;;  %v2112_v26 = vmin.f32 %v1600_v16, 6.0 }
 0x239   : > { %3132 = vst [vmem:[%s3615_s17 + $0xd88] sm:$0xff] %v2620_v21  ;;  %3133 = vst [vmem:[%s3615_s17 + $0xd90] sm:$0xff] %v2621_v22  ;;  %v2113_v27 = vmin.f32 %v1601_v17, 6.0  ;;  %v1090_v28 = vadd.f32 3.0, %v578_v6  ;;  %v1091_v29 = vadd.f32 3.0, %v579_v7  ;;  %v1092_v30 = vadd.f32 3.0, %v580_v12 }
 0x23a   : > { %3134 = vst [vmem:[%s3615_s17 + $0xd98] sm:$0xff] %v2622_v23  ;;  %3135 = vst [vmem:[%s3615_s17 + $0xda0] sm:$0xff] %v2623_v24  ;;  %v1093_v31 = vadd.f32 3.0, %v581_v13  ;;  %v1094_v32 = vadd.f32 3.0, %v582_v18  ;;  %v1095_v33 = vadd.f32 3.0, %v583_v19  ;;  %v584_v34 = vld [vmem:[%s3593_s30 + $0xdf0] sm:$0xff] }
 0x23b   : > { %3136 = vst [vmem:[%s3615_s17 + $0xda8] sm:$0xff] %v2624_v25  ;;  %v585_v35 = vld [vmem:[%s3593_s30 + $0xdf8] sm:$0xff]  ;;  %v2625_v36 = vmul.f32 0.16666667, %v2112_v26  ;;  %v2626_v37 = vmul.f32 0.16666667, %v2113_v27 }
 0x23c   : > { %v1602_v38 = vmax.f32 %v1090_v28, 0.0  ;;  %v1603_v39 = vmax.f32 %v1091_v29, 0.0  ;;  %v1604_v40 = vmax.f32 %v1092_v30, 0.0  ;;  %v1605_v41 = vmax.f32 %v1093_v31, 0.0  ;;  %v586_v44 = vld [vmem:[%s3593_s30 + $0xe00] sm:$0xff]  ;;  %v587_v49 = vld [vmem:[%s3593_s30 + $0xe08] sm:$0xff] }
 0x23d   : > { %v1606_v42 = vmax.f32 %v1094_v32, 0.0  ;;  %v1607_v43 = vmax.f32 %v1095_v33, 0.0  ;;  %3137 = vst [vmem:[%s3615_s17 + $0xdb0] sm:$0xff] %v2625_v36  ;;  %3138 = vst [vmem:[%s3615_s17 + $0xdb8] sm:$0xff] %v2626_v37  ;;  %v1096_v47 = vadd.f32 3.0, %v584_v34  ;;  %v1097_v48 = vadd.f32 3.0, %v585_v35 }
 0x23e   : > { %v2114_v45 = vmin.f32 %v1602_v38, 6.0  ;;  %v2115_v46 = vmin.f32 %v1603_v39, 6.0  ;;  %v588_v50 = vld [vmem:[%s3593_s30 + $0xe10] sm:$0xff]  ;;  %v589_v51 = vld [vmem:[%s3593_s30 + $0xe18] sm:$0xff]  ;;  %v2116_v52 = vmin.f32 %v1604_v40, 6.0  ;;  %v2117_v53 = vmin.f32 %v1605_v41, 6.0 }
 0x23f   : > { %v2118_v54 = vmin.f32 %v1606_v42, 6.0  ;;  %v2119_v55 = vmin.f32 %v1607_v43, 6.0  ;;  %v590_v56 = vld [vmem:[%s3593_s30 + $0xe20] sm:$0xff]  ;;  %v591_v57 = vld [vmem:[%s3593_s30 + $0xe28] sm:$0xff]  ;;  %v1608_v60 = vmax.f32 %v1096_v47, 0.0  ;;  %v1609_v61 = vmax.f32 %v1097_v48, 0.0 }
 0x240   : > { %v2627_v58 = vmul.f32 0.16666667, %v2114_v45  ;;  %v2628_v59 = vmul.f32 0.16666667, %v2115_v46  ;;  %v2629_v62 = vmul.f32 0.16666667, %v2116_v52 }
 0x241   : > { %v2630_v63 = vmul.f32 0.16666667, %v2117_v53  ;;  %v2631_v0 = vmul.f32 0.16666667, %v2118_v54  ;;  %v2632_v1 = vmul.f32 0.16666667, %v2119_v55 }
 0x242   : > { %3139 = vst [vmem:[%s3615_s17 + $0xdc0] sm:$0xff] %v2627_v58  ;;  %3140 = vst [vmem:[%s3615_s17 + $0xdc8] sm:$0xff] %v2628_v59  ;;  %v2120_v2 = vmin.f32 %v1608_v60, 6.0  ;;  %v2121_v3 = vmin.f32 %v1609_v61, 6.0  ;;  %v1098_v4 = vadd.f32 3.0, %v586_v44  ;;  %v1099_v5 = vadd.f32 3.0, %v587_v49 }
 0x243   : > { %3141 = vst [vmem:[%s3615_s17 + $0xdd0] sm:$0xff] %v2629_v62  ;;  %3142 = vst [vmem:[%s3615_s17 + $0xdd8] sm:$0xff] %v2630_v63  ;;  %v1100_v6 = vadd.f32 3.0, %v588_v50  ;;  %v1101_v7 = vadd.f32 3.0, %v589_v51  ;;  %v1102_v8 = vadd.f32 3.0, %v590_v56  ;;  %v592_v9 = vld [vmem:[%s3593_s30 + $0xe30] sm:$0xff] }
 0x244   : > { %3143 = vst [vmem:[%s3615_s17 + $0xde0] sm:$0xff] %v2631_v0  ;;  %v593_v10 = vld [vmem:[%s3593_s30 + $0xe38] sm:$0xff]  ;;  %3144 = vst [vmem:[%s3615_s17 + $0xde8] sm:$0xff] %v2632_v1  ;;  %v2633_v11 = vmul.f32 0.16666667, %v2120_v2  ;;  %v1610_v13 = vmax.f32 %v1098_v4, 0.0 }
 0x245   : > { %v2634_v12 = vmul.f32 0.16666667, %v2121_v3  ;;  %v1103_v14 = vadd.f32 3.0, %v591_v57  ;;  %v1611_v15 = vmax.f32 %v1099_v5, 0.0  ;;  %v1612_v16 = vmax.f32 %v1100_v6, 0.0  ;;  %v594_v23 = vld [vmem:[%s3593_s30 + $0xe40] sm:$0xff] }
 0x246   : > { %v1613_v17 = vmax.f32 %v1101_v7, 0.0  ;;  %v1614_v18 = vmax.f32 %v1102_v8, 0.0  ;;  %3145 = vst [vmem:[%s3615_s17 + $0xdf0] sm:$0xff] %v2633_v11  ;;  %v2122_v19 = vmin.f32 %v1610_v13, 6.0  ;;  %v1104_v21 = vadd.f32 3.0, %v592_v9  ;;  %v595_v24 = vld [vmem:[%s3593_s30 + $0xe48] sm:$0xff] }
 0x247   : > { %3146 = vst [vmem:[%s3615_s17 + $0xdf8] sm:$0xff] %v2634_v12  ;;  %v1615_v20 = vmax.f32 %v1103_v14, 0.0  ;;  %v1105_v22 = vadd.f32 3.0, %v593_v10  ;;  %v596_v25 = vld [vmem:[%s3593_s30 + $0xe50] sm:$0xff]  ;;  %v2123_v26 = vmin.f32 %v1611_v15, 6.0  ;;  %v2124_v27 = vmin.f32 %v1612_v16, 6.0 }
 0x248   : > { %v2125_v28 = vmin.f32 %v1613_v17, 6.0  ;;  %v2126_v29 = vmin.f32 %v1614_v18, 6.0  ;;  %v597_v30 = vld [vmem:[%s3593_s30 + $0xe58] sm:$0xff]  ;;  %v598_v31 = vld [vmem:[%s3593_s30 + $0xe60] sm:$0xff]  ;;  %v2635_v32 = vmul.f32 0.16666667, %v2122_v19 }
 0x249   : > { %v2127_v33 = vmin.f32 %v1615_v20, 6.0  ;;  %v1616_v34 = vmax.f32 %v1104_v21, 0.0  ;;  %v1617_v35 = vmax.f32 %v1105_v22, 0.0  ;;  %v599_v36 = vld [vmem:[%s3593_s30 + $0xe68] sm:$0xff]  ;;  %v2636_v37 = vmul.f32 0.16666667, %v2123_v26 }
 0x24a   : > { %v2637_v38 = vmul.f32 0.16666667, %v2124_v27  ;;  %v2638_v39 = vmul.f32 0.16666667, %v2125_v28  ;;  %3147 = vst [vmem:[%s3615_s17 + $0xe00] sm:$0xff] %v2635_v32  ;;  %v1106_v44 = vadd.f32 3.0, %v594_v23 }
 0x24b   : > { %v2639_v40 = vmul.f32 0.16666667, %v2126_v29  ;;  %v2640_v41 = vmul.f32 0.16666667, %v2127_v33  ;;  %v2128_v42 = vmin.f32 %v1616_v34, 6.0  ;;  %v2129_v43 = vmin.f32 %v1617_v35, 6.0 }
 0x24c   : > { %3148 = vst [vmem:[%s3615_s17 + $0xe08] sm:$0xff] %v2636_v37  ;;  %3149 = vst [vmem:[%s3615_s17 + $0xe10] sm:$0xff] %v2637_v38  ;;  %v1107_v45 = vadd.f32 3.0, %v595_v24  ;;  %v1108_v46 = vadd.f32 3.0, %v596_v25  ;;  %v1109_v47 = vadd.f32 3.0, %v597_v30  ;;  %v600_v48 = vld [vmem:[%s3593_s30 + $0xe70] sm:$0xff] }
 0x24d   : > { %3150 = vst [vmem:[%s3615_s17 + $0xe18] sm:$0xff] %v2638_v39  ;;  %v601_v49 = vld [vmem:[%s3593_s30 + $0xe78] sm:$0xff]  ;;  %3151 = vst [vmem:[%s3615_s17 + $0xe20] sm:$0xff] %v2639_v40  ;;  %v2641_v50 = vmul.f32 0.16666667, %v2128_v42  ;;  %v1110_v52 = vadd.f32 3.0, %v598_v31 }
 0x24e   : > { %3152 = vst [vmem:[%s3615_s17 + $0xe28] sm:$0xff] %v2640_v41  ;;  %v2642_v51 = vmul.f32 0.16666667, %v2129_v43  ;;  %v1111_v53 = vadd.f32 3.0, %v599_v36  ;;  %v1618_v54 = vmax.f32 %v1106_v44, 0.0  ;;  %v1619_v55 = vmax.f32 %v1107_v45, 0.0 }
 0x24f   : > { %v1620_v56 = vmax.f32 %v1108_v46, 0.0  ;;  %v1621_v57 = vmax.f32 %v1109_v47, 0.0  ;;  %3153 = vst [vmem:[%s3615_s17 + $0xe30] sm:$0xff] %v2641_v50  ;;  %v1622_v58 = vmax.f32 %v1110_v52, 0.0  ;;  %v1112_v60 = vadd.f32 3.0, %v600_v48  ;;  %v602_v62 = vld [vmem:[%s3593_s30 + $0xe80] sm:$0xff] }
 0x250   : > { %3154 = vst [vmem:[%s3615_s17 + $0xe38] sm:$0xff] %v2642_v51  ;;  %v1623_v59 = vmax.f32 %v1111_v53, 0.0  ;;  %v1113_v61 = vadd.f32 3.0, %v601_v49  ;;  %v603_v63 = vld [vmem:[%s3593_s30 + $0xe88] sm:$0xff]  ;;  %v2130_v0 = vmin.f32 %v1618_v54, 6.0  ;;  %v2131_v1 = vmin.f32 %v1619_v55, 6.0 }
 0x251   : > { %v2132_v2 = vmin.f32 %v1620_v56, 6.0  ;;  %v2133_v3 = vmin.f32 %v1621_v57, 6.0  ;;  %v604_v4 = vld [vmem:[%s3593_s30 + $0xe90] sm:$0xff]  ;;  %v605_v5 = vld [vmem:[%s3593_s30 + $0xe98] sm:$0xff]  ;;  %v2134_v6 = vmin.f32 %v1622_v58, 6.0  ;;  %v1624_v8 = vmax.f32 %v1112_v60, 0.0 }
 0x252   : > { %v2135_v7 = vmin.f32 %v1623_v59, 6.0  ;;  %v1625_v9 = vmax.f32 %v1113_v61, 0.0  ;;  %v606_v10 = vld [vmem:[%s3593_s30 + $0xea0] sm:$0xff]  ;;  %v607_v11 = vld [vmem:[%s3593_s30 + $0xea8] sm:$0xff]  ;;  %v2643_v12 = vmul.f32 0.16666667, %v2130_v0 }
 0x253   : > { %v2644_v13 = vmul.f32 0.16666667, %v2131_v1  ;;  %v2645_v14 = vmul.f32 0.16666667, %v2132_v2  ;;  %v2646_v15 = vmul.f32 0.16666667, %v2133_v3 }
 0x254   : > { %v2647_v16 = vmul.f32 0.16666667, %v2134_v6  ;;  %v2648_v17 = vmul.f32 0.16666667, %v2135_v7  ;;  %3155 = vst [vmem:[%s3615_s17 + $0xe40] sm:$0xff] %v2643_v12  ;;  %v2136_v18 = vmin.f32 %v1624_v8, 6.0 }
 0x255   : > { %3156 = vst [vmem:[%s3615_s17 + $0xe48] sm:$0xff] %v2644_v13  ;;  %3157 = vst [vmem:[%s3615_s17 + $0xe50] sm:$0xff] %v2645_v14  ;;  %v2137_v19 = vmin.f32 %v1625_v9, 6.0  ;;  %v1114_v20 = vadd.f32 3.0, %v602_v62  ;;  %v1115_v21 = vadd.f32 3.0, %v603_v63  ;;  %v1116_v22 = vadd.f32 3.0, %v604_v4 }
 0x256   : > { %3158 = vst [vmem:[%s3615_s17 + $0xe58] sm:$0xff] %v2646_v15  ;;  %3159 = vst [vmem:[%s3615_s17 + $0xe60] sm:$0xff] %v2647_v16  ;;  %v1117_v23 = vadd.f32 3.0, %v605_v5  ;;  %v1118_v24 = vadd.f32 3.0, %v606_v10  ;;  %v1119_v25 = vadd.f32 3.0, %v607_v11  ;;  %v608_v26 = vld [vmem:[%s3593_s30 + $0xeb0] sm:$0xff] }
 0x257   : > { %3160 = vst [vmem:[%s3615_s17 + $0xe68] sm:$0xff] %v2648_v17  ;;  %v609_v27 = vld [vmem:[%s3593_s30 + $0xeb8] sm:$0xff]  ;;  %v2649_v28 = vmul.f32 0.16666667, %v2136_v18  ;;  %v2650_v29 = vmul.f32 0.16666667, %v2137_v19 }
 0x258   : > { %v1626_v30 = vmax.f32 %v1114_v20, 0.0  ;;  %v1627_v31 = vmax.f32 %v1115_v21, 0.0  ;;  %v1628_v32 = vmax.f32 %v1116_v22, 0.0  ;;  %v1629_v33 = vmax.f32 %v1117_v23, 0.0  ;;  %v610_v36 = vld [vmem:[%s3593_s30 + $0xec0] sm:$0xff]  ;;  %v611_v41 = vld [vmem:[%s3593_s30 + $0xec8] sm:$0xff] }
 0x259   : > { %v1630_v34 = vmax.f32 %v1118_v24, 0.0  ;;  %v1631_v35 = vmax.f32 %v1119_v25, 0.0  ;;  %3161 = vst [vmem:[%s3615_s17 + $0xe70] sm:$0xff] %v2649_v28  ;;  %3162 = vst [vmem:[%s3615_s17 + $0xe78] sm:$0xff] %v2650_v29  ;;  %v1120_v39 = vadd.f32 3.0, %v608_v26  ;;  %v1121_v40 = vadd.f32 3.0, %v609_v27 }
 0x25a   : > { %v2138_v37 = vmin.f32 %v1626_v30, 6.0  ;;  %v2139_v38 = vmin.f32 %v1627_v31, 6.0  ;;  %v612_v42 = vld [vmem:[%s3593_s30 + $0xed0] sm:$0xff]  ;;  %v613_v43 = vld [vmem:[%s3593_s30 + $0xed8] sm:$0xff]  ;;  %v2140_v44 = vmin.f32 %v1628_v32, 6.0  ;;  %v2141_v45 = vmin.f32 %v1629_v33, 6.0 }
 0x25b   : > { %v2142_v46 = vmin.f32 %v1630_v34, 6.0  ;;  %v2143_v47 = vmin.f32 %v1631_v35, 6.0  ;;  %v614_v48 = vld [vmem:[%s3593_s30 + $0xee0] sm:$0xff]  ;;  %v615_v49 = vld [vmem:[%s3593_s30 + $0xee8] sm:$0xff]  ;;  %v1632_v52 = vmax.f32 %v1120_v39, 0.0  ;;  %v1633_v53 = vmax.f32 %v1121_v40, 0.0 }
 0x25c   : > { %v2651_v50 = vmul.f32 0.16666667, %v2138_v37  ;;  %v2652_v51 = vmul.f32 0.16666667, %v2139_v38  ;;  %v2653_v54 = vmul.f32 0.16666667, %v2140_v44 }
 0x25d   : > { %v2654_v55 = vmul.f32 0.16666667, %v2141_v45  ;;  %v2655_v56 = vmul.f32 0.16666667, %v2142_v46  ;;  %v2656_v57 = vmul.f32 0.16666667, %v2143_v47 }
 0x25e   : > { %3163 = vst [vmem:[%s3615_s17 + $0xe80] sm:$0xff] %v2651_v50  ;;  %3164 = vst [vmem:[%s3615_s17 + $0xe88] sm:$0xff] %v2652_v51  ;;  %v2144_v58 = vmin.f32 %v1632_v52, 6.0  ;;  %v2145_v59 = vmin.f32 %v1633_v53, 6.0  ;;  %v1122_v60 = vadd.f32 3.0, %v610_v36  ;;  %v1123_v61 = vadd.f32 3.0, %v611_v41 }
 0x25f   : > { %3165 = vst [vmem:[%s3615_s17 + $0xe90] sm:$0xff] %v2653_v54  ;;  %3166 = vst [vmem:[%s3615_s17 + $0xe98] sm:$0xff] %v2654_v55  ;;  %v1124_v62 = vadd.f32 3.0, %v612_v42  ;;  %v1125_v63 = vadd.f32 3.0, %v613_v43  ;;  %v1126_v0 = vadd.f32 3.0, %v614_v48  ;;  %v616_v1 = vld [vmem:[%s3593_s30 + $0xef0] sm:$0xff] }
 0x260   : > { %3167 = vst [vmem:[%s3615_s17 + $0xea0] sm:$0xff] %v2655_v56  ;;  %v617_v2 = vld [vmem:[%s3593_s30 + $0xef8] sm:$0xff]  ;;  %3168 = vst [vmem:[%s3615_s17 + $0xea8] sm:$0xff] %v2656_v57  ;;  %v2657_v3 = vmul.f32 0.16666667, %v2144_v58  ;;  %v1634_v5 = vmax.f32 %v1122_v60, 0.0 }
 0x261   : > { %v2658_v4 = vmul.f32 0.16666667, %v2145_v59  ;;  %v1127_v6 = vadd.f32 3.0, %v615_v49  ;;  %v1635_v7 = vmax.f32 %v1123_v61, 0.0  ;;  %v1636_v8 = vmax.f32 %v1124_v62, 0.0  ;;  %v618_v15 = vld [vmem:[%s3593_s30 + $0xf00] sm:$0xff] }
 0x262   : > { %v1637_v9 = vmax.f32 %v1125_v63, 0.0  ;;  %v1638_v10 = vmax.f32 %v1126_v0, 0.0  ;;  %3169 = vst [vmem:[%s3615_s17 + $0xeb0] sm:$0xff] %v2657_v3  ;;  %v2146_v11 = vmin.f32 %v1634_v5, 6.0  ;;  %v1128_v13 = vadd.f32 3.0, %v616_v1  ;;  %v619_v16 = vld [vmem:[%s3593_s30 + $0xf08] sm:$0xff] }
 0x263   : > { %3170 = vst [vmem:[%s3615_s17 + $0xeb8] sm:$0xff] %v2658_v4  ;;  %v1639_v12 = vmax.f32 %v1127_v6, 0.0  ;;  %v1129_v14 = vadd.f32 3.0, %v617_v2  ;;  %v620_v17 = vld [vmem:[%s3593_s30 + $0xf10] sm:$0xff]  ;;  %v2147_v18 = vmin.f32 %v1635_v7, 6.0  ;;  %v2148_v19 = vmin.f32 %v1636_v8, 6.0 }
 0x264   : > { %v2149_v20 = vmin.f32 %v1637_v9, 6.0  ;;  %v2150_v21 = vmin.f32 %v1638_v10, 6.0  ;;  %v621_v22 = vld [vmem:[%s3593_s30 + $0xf18] sm:$0xff]  ;;  %v622_v23 = vld [vmem:[%s3593_s30 + $0xf20] sm:$0xff]  ;;  %v2659_v24 = vmul.f32 0.16666667, %v2146_v11 }
 0x265   : > { %v2151_v25 = vmin.f32 %v1639_v12, 6.0  ;;  %v1640_v26 = vmax.f32 %v1128_v13, 0.0  ;;  %v1641_v27 = vmax.f32 %v1129_v14, 0.0  ;;  %v623_v28 = vld [vmem:[%s3593_s30 + $0xf28] sm:$0xff]  ;;  %v2660_v29 = vmul.f32 0.16666667, %v2147_v18 }
 0x266   : > { %v2661_v30 = vmul.f32 0.16666667, %v2148_v19  ;;  %v2662_v31 = vmul.f32 0.16666667, %v2149_v20  ;;  %3171 = vst [vmem:[%s3615_s17 + $0xec0] sm:$0xff] %v2659_v24  ;;  %v1130_v36 = vadd.f32 3.0, %v618_v15 }
 0x267   : > { %v2663_v32 = vmul.f32 0.16666667, %v2150_v21  ;;  %v2664_v33 = vmul.f32 0.16666667, %v2151_v25  ;;  %v2152_v34 = vmin.f32 %v1640_v26, 6.0  ;;  %v2153_v35 = vmin.f32 %v1641_v27, 6.0 }
 0x268   : > { %3172 = vst [vmem:[%s3615_s17 + $0xec8] sm:$0xff] %v2660_v29  ;;  %3173 = vst [vmem:[%s3615_s17 + $0xed0] sm:$0xff] %v2661_v30  ;;  %v1131_v37 = vadd.f32 3.0, %v619_v16  ;;  %v1132_v38 = vadd.f32 3.0, %v620_v17  ;;  %v1133_v39 = vadd.f32 3.0, %v621_v22  ;;  %v624_v40 = vld [vmem:[%s3593_s30 + $0xf30] sm:$0xff] }
 0x269   : > { %3174 = vst [vmem:[%s3615_s17 + $0xed8] sm:$0xff] %v2662_v31  ;;  %v625_v41 = vld [vmem:[%s3593_s30 + $0xf38] sm:$0xff]  ;;  %3175 = vst [vmem:[%s3615_s17 + $0xee0] sm:$0xff] %v2663_v32  ;;  %v2665_v42 = vmul.f32 0.16666667, %v2152_v34  ;;  %v1134_v44 = vadd.f32 3.0, %v622_v23 }
 0x26a   : > { %3176 = vst [vmem:[%s3615_s17 + $0xee8] sm:$0xff] %v2664_v33  ;;  %v2666_v43 = vmul.f32 0.16666667, %v2153_v35  ;;  %v1135_v45 = vadd.f32 3.0, %v623_v28  ;;  %v1642_v46 = vmax.f32 %v1130_v36, 0.0  ;;  %v1643_v47 = vmax.f32 %v1131_v37, 0.0 }
 0x26b   : > { %v1644_v48 = vmax.f32 %v1132_v38, 0.0  ;;  %v1645_v49 = vmax.f32 %v1133_v39, 0.0  ;;  %3177 = vst [vmem:[%s3615_s17 + $0xef0] sm:$0xff] %v2665_v42  ;;  %v1646_v50 = vmax.f32 %v1134_v44, 0.0  ;;  %v1136_v52 = vadd.f32 3.0, %v624_v40  ;;  %v626_v54 = vld [vmem:[%s3593_s30 + $0xf40] sm:$0xff] }
 0x26c   : > { %3178 = vst [vmem:[%s3615_s17 + $0xef8] sm:$0xff] %v2666_v43  ;;  %v1647_v51 = vmax.f32 %v1135_v45, 0.0  ;;  %v1137_v53 = vadd.f32 3.0, %v625_v41  ;;  %v627_v55 = vld [vmem:[%s3593_s30 + $0xf48] sm:$0xff]  ;;  %v2154_v56 = vmin.f32 %v1642_v46, 6.0  ;;  %v2155_v57 = vmin.f32 %v1643_v47, 6.0 }
 0x26d   : > { %v2156_v58 = vmin.f32 %v1644_v48, 6.0  ;;  %v2157_v59 = vmin.f32 %v1645_v49, 6.0  ;;  %v628_v60 = vld [vmem:[%s3593_s30 + $0xf50] sm:$0xff]  ;;  %v629_v61 = vld [vmem:[%s3593_s30 + $0xf58] sm:$0xff]  ;;  %v2158_v62 = vmin.f32 %v1646_v50, 6.0  ;;  %v1648_v0 = vmax.f32 %v1136_v52, 0.0 }
 0x26e   : > { %v2159_v63 = vmin.f32 %v1647_v51, 6.0  ;;  %v1649_v1 = vmax.f32 %v1137_v53, 0.0  ;;  %v630_v2 = vld [vmem:[%s3593_s30 + $0xf60] sm:$0xff]  ;;  %v631_v3 = vld [vmem:[%s3593_s30 + $0xf68] sm:$0xff]  ;;  %v2667_v4 = vmul.f32 0.16666667, %v2154_v56 }
 0x26f   : > { %v2668_v5 = vmul.f32 0.16666667, %v2155_v57  ;;  %v2669_v6 = vmul.f32 0.16666667, %v2156_v58  ;;  %v2670_v7 = vmul.f32 0.16666667, %v2157_v59 }
 0x270   : > { %v2671_v8 = vmul.f32 0.16666667, %v2158_v62  ;;  %v2672_v9 = vmul.f32 0.16666667, %v2159_v63  ;;  %3179 = vst [vmem:[%s3615_s17 + $0xf00] sm:$0xff] %v2667_v4  ;;  %v2160_v10 = vmin.f32 %v1648_v0, 6.0 }
 0x271   : > { %3180 = vst [vmem:[%s3615_s17 + $0xf08] sm:$0xff] %v2668_v5  ;;  %3181 = vst [vmem:[%s3615_s17 + $0xf10] sm:$0xff] %v2669_v6  ;;  %v2161_v11 = vmin.f32 %v1649_v1, 6.0  ;;  %v1138_v12 = vadd.f32 3.0, %v626_v54  ;;  %v1139_v13 = vadd.f32 3.0, %v627_v55  ;;  %v1140_v14 = vadd.f32 3.0, %v628_v60 }
 0x272   : > { %3182 = vst [vmem:[%s3615_s17 + $0xf18] sm:$0xff] %v2670_v7  ;;  %3183 = vst [vmem:[%s3615_s17 + $0xf20] sm:$0xff] %v2671_v8  ;;  %v1141_v15 = vadd.f32 3.0, %v629_v61  ;;  %v1142_v16 = vadd.f32 3.0, %v630_v2  ;;  %v1143_v17 = vadd.f32 3.0, %v631_v3  ;;  %v632_v18 = vld [vmem:[%s3593_s30 + $0xf70] sm:$0xff] }
 0x273   : > { %3184 = vst [vmem:[%s3615_s17 + $0xf28] sm:$0xff] %v2672_v9  ;;  %v633_v19 = vld [vmem:[%s3593_s30 + $0xf78] sm:$0xff]  ;;  %v2673_v20 = vmul.f32 0.16666667, %v2160_v10  ;;  %v2674_v21 = vmul.f32 0.16666667, %v2161_v11 }
 0x274   : > { %v1650_v22 = vmax.f32 %v1138_v12, 0.0  ;;  %v1651_v23 = vmax.f32 %v1139_v13, 0.0  ;;  %v1652_v24 = vmax.f32 %v1140_v14, 0.0  ;;  %v1653_v25 = vmax.f32 %v1141_v15, 0.0  ;;  %v634_v28 = vld [vmem:[%s3593_s30 + $0xf80] sm:$0xff]  ;;  %v635_v33 = vld [vmem:[%s3593_s30 + $0xf88] sm:$0xff] }
 0x275   : > { %v1654_v26 = vmax.f32 %v1142_v16, 0.0  ;;  %v1655_v27 = vmax.f32 %v1143_v17, 0.0  ;;  %3185 = vst [vmem:[%s3615_s17 + $0xf30] sm:$0xff] %v2673_v20  ;;  %3186 = vst [vmem:[%s3615_s17 + $0xf38] sm:$0xff] %v2674_v21  ;;  %v1144_v31 = vadd.f32 3.0, %v632_v18  ;;  %v1145_v32 = vadd.f32 3.0, %v633_v19 }
 0x276   : > { %v2162_v29 = vmin.f32 %v1650_v22, 6.0  ;;  %v2163_v30 = vmin.f32 %v1651_v23, 6.0  ;;  %v636_v34 = vld [vmem:[%s3593_s30 + $0xf90] sm:$0xff]  ;;  %v637_v35 = vld [vmem:[%s3593_s30 + $0xf98] sm:$0xff]  ;;  %v2164_v36 = vmin.f32 %v1652_v24, 6.0  ;;  %v2165_v37 = vmin.f32 %v1653_v25, 6.0 }
 0x277   : > { %v2166_v38 = vmin.f32 %v1654_v26, 6.0  ;;  %v2167_v39 = vmin.f32 %v1655_v27, 6.0  ;;  %v638_v40 = vld [vmem:[%s3593_s30 + $0xfa0] sm:$0xff]  ;;  %v639_v41 = vld [vmem:[%s3593_s30 + $0xfa8] sm:$0xff]  ;;  %v1656_v44 = vmax.f32 %v1144_v31, 0.0  ;;  %v1657_v45 = vmax.f32 %v1145_v32, 0.0 }
 0x278   : > { %v2675_v42 = vmul.f32 0.16666667, %v2162_v29  ;;  %v2676_v43 = vmul.f32 0.16666667, %v2163_v30  ;;  %v2677_v46 = vmul.f32 0.16666667, %v2164_v36 }
 0x279   : > { %v2678_v47 = vmul.f32 0.16666667, %v2165_v37  ;;  %v2679_v48 = vmul.f32 0.16666667, %v2166_v38  ;;  %v2680_v49 = vmul.f32 0.16666667, %v2167_v39 }
 0x27a   : > { %3187 = vst [vmem:[%s3615_s17 + $0xf40] sm:$0xff] %v2675_v42  ;;  %3188 = vst [vmem:[%s3615_s17 + $0xf48] sm:$0xff] %v2676_v43  ;;  %v2168_v50 = vmin.f32 %v1656_v44, 6.0  ;;  %v2169_v51 = vmin.f32 %v1657_v45, 6.0  ;;  %v1146_v52 = vadd.f32 3.0, %v634_v28  ;;  %v1147_v53 = vadd.f32 3.0, %v635_v33 }
 0x27b   : > { %3189 = vst [vmem:[%s3615_s17 + $0xf50] sm:$0xff] %v2677_v46  ;;  %3190 = vst [vmem:[%s3615_s17 + $0xf58] sm:$0xff] %v2678_v47  ;;  %v1148_v54 = vadd.f32 3.0, %v636_v34  ;;  %v1149_v55 = vadd.f32 3.0, %v637_v35  ;;  %v1150_v56 = vadd.f32 3.0, %v638_v40  ;;  %v640_v57 = vld [vmem:[%s3593_s30 + $0xfb0] sm:$0xff] }
 0x27c   : > { %3191 = vst [vmem:[%s3615_s17 + $0xf60] sm:$0xff] %v2679_v48  ;;  %v641_v58 = vld [vmem:[%s3593_s30 + $0xfb8] sm:$0xff]  ;;  %3192 = vst [vmem:[%s3615_s17 + $0xf68] sm:$0xff] %v2680_v49  ;;  %v2681_v59 = vmul.f32 0.16666667, %v2168_v50  ;;  %v1658_v61 = vmax.f32 %v1146_v52, 0.0 }
 0x27d   : > { %v2682_v60 = vmul.f32 0.16666667, %v2169_v51  ;;  %v1151_v62 = vadd.f32 3.0, %v639_v41  ;;  %v1659_v63 = vmax.f32 %v1147_v53, 0.0  ;;  %v1660_v0 = vmax.f32 %v1148_v54, 0.0  ;;  %v642_v7 = vld [vmem:[%s3593_s30 + $0xfc0] sm:$0xff] }
 0x27e   : > { %v1661_v1 = vmax.f32 %v1149_v55, 0.0  ;;  %v1662_v2 = vmax.f32 %v1150_v56, 0.0  ;;  %3193 = vst [vmem:[%s3615_s17 + $0xf70] sm:$0xff] %v2681_v59  ;;  %v2170_v3 = vmin.f32 %v1658_v61, 6.0  ;;  %v1152_v5 = vadd.f32 3.0, %v640_v57  ;;  %v643_v8 = vld [vmem:[%s3593_s30 + $0xfc8] sm:$0xff] }
 0x27f   : > { %3194 = vst [vmem:[%s3615_s17 + $0xf78] sm:$0xff] %v2682_v60  ;;  %v1663_v4 = vmax.f32 %v1151_v62, 0.0  ;;  %v1153_v6 = vadd.f32 3.0, %v641_v58  ;;  %v644_v9 = vld [vmem:[%s3593_s30 + $0xfd0] sm:$0xff]  ;;  %v2171_v10 = vmin.f32 %v1659_v63, 6.0  ;;  %v2172_v11 = vmin.f32 %v1660_v0, 6.0 }
 0x280   : > { %v2173_v12 = vmin.f32 %v1661_v1, 6.0  ;;  %v2174_v13 = vmin.f32 %v1662_v2, 6.0  ;;  %v645_v14 = vld [vmem:[%s3593_s30 + $0xfd8] sm:$0xff]  ;;  %v646_v15 = vld [vmem:[%s3593_s30 + $0xfe0] sm:$0xff]  ;;  %v2683_v16 = vmul.f32 0.16666667, %v2170_v3 }
 0x281   : > { %v2175_v17 = vmin.f32 %v1663_v4, 6.0  ;;  %v1664_v18 = vmax.f32 %v1152_v5, 0.0  ;;  %v1665_v19 = vmax.f32 %v1153_v6, 0.0  ;;  %v647_v20 = vld [vmem:[%s3593_s30 + $0xfe8] sm:$0xff]  ;;  %v2684_v21 = vmul.f32 0.16666667, %v2171_v10 }
 0x282   : > { %v2685_v22 = vmul.f32 0.16666667, %v2172_v11  ;;  %v2686_v23 = vmul.f32 0.16666667, %v2173_v12  ;;  %3195 = vst [vmem:[%s3615_s17 + $0xf80] sm:$0xff] %v2683_v16  ;;  %v1154_v28 = vadd.f32 3.0, %v642_v7 }
 0x283   : > { %v2687_v24 = vmul.f32 0.16666667, %v2174_v13  ;;  %v2688_v25 = vmul.f32 0.16666667, %v2175_v17  ;;  %v2176_v26 = vmin.f32 %v1664_v18, 6.0  ;;  %v2177_v27 = vmin.f32 %v1665_v19, 6.0 }
 0x284   : > { %3196 = vst [vmem:[%s3615_s17 + $0xf88] sm:$0xff] %v2684_v21  ;;  %3197 = vst [vmem:[%s3615_s17 + $0xf90] sm:$0xff] %v2685_v22  ;;  %v1155_v29 = vadd.f32 3.0, %v643_v8  ;;  %v1156_v30 = vadd.f32 3.0, %v644_v9  ;;  %v1157_v31 = vadd.f32 3.0, %v645_v14  ;;  %v648_v32 = vld [vmem:[%s3593_s30 + $0xff0] sm:$0xff] }
 0x285   : > { %3198 = vst [vmem:[%s3615_s17 + $0xf98] sm:$0xff] %v2686_v23  ;;  %v649_v33 = vld [vmem:[%s3593_s30 + $0xff8] sm:$0xff]  ;;  %3199 = vst [vmem:[%s3615_s17 + $0xfa0] sm:$0xff] %v2687_v24  ;;  %v2689_v34 = vmul.f32 0.16666667, %v2176_v26  ;;  %v1158_v36 = vadd.f32 3.0, %v646_v15 }
 0x286   : > { %3200 = vst [vmem:[%s3615_s17 + $0xfa8] sm:$0xff] %v2688_v25  ;;  %v2690_v35 = vmul.f32 0.16666667, %v2177_v27  ;;  %v1159_v37 = vadd.f32 3.0, %v647_v20  ;;  %v1666_v38 = vmax.f32 %v1154_v28, 0.0  ;;  %v1667_v39 = vmax.f32 %v1155_v29, 0.0 }
 0x287   : > { %v1668_v40 = vmax.f32 %v1156_v30, 0.0  ;;  %v1669_v41 = vmax.f32 %v1157_v31, 0.0  ;;  %3201 = vst [vmem:[%s3615_s17 + $0xfb0] sm:$0xff] %v2689_v34  ;;  %v1670_v42 = vmax.f32 %v1158_v36, 0.0  ;;  %v1160_v44 = vadd.f32 3.0, %v648_v32  ;;  %s3212_s2 = scalar_lea.sflag [#allocation4], %s3587_s23 }
 0x288   : > { %3202 = vst [vmem:[%s3615_s17 + $0xfb8] sm:$0xff] %v2690_v35  ;;  %v1671_v43 = vmax.f32 %v1159_v37, 0.0  ;;  %v1161_v45 = vadd.f32 3.0, %v649_v33  ;;  %v2178_v46 = vmin.f32 %v1666_v38, 6.0  ;;  %v2179_v47 = vmin.f32 %v1667_v39, 6.0  ;;  %s3399_s3 = scalar_lea.vmem %s4632_s27, 65536 }
 0x289   : > { %v2180_v48 = vmin.f32 %v1668_v40, 6.0  ;;  %v2181_v49 = vmin.f32 %v1669_v41, 6.0  ;;  %v2182_v50 = vmin.f32 %v1670_v42, 6.0  ;;  %v1672_v52 = vmax.f32 %v1160_v44, 0.0  ;;  %p3400_p6 = scmp.ne.s32.totalorder %s4632_s27, %s3399_s3  ;;  %p4686_p11 = scmp.ne.s32.totalorder %s4683_s18, 0 }
 0x28a   : > { %v2183_v51 = vmin.f32 %v1671_v43, 6.0  ;;  %v1673_v53 = vmax.f32 %v1161_v45, 0.0  ;;  %v2691_v54 = vmul.f32 0.16666667, %v2178_v46  ;;  %v2692_v55 = vmul.f32 0.16666667, %v2179_v47 }
 0x28b   : > { %v2693_v56 = vmul.f32 0.16666667, %v2180_v48  ;;  %v2694_v57 = vmul.f32 0.16666667, %v2181_v49  ;;  %v2695_v58 = vmul.f32 0.16666667, %v2182_v50  ;;  %p3401_p12 = pnand %p3400_p6, %p4686_p11 }
 0x28c   : > { %v2696_v59 = vmul.f32 0.16666667, %v2183_v51  ;;  %3203 = vst [vmem:[%s3615_s17 + $0xfc0] sm:$0xff] %v2691_v54  ;;  %3204 = vst [vmem:[%s3615_s17 + $0xfc8] sm:$0xff] %v2692_v55  ;;  %v2184_v60 = vmin.f32 %v1672_v52, 6.0  ;;  %v2185_v61 = vmin.f32 %v1673_v53, 6.0 }
 0x28d   : > { %3205 = vst [vmem:[%s3615_s17 + $0xfd0] sm:$0xff] %v2693_v56  ;;  %3206 = vst [vmem:[%s3615_s17 + $0xfd8] sm:$0xff] %v2694_v57  ;;  %p3402_p13 = pneg %p3401_p12  ;;  %s3470_s4 = smov [#allocation5]  }
 0x28e   : > { %3207 = vst [vmem:[%s3615_s17 + $0xfe0] sm:$0xff] %v2695_v58  ;;  %3208 = vst [vmem:[%s3615_s17 + $0xfe8] sm:$0xff] %v2696_v59  ;;  %v2697_v62 = vmul.f32 0.16666667, %v2184_v60  ;;  %v2698_v63 = vmul.f32 0.16666667, %v2185_v61 }
 0x28f   : > { %s3403_s5 = sshll.u32 %s3470_s4, 4  ;;  %s3404_s5 = int_to_ptr.vmem [resolvable:$false] %s3403_s5 }
 0x290   : > { %3209 = vst [vmem:[%s3615_s17 + $0xff0] sm:$0xff] %v2697_v62  ;;  %3210 = vst [vmem:[%s3615_s17 + $0xff8] sm:$0xff] %v2698_v63  ;;  %s3405_s11 = scalar_lea.vmem %s3404_s5, 131072  ;;  %p3406_p8 = scmp.lt.s32.totalorder %s4632_s27, %s3404_s5 }
 0x291   : > { %p3407_p10 = scmp.lt.s32.totalorder %s3405_s11, %s3399_s3 }
 0x293   : > { %p3408_p0 = por %p3407_p10, %p3406_p8 }
 0x295   : > { %p3409_p2 = pnand %p3408_p0, %p3402_p13 }
 0x297   : > { %3412 = shalt.err (!%p3409_p2)
}
 0x298   : > { %s3413_s13 = scalar_lea.hbm %s4630_s29, 65536  ;;  %s3417_s20 = scalar_lea.hbm %s4679_s1, 131072 }
 0x299   : > { %p3414_p4 = scmp.ne.s32.totalorder %s4630_s29, %s3413_s13  ;;  %p3418_p9 = scmp.lt.u32.totalorder %s4630_s29, %s4679_s1 }
 0x29a   : > { %p3419_p1 = scmp.lt.u32.totalorder %s3417_s20, %s3413_s13  ;;  %p3421_p6 = scmp.lt.u32.totalorder %s3413_s13, %s4630_s29 }
 0x29b   : > { %p3415_p5 = pnand %p3414_p4, %p4686_p11 }
 0x29c   : > { %p3420_p3 = por %p3419_p1, %p3418_p9 }
 0x29d   : > { %p3416_p7 = pneg %p3415_p5 }
 0x29e   : > { %p3422_p12 = por %p3421_p6, %p3420_p3 }
 0x2a0   : > { %p3423_p13 = pnand %p3422_p12, %p3416_p7 }
 0x2a2   : > { %3426 = shalt.err (!%p3423_p13)
}
 0x2a3   : > { %s3471_s24 = smov 2048   ;;  %s3472_s26 = smov 128  }
 0x2a4   : > { %3321 = dma.vmem_to_hbm [thread:$0]  (%p4686_p11), %s4632_s27, 65536, %s4630_s29, %s3212_s2, %s3471_s24, %s3471_s24, %s3472_s26  }
 0x2a5 PF: > { %s3241_s30 = sand.u32 1, %s3453_s6   ;;  %p4687_p8 = scmp.ne.s32.totalorder %s4684_s19, 0 }
 0x2a6   : > { %p4688_p10 = scmp.ge.s32.totalorder %s3465_s9, 2  ;;  %s3242_s17 = scalar_lea.sflag [#allocation4], %s3241_s30 }
 0x2a8   : > { %p3328_p0 = pnand %p4688_p10, %p4687_p8 }
 0x2aa   : > { %3448 = dma.done.wait (!%p3328_p0), %s3242_s17, 65536  }
 0x2ab   : > { %3450 = vsyncadd (!%p3328_p0), %s3242_s17, 4294901760  ;;  %p14_p2 = scmp.ge.s32.totalorder %s3508_s12, 4   ;;  %s4689_s6 = smov %s3457_s7 }
 0x2ac   : > { %s4690_s7 = smov %s3461_s8  ;;  %s4691_s8 = smov %s3520_s15 }
 0x2ad   : > { %s4692_s9 = smov %s3508_s12  ;;  %16 = sbr.rel (!%p14_p2) target bundleno = 5 (0x5), region = 69 }
 0x2b4   :  { %3247 = vsyncpa [#allocation3], 1 }
 0x2b5   :  { %3249 = vsyncpa [#allocation3 + $0x1], 1 }
 0x2b6   :  { %3250 = vsyncpa [#allocation4], 1 }
 0x2b7   :  { %3252 = vsyncpa [#allocation4 + $0x1], 1 }

</bundles_post_ra>
